<compile_context>
chip_gen: v5e
topology: v5e:2x2
jax: 0.10.0
libtpu: 0.0.40
codegen_flags: <defaults>
</compile_context>

<pallas_src>
import jax
import jax.numpy as jnp
from jax import lax
import numpy as np
from jax.experimental import pallas as pl
from jax.experimental.pallas import tpu as pltpu

# ---------------- model hyper-params (lane/sublane aligned) -------------------
ATOM_SIZE = 16      # avocab.size()
HIDDEN    = 128     # args.hidden_size
LATENT    = 128     # args.latent_size
VOCAB     = 128     # fragment vocab size for the decoder head
MOLS      = 16      # molecules in the batch
MAX_ATOMS = 128     # padded atoms per molecule
MOL_BLOCK = 4       # molecules per grid step (grid=4 -> real pipelining per TC)
N_BLOCKS  = MOLS // MOL_BLOCK
MP_STEPS  = 3       # message-passing depth inside MolEncoder


def molsynthon_kernel(atom_in_ref, adj_ref, maskbd_ref, wh_ref, wo_ref, wd_ref,
                      emb_ref, logp_ref):
    """Fused encoder + decoder hot path for one block of MOL_BLOCK molecules.

    atom_in_ref: (MB, M, H)       bf16  gathered atom embeddings wa[atom_type]
    adj_ref:     (MB, M, M)       int8  per-molecule dense symmetric adjacency (0/1)
    maskbd_ref:  (1, MB, MB*M)    bf16  block-diagonal masked-mean weights (1/count)
    wh_ref:      (H, H)           bf16  message update weights
    wo_ref:      (H, L)           bf16  molecule readout projection
    wd_ref:      (L, V)           bf16  decoder (fragment classifier) weights
    outputs:
    emb_ref:     (1, MB, L)       f32   molecule vectors   (product_embed_vecs)
    logp_ref:    (1, MB, V)       f32   decoder log-probs  (lane-dense slab)
    """
    # int8 0/1 adjacency -> bf16 for the MXU (exact)
    adj = adj_ref[...].astype(jnp.float32).astype(jnp.bfloat16)
    wh = wh_ref[...]

    # --- MolEncoder: relu atom embedding + relu message passing --------------
    # Carry stays bf16 across iterations (f32 only inside MXU accumulation).
    h0 = jnp.maximum(atom_in_ref[...], 0)                          # (MB, M, H) bf16

    def mp_step(_, h):
        # neighbour aggregation: per-molecule dense adjacency matmul
        m = jnp.einsum('bij,bjh->bih', adj, h,
                       preferred_element_type=jnp.float32)         # (MB, M, H) f32
        # weight update flattened to one streamed MXU pass (MB*M, H) x (H, H)
        m_flat = m.astype(jnp.bfloat16).reshape(MOL_BLOCK * MAX_ATOMS, HIDDEN)
        upd = jnp.dot(m_flat, wh, preferred_element_type=jnp.float32)
        upd = upd.astype(jnp.bfloat16).reshape(MOL_BLOCK, MAX_ATOMS, HIDDEN)
        return jnp.maximum(h0 + upd, 0)                            # bf16 carry

    h = lax.fori_loop(0, MP_STEPS, mp_step, h0, unroll=True)

    # --- molecule readout: masked mean pool as one MXU matmul ----------------
    # maskbd is block-diagonal with 1/count folded in; padded atoms are 0.
    h_flat = h.reshape(MOL_BLOCK * MAX_ATOMS, HIDDEN)              # bf16
    pooled = jnp.dot(maskbd_ref[0], h_flat,
                     preferred_element_type=jnp.float32)           # (MB, H) f32
    emb = jnp.maximum(
        jnp.dot(pooled.astype(jnp.bfloat16), wo_ref[...],
                preferred_element_type=jnp.float32), 0.0)          # (MB, L) f32
    emb_ref[0] = emb

    # --- MolDecoder head: logits + log-softmax (exp/log on the EUP slot) -----
    logits = jnp.dot(emb.astype(jnp.bfloat16), wd_ref[...],
                     preferred_element_type=jnp.float32)           # (MB, V)
    mmax = jnp.max(logits, axis=-1, keepdims=True)
    lse = jnp.log(jnp.sum(jnp.exp(logits - mmax), axis=-1, keepdims=True)) + mmax
    logp_ref[0] = logits - lse


def molsynthon_forward(atom_emb, adj_i8, mask_norm, wh, wo, wd, tgt):
    """Wrapper mirroring MolSynthon.forward(): returns
    (total_loss, frag_loss, frag_acc, frag_rec, frag_num)."""
    # build the per-block block-diagonal pooling mask (pure layout glue):
    # maskbd[g, b, c*M + m] = mask_norm[g*MB + b, m] if c == b else 0
    mask3 = mask_norm.reshape(N_BLOCKS, MOL_BLOCK, MAX_ATOMS)
    eye = jnp.eye(MOL_BLOCK, dtype=mask_norm.dtype)
    maskbd = jnp.einsum('gbm,bc->gbcm', mask3, eye).reshape(
        N_BLOCKS, MOL_BLOCK, MOL_BLOCK * MAX_ATOMS).astype(jnp.bfloat16)

    emb3, logp3 = pl.pallas_call(
        molsynthon_kernel,
        out_shape=(
            jax.ShapeDtypeStruct((N_BLOCKS, MOL_BLOCK, LATENT), jnp.float32),
            jax.ShapeDtypeStruct((N_BLOCKS, MOL_BLOCK, VOCAB), jnp.float32),
        ),
        grid_spec=pltpu.PrefetchScalarGridSpec(
            num_scalar_prefetch=0,
            grid=(N_BLOCKS,),
            in_specs=[
                pl.BlockSpec((MOL_BLOCK, MAX_ATOMS, HIDDEN), lambda i: (i, 0, 0)),
                pl.BlockSpec((MOL_BLOCK, MAX_ATOMS, MAX_ATOMS), lambda i: (i, 0, 0)),
                pl.BlockSpec((1, MOL_BLOCK, MOL_BLOCK * MAX_ATOMS),
                             lambda i: (i, 0, 0)),
                pl.BlockSpec((HIDDEN, HIDDEN), lambda i: (0, 0)),
                pl.BlockSpec((HIDDEN, LATENT), lambda i: (0, 0)),
                pl.BlockSpec((LATENT, VOCAB), lambda i: (0, 0)),
            ],
            out_specs=(
                pl.BlockSpec((1, MOL_BLOCK, LATENT), lambda i: (i, 0, 0)),
                pl.BlockSpec((1, MOL_BLOCK, VOCAB), lambda i: (i, 0, 0)),
            ),
        ),
        compiler_params=pltpu.CompilerParams(
            dimension_semantics=("parallel",)),
    )(atom_emb, adj_i8, maskbd, wh, wo, wd)

    embed_vecs = emb3.reshape(MOLS, LATENT)            # product_embed_vecs
    logp = logp3.reshape(MOLS, VOCAB)

    # glue: assemble the (loss-list, stats) structure the PyTorch forward returns
    nll = -jnp.take_along_axis(logp, tgt[:, None], axis=-1)[:, 0]      # (MOLS,)
    # TODO(synk): reference MolDecoder's per-fragment CE reduction (sum vs mean)
    # is not available from the provided source; mean over the batch is used.
    frag_loss = [jnp.mean(nll)]
    total_loss = jnp.sum(jnp.stack(frag_loss, axis=0))  # torch.sum(torch.stack(...))
    pred = jnp.argmax(logp, axis=-1)
    acc = jnp.mean((pred == tgt).astype(jnp.float32))
    frag_acc = [acc]
    # TODO(synk): MolDecoder's exact frag_rec (tree reconstruction rate) is not
    # available from the provided source; accuracy used as a stand-in.
    frag_rec = [acc]
    frag_num = [jnp.array(MOLS, jnp.int32)]
    del embed_vecs  # forward() does not return atom/embed vecs; decoder use is fused above
    return total_loss, frag_loss, frag_acc, frag_rec, frag_num


if __name__ == "__main__":
    key = jax.random.PRNGKey(0)
    k_atom, k_tgt, k_wa, k_wh, k_wo, k_wd = jax.random.split(key, 6)

    # deterministic synthetic molecule batch: per-molecule ring graphs, padded
    # to MAX_ATOMS (block-diagonal across the batch -> (B, M, M) adjacency).
    n_real = np.array([64 + (17 * b) % 64 for b in range(MOLS)], dtype=np.int32)
    adj_np = np.zeros((MOLS, MAX_ATOMS, MAX_ATOMS), dtype=np.int8)
    mask_np = np.zeros((MOLS, MAX_ATOMS), dtype=np.float32)
    for b in range(MOLS):
        n = int(n_real[b])
        mask_np[b, :n] = 1.0
        i = np.arange(n)
        j = (i + 1) % n
        adj_np[b, i, j] = 1
        adj_np[b, j, i] = 1
    counts = np.maximum(mask_np.sum(-1, keepdims=True), 1.0)          # guard empty mols
    mask_norm = jnp.asarray(mask_np / counts, jnp.float32)            # (B, M), 1/count folded
    adj_i8 = jnp.asarray(adj_np, jnp.int8)                            # 0/1 exact in int8

    # atom embeddings: one-hot E_a matmul replaced by a row gather (same result)
    atom_types = jax.random.randint(k_atom, (MOLS, MAX_ATOMS), 0, ATOM_SIZE)
    wa = 0.1 * jax.random.normal(k_wa, (ATOM_SIZE, HIDDEN), jnp.float32)
    atom_emb = wa[atom_types].astype(jnp.bfloat16)                    # (B, M, H)

    # deterministic weights (bf16 storage, f32 accumulation in-kernel)
    wh = (0.1 * jax.random.normal(k_wh, (HIDDEN, HIDDEN), jnp.float32)).astype(jnp.bfloat16)
    wo = (0.1 * jax.random.normal(k_wo, (HIDDEN, LATENT), jnp.float32)).astype(jnp.bfloat16)
    wd = (0.1 * jax.random.normal(k_wd, (LATENT, VOCAB), jnp.float32)).astype(jnp.bfloat16)

    # fragment targets
    tgt = jax.random.randint(k_tgt, (MOLS,), 0, VOCAB)

    out = molsynthon_forward(atom_emb, adj_i8, mask_norm, wh, wo, wd, tgt)
    total_loss = jax.block_until_ready(out[0])
    jax.block_until_ready(out[1][0])
    jax.block_until_ready(out[2][0])
    assert jnp.isfinite(total_loss)
    print("KERNEL_OK")
</pallas_src>

<mosaic_0001>
module attributes {stable_mosaic.version = 11 : i64} {
  func.func @molsynthon_kernel(%arg0: i32, %arg1: memref<4x128x128xbf16, #tpu.memory_space<vmem>>, %arg2: memref<4x128x128xi8, #tpu.memory_space<vmem>>, %arg3: memref<1x4x512xbf16, #tpu.memory_space<vmem>>, %arg4: memref<128x128xbf16, #tpu.memory_space<vmem>>, %arg5: memref<128x128xbf16, #tpu.memory_space<vmem>>, %arg6: memref<128x128xbf16, #tpu.memory_space<vmem>>, %arg7: memref<1x4x128xf32, #tpu.memory_space<vmem>>, %arg8: memref<1x4x128xf32, #tpu.memory_space<vmem>>) attributes {dimension_semantics = [#tpu.dimension_semantics<parallel>], iteration_bounds = array<i64: 4>, scalar_prefetch = 0 : i64, scratch_operands = 0 : i64, tpu.core_type = #tpu.core_type<tc>, window_params = [{transform_indices = @transform_0, window_bounds = array<i64: 4, 128, 128>}, {transform_indices = @transform_1, window_bounds = array<i64: 4, 128, 128>}, {transform_indices = @transform_2, window_bounds = array<i64: 1, 4, 512>}, {pipeline_mode = #tpu.pipeline_mode<synchronous>, transform_indices = @transform_3, window_bounds = array<i64: 128, 128>}, {pipeline_mode = #tpu.pipeline_mode<synchronous>, transform_indices = @transform_4, window_bounds = array<i64: 128, 128>}, {pipeline_mode = #tpu.pipeline_mode<synchronous>, transform_indices = @transform_5, window_bounds = array<i64: 128, 128>}, {transform_indices = @transform_6, window_bounds = array<i64: 1, 4, 128>}, {transform_indices = @transform_7, window_bounds = array<i64: 1, 4, 128>}]} {
    %c0 = arith.constant 0 : index
    %c0_0 = arith.constant 0 : index
    %c0_1 = arith.constant 0 : index
    %0 = vector.load %arg2[%c0, %c0_0, %c0_1] : memref<4x128x128xi8, #tpu.memory_space<vmem>>, vector<4x128x128xi8>
    %1 = arith.sitofp %0 : vector<4x128x128xi8> to vector<4x128x128xf32>
    %2 = arith.truncf %1 : vector<4x128x128xf32> to vector<4x128x128xbf16>
    %c0_2 = arith.constant 0 : index
    %c0_3 = arith.constant 0 : index
    %3 = vector.load %arg4[%c0_2, %c0_3] : memref<128x128xbf16, #tpu.memory_space<vmem>>, vector<128x128xbf16>
    %c0_4 = arith.constant 0 : index
    %c0_5 = arith.constant 0 : index
    %c0_6 = arith.constant 0 : index
    %4 = vector.load %arg1[%c0_4, %c0_5, %c0_6] : memref<4x128x128xbf16, #tpu.memory_space<vmem>>, vector<4x128x128xbf16>
    %cst = arith.constant 0.000000e+00 : bf16
    %5 = vector.broadcast %cst : bf16 to vector<4x128x128xbf16>
    %6 = arith.maximumf %4, %5 : vector<4x128x128xbf16>
    %c0_i32 = arith.constant 0 : i32
    "tpu.trace_start"() <{level = 10 : i32, message = "bij,bjh->bih"}> : () -> ()
    %cst_7 = arith.constant dense<0.000000e+00> : vector<4x128x128xf32>
    %7 = tpu.matmul %2, %6, %cst_7 {dimension_numbers = #tpu.dot_dimension_numbers<[2], [1], [1], [2], [0, 0, 0, 1, 1, 2], [0], [0]>} : vector<4x128x128xbf16>, vector<4x128x128xbf16>, vector<4x128x128xf32> -> vector<4x128x128xf32>
    "tpu.trace_stop"() : () -> ()
    %8 = arith.truncf %7 : vector<4x128x128xf32> to vector<4x128x128xbf16>
    %9 = vector.shape_cast %8 : vector<4x128x128xbf16> to vector<512x128xbf16>
    %cst_8 = arith.constant dense<0.000000e+00> : vector<512x128xf32>
    %10 = tpu.matmul %9, %3, %cst_8 {dimension_numbers = #tpu.dot_dimension_numbers<[1], [0], [0], [1], [0, 0, 1, 1], [], []>} : vector<512x128xbf16>, vector<128x128xbf16>, vector<512x128xf32> -> vector<512x128xf32>
    %11 = arith.truncf %10 : vector<512x128xf32> to vector<512x128xbf16>
    %12 = vector.shape_cast %11 : vector<512x128xbf16> to vector<4x128x128xbf16>
    %13 = arith.addf %6, %12 : vector<4x128x128xbf16>
    %cst_9 = arith.constant 0.000000e+00 : bf16
    %14 = vector.broadcast %cst_9 : bf16 to vector<4x128x128xbf16>
    %15 = arith.maximumf %13, %14 : vector<4x128x128xbf16>
    %c1_i32 = arith.constant 1 : i32
    "tpu.trace_start"() <{level = 10 : i32, message = "bij,bjh->bih"}> : () -> ()
    %cst_10 = arith.constant dense<0.000000e+00> : vector<4x128x128xf32>
    %16 = tpu.matmul %2, %15, %cst_10 {dimension_numbers = #tpu.dot_dimension_numbers<[2], [1], [1], [2], [0, 0, 0, 1, 1, 2], [0], [0]>} : vector<4x128x128xbf16>, vector<4x128x128xbf16>, vector<4x128x128xf32> -> vector<4x128x128xf32>
    "tpu.trace_stop"() : () -> ()
    %17 = arith.truncf %16 : vector<4x128x128xf32> to vector<4x128x128xbf16>
    %18 = vector.shape_cast %17 : vector<4x128x128xbf16> to vector<512x128xbf16>
    %cst_11 = arith.constant dense<0.000000e+00> : vector<512x128xf32>
    %19 = tpu.matmul %18, %3, %cst_11 {dimension_numbers = #tpu.dot_dimension_numbers<[1], [0], [0], [1], [0, 0, 1, 1], [], []>} : vector<512x128xbf16>, vector<128x128xbf16>, vector<512x128xf32> -> vector<512x128xf32>
    %20 = arith.truncf %19 : vector<512x128xf32> to vector<512x128xbf16>
    %21 = vector.shape_cast %20 : vector<512x128xbf16> to vector<4x128x128xbf16>
    %22 = arith.addf %6, %21 : vector<4x128x128xbf16>
    %cst_12 = arith.constant 0.000000e+00 : bf16
    %23 = vector.broadcast %cst_12 : bf16 to vector<4x128x128xbf16>
    %24 = arith.maximumf %22, %23 : vector<4x128x128xbf16>
    %c2_i32 = arith.constant 2 : i32
    "tpu.trace_start"() <{level = 10 : i32, message = "bij,bjh->bih"}> : () -> ()
    %cst_13 = arith.constant dense<0.000000e+00> : vector<4x128x128xf32>
    %25 = tpu.matmul %2, %24, %cst_13 {dimension_numbers = #tpu.dot_dimension_numbers<[2], [1], [1], [2], [0, 0, 0, 1, 1, 2], [0], [0]>} : vector<4x128x128xbf16>, vector<4x128x128xbf16>, vector<4x128x128xf32> -> vector<4x128x128xf32>
    "tpu.trace_stop"() : () -> ()
    %26 = arith.truncf %25 : vector<4x128x128xf32> to vector<4x128x128xbf16>
    %27 = vector.shape_cast %26 : vector<4x128x128xbf16> to vector<512x128xbf16>
    %cst_14 = arith.constant dense<0.000000e+00> : vector<512x128xf32>
    %28 = tpu.matmul %27, %3, %cst_14 {dimension_numbers = #tpu.dot_dimension_numbers<[1], [0], [0], [1], [0, 0, 1, 1], [], []>} : vector<512x128xbf16>, vector<128x128xbf16>, vector<512x128xf32> -> vector<512x128xf32>
    %29 = arith.truncf %28 : vector<512x128xf32> to vector<512x128xbf16>
    %30 = vector.shape_cast %29 : vector<512x128xbf16> to vector<4x128x128xbf16>
    %31 = arith.addf %6, %30 : vector<4x128x128xbf16>
    %cst_15 = arith.constant 0.000000e+00 : bf16
    %32 = vector.broadcast %cst_15 : bf16 to vector<4x128x128xbf16>
    %33 = arith.maximumf %31, %32 : vector<4x128x128xbf16>
    %34 = vector.shape_cast %33 : vector<4x128x128xbf16> to vector<512x128xbf16>
    %c0_16 = arith.constant 0 : index
    %c0_17 = arith.constant 0 : index
    %c0_18 = arith.constant 0 : index
    %35 = vector.load %arg3[%c0_16, %c0_17, %c0_18] : memref<1x4x512xbf16, #tpu.memory_space<vmem>>, vector<1x4x512xbf16>
    %36 = vector.shape_cast %35 : vector<1x4x512xbf16> to vector<4x512xbf16>
    %cst_19 = arith.constant dense<0.000000e+00> : vector<4x128xf32>
    %37 = tpu.matmul %36, %34, %cst_19 {dimension_numbers = #tpu.dot_dimension_numbers<[1], [0], [0], [1], [0, 0, 1, 1], [], []>} : vector<4x512xbf16>, vector<512x128xbf16>, vector<4x128xf32> -> vector<4x128xf32>
    %38 = arith.truncf %37 : vector<4x128xf32> to vector<4x128xbf16>
    %c0_20 = arith.constant 0 : index
    %c0_21 = arith.constant 0 : index
    %39 = vector.load %arg5[%c0_20, %c0_21] : memref<128x128xbf16, #tpu.memory_space<vmem>>, vector<128x128xbf16>
    %cst_22 = arith.constant dense<0.000000e+00> : vector<4x128xf32>
    %40 = tpu.matmul %38, %39, %cst_22 {dimension_numbers = #tpu.dot_dimension_numbers<[1], [0], [0], [1], [0, 0, 1, 1], [], []>} : vector<4x128xbf16>, vector<128x128xbf16>, vector<4x128xf32> -> vector<4x128xf32>
    %cst_23 = arith.constant 0.000000e+00 : f32
    %41 = vector.broadcast %cst_23 : f32 to vector<4x128xf32>
    %42 = arith.maximumf %40, %41 : vector<4x128xf32>
    %c0_24 = arith.constant 0 : index
    %c0_25 = arith.constant 0 : index
    %c0_26 = arith.constant 0 : index
    %43 = vector.load %arg7[%c0_24, %c0_25, %c0_26] : memref<1x4x128xf32, #tpu.memory_space<vmem>>, vector<1x4x128xf32>
    %44 = vector.shape_cast %43 : vector<1x4x128xf32> to vector<4x128xf32>
    %45 = vector.shape_cast %42 : vector<4x128xf32> to vector<1x4x128xf32>
    tpu.vector_store %arg7[%c0_24, %c0_25, %c0_26], %45 {strides = array<i32>} : memref<1x4x128xf32, #tpu.memory_space<vmem>>, vector<1x4x128xf32>,
    %46 = arith.truncf %42 : vector<4x128xf32> to vector<4x128xbf16>
    %c0_27 = arith.constant 0 : index
    %c0_28 = arith.constant 0 : index
    %47 = vector.load %arg6[%c0_27, %c0_28] : memref<128x128xbf16, #tpu.memory_space<vmem>>, vector<128x128xbf16>
    %cst_29 = arith.constant dense<0.000000e+00> : vector<4x128xf32>
    %48 = tpu.matmul %46, %47, %cst_29 {dimension_numbers = #tpu.dot_dimension_numbers<[1], [0], [0], [1], [0, 0, 1, 1], [], []>} : vector<4x128xbf16>, vector<128x128xbf16>, vector<4x128xf32> -> vector<4x128xf32>
    %cst_30 = arith.constant dense<0xFF800000> : vector<4xf32>
    %49 = vector.multi_reduction <maximumf>, %48, %cst_30 [1] : vector<4x128xf32> to vector<4xf32>
    %50 = vector.shape_cast %49 : vector<4xf32> to vector<4x1xf32>
    %51 = vector.broadcast %50 : vector<4x1xf32> to vector<4x128xf32>
    %52 = arith.subf %48, %51 : vector<4x128xf32>
    %53 = math.exp %52 : vector<4x128xf32>
    %cst_31 = arith.constant dense<0.000000e+00> : vector<4xf32>
    %54 = vector.multi_reduction <add>, %53, %cst_31 [1] : vector<4x128xf32> to vector<4xf32>
    %55 = vector.shape_cast %54 : vector<4xf32> to vector<4x1xf32>
    %56 = math.log %55 : vector<4x1xf32>
    %57 = arith.addf %56, %50 : vector<4x1xf32>
    %58 = vector.broadcast %57 : vector<4x1xf32> to vector<4x128xf32>
    %59 = arith.subf %48, %58 : vector<4x128xf32>
    %c0_32 = arith.constant 0 : index
    %c0_33 = arith.constant 0 : index
    %c0_34 = arith.constant 0 : index
    %60 = vector.load %arg8[%c0_32, %c0_33, %c0_34] : memref<1x4x128xf32, #tpu.memory_space<vmem>>, vector<1x4x128xf32>
    %61 = vector.shape_cast %60 : vector<1x4x128xf32> to vector<4x128xf32>
    %62 = vector.shape_cast %59 : vector<4x128xf32> to vector<1x4x128xf32>
    tpu.vector_store %arg8[%c0_32, %c0_33, %c0_34], %62 {strides = array<i32>} : memref<1x4x128xf32, #tpu.memory_space<vmem>>, vector<1x4x128xf32>,
    return
  }
  func.func @transform_0(%arg0: i32) -> (i32, i32, i32) {
    %c0_i32 = arith.constant 0 : i32
    %c0_i32_0 = arith.constant 0 : i32
    %c0_i32_1 = arith.constant 0 : i32
    return %arg0, %c0_i32, %c0_i32_0 : i32, i32, i32
  }
  func.func @transform_1(%arg0: i32) -> (i32, i32, i32) {
    %c0_i32 = arith.constant 0 : i32
    %c0_i32_0 = arith.constant 0 : i32
    %c0_i32_1 = arith.constant 0 : i32
    return %arg0, %c0_i32, %c0_i32_0 : i32, i32, i32
  }
  func.func @transform_2(%arg0: i32) -> (i32, i32, i32) {
    %c0_i32 = arith.constant 0 : i32
    %c0_i32_0 = arith.constant 0 : i32
    %c0_i32_1 = arith.constant 0 : i32
    return %arg0, %c0_i32, %c0_i32_0 : i32, i32, i32
  }
  func.func @transform_3(%arg0: i32) -> (i32, i32) {
    %c0_i32 = arith.constant 0 : i32
    %c0_i32_0 = arith.constant 0 : i32
    %c0_i32_1 = arith.constant 0 : i32
    return %c0_i32, %c0_i32_0 : i32, i32
  }
  func.func @transform_4(%arg0: i32) -> (i32, i32) {
    %c0_i32 = arith.constant 0 : i32
    %c0_i32_0 = arith.constant 0 : i32
    %c0_i32_1 = arith.constant 0 : i32
    return %c0_i32, %c0_i32_0 : i32, i32
  }
  func.func @transform_5(%arg0: i32) -> (i32, i32) {
    %c0_i32 = arith.constant 0 : i32
    %c0_i32_0 = arith.constant 0 : i32
    %c0_i32_1 = arith.constant 0 : i32
    return %c0_i32, %c0_i32_0 : i32, i32
  }
  func.func @transform_6(%arg0: i32) -> (i32, i32, i32) {
    %c0_i32 = arith.constant 0 : i32
    %c0_i32_0 = arith.constant 0 : i32
    %c0_i32_1 = arith.constant 0 : i32
    return %arg0, %c0_i32, %c0_i32_0 : i32, i32, i32
  }
  func.func @transform_7(%arg0: i32) -> (i32, i32, i32) {
    %c0_i32 = arith.constant 0 : i32
    %c0_i32_0 = arith.constant 0 : i32
    %c0_i32_1 = arith.constant 0 : i32
    return %arg0, %c0_i32, %c0_i32_0 : i32, i32, i32
  }
}

</mosaic_0001>

<bundles_post_ra>
// kernel: tpu_custom_call.1
= control target key start
LH: loop header
LB: loop body
LE: loop exit
PB: predicated region body
PF: predicated region fallthrough
CT: control target
= control target key end

     0   :  { %s8125_s0 = inlined_call_operand.hbm [shape: bf16[16,128,128], index: 0, kind: input, shape index: {}]   ;;  %s8126_s1 = inlined_call_operand.hbm [shape: s8[16,128,128], index: 1, kind: input, shape index: {}]   ;;  %s8127_s2 = inlined_call_operand.hbm [shape: bf16[4,4,512], index: 2, kind: input, shape index: {}]   ;;  %s8128_s3 = inlined_call_operand.hbm [shape: bf16[128,128], index: 3, kind: input, shape index: {}]   ;;  %s8129_s4 = inlined_call_operand.hbm [shape: bf16[128,128], index: 4, kind: input, shape index: {}]   ;;  %s8130_s5 = inlined_call_operand.hbm [shape: bf16[128,128], index: 5, kind: input, shape index: {}]   ;;  %s8131_s6 = inlined_call_operand.hbm [shape: f32[4,4,128], index: 6, kind: output, shape index: {0}]   ;;  %s8132_s7 = inlined_call_operand.hbm [shape: f32[4,4,128], index: 7, kind: output, shape index: {1}]  }
   0x1   :  { %8351 = sst [smem:[#allocation127_spill]] %s8126_s1 }
   0x2   :  { %8352 = sst [smem:[#allocation128_spill]] %s8128_s3 }
   0x3   :  { %8353 = sst [smem:[#allocation129_spill]] %s8129_s4 }
   0x4   :  { %13 = vsyncpa [#allocation3], 0 }
   0x5   :  { %15 = vsyncpa [#allocation3 + $0x1], 0 }
   0x6   :  { %16 = vsyncpa [#allocation6], 0 }
   0x7   :  { %18 = vsyncpa [#allocation6 + $0x1], 0 }
   0x8   :  { %19 = vsyncpa [#allocation9], 0 }
   0x9   :  { %20 = vsyncpa [#allocation12], 0 }
   0xa   :  { %21 = vsyncpa [#allocation4], 0 }
   0xb   :  { %23 = vsyncpa [#allocation4 + $0x1], 0 }
   0xc   :  { %24 = vsyncpa [#allocation15], 0 }
   0xd   :  { %26 = vsyncpa [#allocation15 + $0x1], 0  ;;  %s6435_s24 = smov 0   ;;  %s6437_s25 = smov 0  }
   0xe   :  { %s6439_s26 = smov 0   ;;  %s6441_s27 = smov 0  }
   0xf LB: > { %8354 = sst [smem:[#allocation22_spill]] %s6374_s24  ;;  %s6456_s28 = sadd.s32 4294967295, %s6386_s27   ;;  %s6386_s27 = sphi %s6441_s27, %s8722_s27   ;;  %s6382_s26 = sphi %s6439_s26, %s8724_s26   ;;  %s6378_s25 = sphi %s6437_s25, %s8726_s25   ;;  %s6374_s24 = sphi %s6435_s24, %s8725_s24  }
  0x10   : > { %8355 = sst [smem:[#allocation23_spill]] %s6382_s26  ;;  %s5648_s29 = sadd.s32 4294967294, %s6386_s27  }
  0x11   : > { %p52_p0 = scmp.ne.s32.totalorder %s6378_s25, %s6374_s24  ;;  %p8142_p1 = scmp.eq.s32.totalorder %s6456_s28, 0 }
  0x12   : > { %p191_p2 = scmp.eq.s32.totalorder %s6456_s28, 3  ;;  %p197_p3 = scmp.eq.s32.totalorder %s5648_s29, 3 }
  0x13   : > { %p6465_p4 = por %p8142_p1, %p52_p0  ;;  %p5649_p5 = scmp.ge.s32.totalorder %s6386_s27, 1 }
  0x14   : > { %p6470_p6 = por %p197_p3, %p52_p0  ;;  %p230_p7 = scmp.lt.s32.totalorder %s6386_s27, 5 }
  0x15   : > { %s8359_s3 = sld [smem:[#allocation128_spill]]  ;;  %s6388_s13 = smov [#allocation8]  }
  0x16   : > { %s8357_s8 = scalar_select %p6470_p6, 1, 0 }
  0x17   : > { %p6478_p8 = pnand %p5649_p5, %p230_p7  ;;  %s243_s14 = sshll.u32 %s6388_s13, 4  ;;  %s244_s14 = int_to_ptr.vmem [resolvable:$true] %s243_s14 }
  0x18   : > { %8358 = sst [smem:[#allocation24_spill]] %s8357_s8  ;;  %s6491_s16 = sadd.s32 1, %s6386_s27  }
  0x19   : > { %p6002_p9 = pneg %p6478_p8  ;;  %8362 = sst [smem:[#allocation25_spill]] %s6491_s16 }
  0x1a   : > { %s8133_s17 = smov 64   ;;  %s8135_s18 = smov 4  }
  0x1b   : > { %s241_s11 = sshll.u32 %s8359_s3, 4  ;;  %p6486_p10 = pnand %p6002_p9, %p8142_p1  ;;  %s242_s11 = int_to_ptr.hbm [resolvable:$true] %s241_s11 }
  0x1c   : > { %s36_s19 = ssub.s32 %s6386_s27, %s6491_s16  ;;  %s39_s20 = sadd.s32 1, %s6382_s26 }
  0x1d   : > { %6005 = dma.hbm_to_vmem [thread:$0]  (!%p6486_p10), %s242_s11, 1024, %s244_s14, [#allocation9], %s8133_s17, %s8133_s17, %s8135_s18  }
  0x1e   : > { %p37_p11 = scmp.eq.s32.totalorder %s36_s19, 0  ;;  %p46_p12 = scmp.ne.s32.totalorder %s6382_s26, %s6378_s25 }
  0x1f   : > { %p47_p13 = scmp.eq.s32.totalorder %s6386_s27, 0  ;;  %p6032_p0 = scmp.lt.s32.totalorder %s6386_s27, 4 }
  0x20   : > { %s6506_s21 = scalar_select %p37_p11, %s6382_s26, %s39_s20  }
  0x21   : > { %p48_p3 = por %p47_p13, %p46_p12  ;;  %p6510_p5 = por %p191_p2, %p46_p12 }
  0x22   : > { %8363 = sst [smem:[#allocation26_spill]] %s6506_s21  ;;  %s6515_s23 = sand.u32 1, %s6382_s26  }
  0x23   : > { %s308_s29 = sand.u32 1, %s6386_s27   ;;  %p6518_p7 = pnand %p6032_p0, %p48_p3 }
  0x24   : > { %s5658_s10 = sshll.u32 %s6515_s23, 7  ;;  %s5779_s11 = sshll.u32 %s6386_s27, 7 }
  0x25   : > { %s8366_s1 = sld [smem:[#allocation127_spill]]  ;;  %s312_s20 = scalar_lea.vmem [#allocation5], %s5658_s10 }
  0x26   : > { %s321_s17 = sshll.u32 %s312_s20, 4  ;;  %s8367_s4 = sld [smem:[#allocation129_spill]]  ;;  %s322_s17 = int_to_ptr.vmem [resolvable:$true] %s321_s17 }
  0x27   : > { %s6530_s16 = scalar_lea.sflag [#allocation6], %s308_s29  ;;  %p6130_p9 = pneg %p6518_p7 }
  0x2b   : > { %s318_s19 = scalar_lea.hbm %s8366_s1, %s5779_s11  ;;  %s6133_s13 = scalar_lea.hbm %s8366_s1, 512 }
  0x2c   : > { %s319_s18 = sshll.u32 %s318_s19, 4  ;;  %s255_s26 = sshll.u32 %s8367_s4, 4  ;;  %s320_s18 = int_to_ptr.hbm [resolvable:$true] %s319_s18  ;;  %s256_s26 = int_to_ptr.hbm [resolvable:$true] %s255_s26 }
  0x2d   : > { %s6126_s8 = sshra.s32 %s320_s18, 4  ;;  %s6127_s8 = int_to_ptr.hbm [resolvable:$true] %s6126_s8 }
  0x2e   : > { %s6128_s24 = scalar_lea.hbm %s6127_s8, 128  ;;  %p6134_p13 = scmp.lt.s32.totalorder %s6127_s8, %s8366_s1 }
  0x2f   : > { %p6129_p2 = scmp.ne.s32.totalorder %s6127_s8, %s6128_s24  ;;  %p6135_p0 = scmp.lt.s32.totalorder %s6133_s13, %s6128_s24 }
  0x31   : > { %p6131_p11 = pnand %p6130_p9, %p6129_p2  ;;  %p6136_p3 = por %p6135_p0, %p6134_p13 }
  0x33   : > { %p6132_p12 = pneg %p6131_p11 }
  0x35   : > { %p6137_p1 = pnand %p6136_p3, %p6132_p12 }
  0x37   : > { %6140 = shalt.err (!%p6137_p1)
}
  0x38   : > { %s6391_s3 = smov 128   ;;  %s6392_s21 = smov 8  }
  0x39   : > { %6018 = dma.hbm_to_vmem [thread:$0]  (!%p6518_p7), %s320_s18, 2048, %s322_s17, %s6530_s16, %s6391_s3, %s6391_s3, %s6392_s21  }
  0x3a   : > { %s6393_s29 = smov [#allocation10]   ;;  %s269_s24 = sshll.u32 %s8130_s5, 4  ;;  %s270_s24 = int_to_ptr.hbm [resolvable:$true] %s269_s24 }
  0x3b   : > { %s257_s20 = sshll.u32 %s6393_s29, 4  ;;  %s8368_s8 = smov 4   ;;  %s258_s20 = int_to_ptr.vmem [resolvable:$true] %s257_s20 }
  0x3c   : > { %s8369_s13 = smov 64   ;;  %s6394_s14 = smov [#allocation11]  }
  0x3d   : > { %6008 = dma.hbm_to_vmem [thread:$0]  (!%p6486_p10), %s256_s26, 1024, %s258_s20, [#allocation9], %s8369_s13, %s8369_s13, %s8368_s8  }
  0x3e   : > { %s271_s19 = sshll.u32 %s6394_s14, 4  ;;  %s5654_s1 = sshll.u32 %s6515_s23, 8  ;;  %s272_s19 = int_to_ptr.vmem [resolvable:$true] %s271_s19 }
  0x3f   : > { %6011 = dma.hbm_to_vmem [thread:$0]  (!%p6486_p10), %s270_s24, 1024, %s272_s19, [#allocation12], %s8369_s13, %s8369_s13, %s8368_s8  }
  0x40   : > { %s5777_s17 = sshll.u32 %s6386_s27, 8  ;;  %s289_s18 = scalar_lea.vmem [#allocation2], %s5654_s1 }
  0x41   : > { %s298_s3 = sshll.u32 %s289_s18, 4  ;;  %s295_s10 = scalar_lea.hbm %s8125_s0, %s5777_s17  ;;  %s299_s3 = int_to_ptr.vmem [resolvable:$true] %s298_s3 }
  0x42   : > { %s296_s11 = sshll.u32 %s295_s10, 4  ;;  %s5662_s26 = sshll.u32 %s6515_s23, 3  ;;  %s297_s11 = int_to_ptr.hbm [resolvable:$true] %s296_s11 }
  0x43   : > { %s286_s20 = scalar_lea.sflag [#allocation3], %s6515_s23  ;;  %s6216_s14 = sshra.s32 %s297_s11, 4  ;;  %s6217_s14 = int_to_ptr.hbm [resolvable:$true] %s6216_s14 }
  0x44   : > { %s6218_s4 = scalar_lea.hbm %s6217_s14, 256  ;;  %s6223_s24 = scalar_lea.hbm %s8125_s0, 1024 }
  0x45   : > { %p6219_p1 = scmp.ne.s32.totalorder %s6217_s14, %s6218_s4  ;;  %p6224_p11 = scmp.lt.s32.totalorder %s6217_s14, %s8125_s0 }
  0x46   : > { %p6225_p12 = scmp.lt.s32.totalorder %s6223_s24, %s6218_s4 }
  0x47   : > { %p6221_p2 = pnand %p6219_p1, %p6130_p9 }
  0x48   : > { %p6226_p13 = por %p6225_p12, %p6224_p11 }
  0x49   : > { %p6222_p10 = pneg %p6221_p2 }
  0x4b   : > { %p6227_p0 = pnand %p6226_p13, %p6222_p10 }
  0x4d   : > { %6230 = shalt.err (!%p6227_p0)
}
  0x4e   : > { %6015 = dma.hbm_to_vmem [thread:$0]  (!%p6518_p7), %s297_s11, 4096, %s299_s3, %s286_s20, %s8369_s13, %s8369_s13, %s8368_s8  }
  0x4f   : > { %s5780_s23 = sshll.u32 %s6386_s27, 3  ;;  %s335_s17 = scalar_lea.vmem [#allocation7], %s5662_s26 }
  0x50   : > { %s344_s21 = sshll.u32 %s335_s17, 4  ;;  %s340_s15 = scalar_lea.hbm %s8127_s2, %s5780_s23  ;;  %s345_s21 = int_to_ptr.vmem [resolvable:$true] %s344_s21 }
  0x51   : > { %s342_s4 = sshll.u32 %s340_s15, 4  ;;  %s6253_s13 = scalar_lea.hbm %s8127_s2, 32  ;;  %s343_s4 = int_to_ptr.hbm [resolvable:$true] %s342_s4 }
  0x52   : > { %s6246_s14 = sshra.s32 %s343_s4, 4  ;;  %s6247_s14 = int_to_ptr.hbm [resolvable:$true] %s6246_s14 }
  0x53   : > { %s6248_s1 = scalar_lea.hbm %s6247_s14, 8  ;;  %p6254_p10 = scmp.lt.s32.totalorder %s6247_s14, %s8127_s2 }
  0x54   : > { %p6249_p3 = scmp.ne.s32.totalorder %s6247_s14, %s6248_s1  ;;  %p6255_p11 = scmp.lt.s32.totalorder %s6253_s13, %s6248_s1 }
  0x56   : > { %p6251_p1 = pnand %p6249_p3, %p6130_p9  ;;  %p6256_p12 = por %p6255_p11, %p6254_p10 }
  0x58   : > { %p6252_p2 = pneg %p6251_p1 }
  0x5a   : > { %p6257_p13 = pnand %p6256_p12, %p6252_p2 }
  0x5c   : > { %6260 = shalt.err (!%p6257_p13)
}
  0x5d   : > { %6021 = dma.hbm_to_vmem [thread:$0]  (!%p6518_p7), %s343_s4, 128, %s345_s21, %s6530_s16  }
  0x5e   : > { %353 = sbr.rel (%p6478_p8) target bundleno = 2935 (0xb77), region = 44 }
  0x63   : > { %s6599_s26 = sand.u32 1, %s6378_s25  }
  0x64   : > { %s5666_s20 = sshll.u32 %s6599_s26, 8  ;;  %s356_s19 = scalar_lea.sflag [#allocation3], %s6599_s26 }
  0x65   : > { %s6603_s18 = scalar_lea.vmem [#allocation2], %s5666_s20 }
  0x66   : > { %6349 = dma.done.wait (%p6465_p4), %s356_s19, 4096  }
  0x67   : > { %6351 = vsyncadd (%p6465_p4), %s356_s19, 4294963200  ;;  %s365_s12 = sand.u32 1, %s6456_s28   ;;  %s5667_s16 = sshll.u32 %s6599_s26, 7 }
  0x68   : > { %s366_s9 = scalar_lea.sflag [#allocation6], %s365_s12  ;;  %s6611_s23 = scalar_lea.vmem [#allocation5], %s5667_s16 }
  0x69   : > { %6353 = dma.done.wait (%p6465_p4), %s366_s9, 2176  }
  0x6a   : > { %6355 = vsyncadd (%p6465_p4), %s366_s9, 4294965120  ;;  %s5668_s17 = sshll.u32 %s6599_s26, 3  ;;  %p8370_p8 = scmp.eq.s32.totalorder %s6456_s28, 0 }
  0x6b   : > { %s6618_s21 = scalar_lea.vmem [#allocation7], %s5668_s17 }
  0x6c   : > { %6357 = dma.done.wait (%p8370_p8), [#allocation9], 2048   ;;  %p8371_p7 = pmov %p8370_p8 }
  0x6e   : > { %6359 = vsyncadd (%p8371_p7), [#allocation9], 4294965248  ;;  %p8372_p9 = pmov %p8371_p7 }
  0x6f   : > { %p8373_p0 = pmov %p8371_p7 }
  0x70   : > { %6361 = dma.done.wait (%p8372_p9), [#allocation12], 1024  }
  0x71   : > { %6363 = vsyncadd (%p8373_p0), [#allocation12], 4294966272  ;;  %v5939_v0 = vld [vmem:[%s6603_s18 + $0x38] sm:$0xff]   ;;  %v5938_v1 = vld [vmem:[%s6603_s18 + $0x30] sm:$0xff]   ;;  %s5672_s30 = sshll.u32 %s6599_s26, 2  ;;  %vm5423_vm0 = vcmask 1043456  }
  0x72   : > { %v5937_v2 = vld [vmem:[%s6603_s18 + $0x28] sm:$0xff]   ;;  %v5835_v3 = vunpack.c.l.bf16 %v5939_v0  ;;  %v5836_v4 = vunpack.c.h.bf16 %v5939_v0  ;;  %v5831_v5 = vunpack.c.l.bf16 %v5938_v1  ;;  %v5832_v6 = vunpack.c.h.bf16 %v5938_v1  ;;  %v5936_v7 = vld [vmem:[%s6603_s18 + $0x20] sm:$0xff]   ;;  %v5935_v29 = vld [vmem:[%s6603_s18 + $0x18] sm:$0xff]   ;;  %s433_s29 = scalar_lea.vmem [#allocation13], %s5672_s30  ;;  %s5772_s10 = sshll.u32 %s6456_s28, 2 }
  0x73   : > { %v5827_v8 = vunpack.c.l.bf16 %v5937_v2  ;;  %v5828_v9 = vunpack.c.h.bf16 %v5937_v2  ;;  %v5823_v10 = vunpack.c.l.bf16 %v5936_v7  ;;  %v5824_v11 = vunpack.c.h.bf16 %v5936_v7  ;;  %v5934_v31 = vld [vmem:[%s6603_s18 + $0x10] sm:$0xff]   ;;  %v5933_v42 = vld [vmem:[%s6603_s18 + $0x8] sm:$0xff]   ;;  %v5806_v50 = vld [vmem:[%s6603_s18] sm:$0xff]   ;;  %s5454_s14 = scalar_lea.hbm %s8131_s6, %s5772_s10  ;;  %s5456_s1 = sshll.u32 %s433_s29, 4  ;;  %s5457_s1 = int_to_ptr.vmem [resolvable:$true] %s5456_s1 }
  0x74   : > { %v809_v12 = vmax.f32 %v5835_v3, 0.0  ;;  %v810_v13 = vmax.f32 %v5836_v4, 0.0  ;;  %v807_v14 = vmax.f32 %v5831_v5, 0.0  ;;  %v808_v15 = vmax.f32 %v5832_v6, 0.0  ;;  %v443_v0 = vld [vmem:[%s6611_s23] sm:$0xff]  ;;  %s5458_s24 = sshll.u32 %s5454_s14, 4  ;;  %s5459_s24 = int_to_ptr.hbm [resolvable:$true] %s5458_s24 }
  0x75   : > { %v805_v16 = vmax.f32 %v5827_v8, 0.0  ;;  %v806_v17 = vmax.f32 %v5828_v9, 0.0  ;;  %v803_v18 = vmax.f32 %v5823_v10, 0.0  ;;  %v804_v25 = vmax.f32 %v5824_v11, 0.0  ;;  %s5439_s8 = scalar_lea.sflag [#allocation4], %s6599_s26  ;;  %s6290_s13 = sshra.s32 %s5459_s24, 4  ;;  %s6291_s13 = int_to_ptr.hbm [resolvable:$true] %s6290_s13 }
  0x76   : > { %v6632_v19 = vpack.c.bf16 %v809_v12, %v809_v12  ;;  %v6634_v20 = vpack.c.bf16 %v810_v13, %v810_v13  ;;  %v6636_v21 = vpack.c.bf16 %v807_v14, %v807_v14  ;;  %v6638_v22 = vpack.c.bf16 %v808_v15, %v808_v15  ;;  %s6292_s3 = scalar_lea.hbm %s6291_s13, 4  ;;  %s6296_s20 = scalar_lea.hbm %s8131_s6, 16 }
  0x77   : > { %v6640_v23 = vpack.c.bf16 %v805_v16, %v805_v16  ;;  %v6642_v24 = vpack.c.bf16 %v806_v17, %v806_v17  ;;  %v6650_v33 = vpack.c.bf16 %v803_v18, %v803_v18  ;;  %v6654_v36 = vpack.c.bf16 %v804_v25, %v804_v25  ;;  %p6293_p4 = scmp.ne.s32.totalorder %s6291_s13, %s6292_s3  ;;  %p6297_p2 = scmp.lt.s32.totalorder %s6291_s13, %s8131_s6 }
  0x78   : > { %v1001_v26 = vunpack.c.l.b16 %v6632_v19  ;;  %v1002_v27 = vunpack.c.l.b16 %v6634_v20  ;;  %v999_v28 = vunpack.c.l.b16 %v6636_v21  ;;  %v1000_v30 = vunpack.c.l.b16 %v6638_v22  ;;  %p6298_p10 = scmp.lt.s32.totalorder %s6296_s20, %s6292_s3 }
  0x79   : > { %v997_v34 = vunpack.c.l.b16 %v6640_v23  ;;  %v998_v35 = vunpack.c.l.b16 %v6642_v24  ;;  %v5819_v37 = vunpack.c.l.bf16 %v5935_v29  ;;  %v5820_v39 = vunpack.c.h.bf16 %v5935_v29  ;;  %p6294_p3 = pnand %p6293_p4, %p6510_p5 }
  0x7a   : > { %v1010_v32 = vpack.c.b16 %v1002_v27, %v1001_v26  ;;  %v1009_v38 = vpack.c.b16 %v1000_v30, %v999_v28  ;;  %v5815_v40 = vunpack.c.l.bf16 %v5934_v31  ;;  %v5816_v41 = vunpack.c.h.bf16 %v5934_v31  ;;  %p6299_p11 = por %p6298_p10, %p6297_p2 }
  0x7b   : > { %v801_v43 = vmax.f32 %v5819_v37, 0.0  ;;  %v995_v44 = vunpack.c.l.b16 %v6650_v33  ;;  %v802_v45 = vmax.f32 %v5820_v39, 0.0  ;;  %v1008_v46 = vpack.c.b16 %v998_v35, %v997_v34  ;;  %p6295_p1 = pneg %p6294_p3 }
  0x7c   : > { %1019 = vmatpush.bf16.msra.mxu0 %v1010_v32  ;;  %5964 = vmatpush.bf16.msra.mxu2 %v1010_v32  ;;  %v996_v47 = vunpack.c.l.b16 %v6654_v36  ;;  %v5811_v48 = vunpack.c.l.bf16 %v5933_v42  ;;  %v5812_v49 = vunpack.c.h.bf16 %v5933_v42  ;;  %v799_v53 = vmax.f32 %v5815_v40, 0.0  ;;  %v444_v42 = vld [vmem:[%s6611_s23 + $0x8] sm:$0xff] }
  0x7d   : > { %v6660_v51 = vpack.c.bf16 %v801_v43, %v801_v43  ;;  %v6662_v52 = vpack.c.bf16 %v802_v45, %v802_v45  ;;  %v800_v54 = vmax.f32 %v5816_v41, 0.0  ;;  %v5807_v55 = vunpack.c.l.bf16 %v5806_v50  ;;  %p6300_p12 = pnand %p6299_p11, %p6295_p1 }
  0x7e   : > { %v1007_v56 = vpack.c.b16 %v996_v47, %v995_v44  ;;  %v797_v57 = vmax.f32 %v5811_v48, 0.0  ;;  %v798_v58 = vmax.f32 %v5812_v49, 0.0  ;;  %v5808_v59 = vunpack.c.h.bf16 %v5806_v50  ;;  %v5963_v50 = vld [vmem:[%s6603_s18 + $0xf8] sm:$0xff]  }
  0x7f   : > { %v993_v60 = vunpack.c.l.b16 %v6660_v51  ;;  %v994_v61 = vunpack.c.l.b16 %v6662_v52  ;;  %v6666_v62 = vpack.c.bf16 %v799_v53, %v799_v53  ;;  %v6668_v63 = vpack.c.bf16 %v800_v54, %v800_v54 }
  0x80   : > { %1020 = vmatpush.bf16.msra.mxu0 %v1009_v38  ;;  %5965 = vmatpush.bf16.msra.mxu2 %v1009_v38  ;;  %v795_v1 = vmax.f32 %v5807_v55, 0.0  ;;  %v6671_v2 = vpack.c.bf16 %v797_v57, %v797_v57  ;;  %v796_v3 = vmax.f32 %v5808_v59, 0.0  ;;  %v459_v4 = vunpack.c.0.s8 %v443_v0  ;;  %v5962_v59 = vld [vmem:[%s6603_s18 + $0xf0] sm:$0xff]  }
  0x81   : > { %v460_v5 = vunpack.c.1.s8 %v443_v0  ;;  %v1006_v6 = vpack.c.b16 %v994_v61, %v993_v60  ;;  %v991_v7 = vunpack.c.l.b16 %v6666_v62  ;;  %v992_v8 = vunpack.c.l.b16 %v6668_v63 }
  0x82   : > { %v6675_v9 = vpack.c.bf16 %v798_v58, %v798_v58  ;;  %v6677_v10 = vpack.c.bf16 %v795_v1, %v795_v1  ;;  %v523_v11 = vcvt.s32.f32 %v459_v4  ;;  %v989_v14 = vunpack.c.l.b16 %v6671_v2 }
  0x83   : > { %v524_v12 = vcvt.s32.f32 %v460_v5  ;;  %v1005_v13 = vpack.c.b16 %v992_v8, %v991_v7  ;;  %v6681_v16 = vpack.c.bf16 %v796_v3, %v796_v3  ;;  %v461_v32 = vunpack.c.2.s8 %v443_v0 }
  0x84   : > { %1021 = vmatpush.bf16.msra.mxu0 %v1008_v46  ;;  %5966 = vmatpush.bf16.msra.mxu2 %v1008_v46  ;;  %v990_v15 = vunpack.c.l.b16 %v6675_v9  ;;  %v587_v17 = vpack.c.bf16 %v523_v11, %v523_v11  ;;  %v987_v26 = vunpack.c.l.b16 %v6677_v10  ;;  %v462_v34 = vunpack.c.3.s8 %v443_v0 }
  0x85   : > { %v588_v18 = vpack.c.bf16 %v524_v12, %v524_v12  ;;  %v988_v27 = vunpack.c.l.b16 %v6681_v16  ;;  %v525_v35 = vcvt.s32.f32 %v461_v32  ;;  %v463_v44 = vunpack.c.0.s8 %v444_v42  ;;  %v5961_v12 = vld [vmem:[%s6603_s18 + $0xe8] sm:$0xff]  }
  0x86   : > { %v1004_v25 = vpack.c.b16 %v990_v15, %v989_v14  ;;  %v939_v28 = vunpack.c.l.b16 %v587_v17  ;;  %v526_v37 = vcvt.s32.f32 %v462_v34  ;;  %v464_v45 = vunpack.c.1.s8 %v444_v42 }
  0x87   : > { %v940_v29 = vunpack.c.l.b16 %v588_v18  ;;  %v1003_v30 = vpack.c.b16 %v988_v27, %v987_v26  ;;  %v589_v38 = vpack.c.bf16 %v525_v35, %v525_v35  ;;  %v527_v46 = vcvt.s32.f32 %v463_v44  ;;  %v5960_v27 = vld [vmem:[%s6603_s18 + $0xe0] sm:$0xff]  }
  0x88   : > { %1022 = vmatpush.bf16.msra.mxu0 %v1007_v56  ;;  %5967 = vmatpush.bf16.msra.mxu2 %v1007_v56  ;;  %v590_v39 = vpack.c.bf16 %v526_v37, %v526_v37  ;;  %v528_v47 = vcvt.s32.f32 %v464_v45  ;;  %v5931_v53 = vunpack.c.l.bf16 %v5963_v50  ;;  %v5932_v54 = vunpack.c.h.bf16 %v5963_v50 }
  0x89   : > { %v6685_v31 = vpack.c.b16 %v940_v29, %v939_v28  ;;  %v941_v40 = vunpack.c.l.b16 %v589_v38  ;;  %v591_v48 = vpack.c.bf16 %v527_v46, %v527_v46  ;;  %v5927_v0 = vunpack.c.l.bf16 %v5962_v59 }
  0x8a   : > { %v942_v41 = vunpack.c.l.b16 %v590_v39  ;;  %v592_v49 = vpack.c.bf16 %v528_v47, %v528_v47  ;;  %v857_v57 = vmax.f32 %v5931_v53, 0.0  ;;  %v858_v58 = vmax.f32 %v5932_v54, 0.0 }
  0x8b   : > { %v943_v55 = vunpack.c.l.b16 %v591_v48  ;;  %v5928_v1 = vunpack.c.h.bf16 %v5962_v59  ;;  %v465_v4 = vunpack.c.2.s8 %v444_v42  ;;  %v466_v5 = vunpack.c.3.s8 %v444_v42  ;;  %v445_v59 = vld [vmem:[%s6611_s23 + $0x10] sm:$0xff] }
  0x8c   : > { %1023 = vmatpush.bf16.msra.mxu0 %v1006_v6  ;;  %5968 = vmatpush.bf16.msra.mxu2 %v1006_v6  ;;  %v6689_v43 = vpack.c.b16 %v942_v41, %v941_v40  ;;  %v944_v56 = vunpack.c.l.b16 %v592_v49  ;;  %v6694_v60 = vpack.c.bf16 %v857_v57, %v857_v57  ;;  %v6696_v61 = vpack.c.bf16 %v858_v58, %v858_v58  ;;  %v5959_v49 = vld [vmem:[%s6603_s18 + $0xd8] sm:$0xff]  }
  0x8d   : > { %v855_v8 = vmax.f32 %v5927_v0, 0.0  ;;  %v856_v11 = vmax.f32 %v5928_v1, 0.0  ;;  %v5923_v17 = vunpack.c.l.bf16 %v5961_v12  ;;  %v529_v18 = vcvt.s32.f32 %v465_v4 }
  0x8e   : > { %8374 = vst [vmem:[#allocation27_spill] sm:$0xff] %v6694_v60  ;;  %v6698_v3 = vpack.c.b16 %v944_v56, %v943_v55  ;;  %v1436_v6 = vunpack.c.l.b16 %v6694_v60  ;;  %v1437_v7 = vunpack.c.l.b16 %v6696_v61  ;;  %v5924_v26 = vunpack.c.h.bf16 %v5961_v12 }
  0x8f   : > { %8375 = vst [vmem:[#allocation28_spill] sm:$0xff] %v6696_v61  ;;  %v6703_v14 = vpack.c.bf16 %v855_v8, %v855_v8  ;;  %v6705_v15 = vpack.c.bf16 %v856_v11, %v856_v11  ;;  %v5919_v32 = vunpack.c.l.bf16 %v5960_v27  ;;  %v5920_v35 = vunpack.c.h.bf16 %v5960_v27 }
  0x90   : > { %1024 = vmatpush.bf16.msra.mxu0 %v1005_v13  ;;  %5969 = vmatpush.bf16.msra.mxu2 %v1005_v13  ;;  %v1445_v13 = vpack.c.b16 %v1437_v7, %v1436_v6  ;;  %v854_v34 = vmax.f32 %v5924_v26, 0.0  ;;  %v593_v40 = vpack.c.bf16 %v529_v18, %v529_v18  ;;  %v5915_v53 = vunpack.c.l.bf16 %v5959_v49 }
  0x91   : > { %8376 = vst [vmem:[#allocation29_spill] sm:$0xff] %v6703_v14  ;;  %v1434_v28 = vunpack.c.l.b16 %v6703_v14  ;;  %v1435_v29 = vunpack.c.l.b16 %v6705_v15  ;;  %v851_v39 = vmax.f32 %v5919_v32, 0.0  ;;  %v852_v44 = vmax.f32 %v5920_v35, 0.0  ;;  %v5943_v14 = vld [vmem:[%s6603_s18 + $0x58] sm:$0xff]  }
  0x92   : > { %8377 = vst [vmem:[#allocation30_spill] sm:$0xff] %v6705_v15  ;;  %v6713_v42 = vpack.c.bf16 %v854_v34, %v854_v34  ;;  %v5916_v54 = vunpack.c.h.bf16 %v5959_v49  ;;  %v945_v55 = vunpack.c.l.b16 %v593_v40  ;;  %v849_v0 = vmax.f32 %v5915_v53, 0.0  ;;  %v5956_v40 = vld [vmem:[%s6603_s18 + $0xc0] sm:$0xff]  }
  0x93   : > { %v1444_v37 = vpack.c.b16 %v1435_v29, %v1434_v28  ;;  %v6716_v46 = vpack.c.bf16 %v851_v39, %v851_v39  ;;  %v6719_v48 = vpack.c.bf16 %v852_v44, %v852_v44  ;;  %v5957_v28 = vld [vmem:[%s6603_s18 + $0xc8] sm:$0xff]  }
  0x94   : > { %1025 = vmatpush.bf16.msra.mxu0 %v1004_v25  ;;  %5970 = vmatpush.bf16.msra.mxu2 %v1004_v25  ;;  %v530_v25 = vcvt.s32.f32 %v466_v5  ;;  %8379 = vst [vmem:[#allocation32_spill] sm:$0xff] %v6713_v42  ;;  %v1433_v47 = vunpack.c.l.b16 %v6713_v42  ;;  %v850_v1 = vmax.f32 %v5916_v54, 0.0  ;;  %v5958_v5 = vld [vmem:[%s6603_s18 + $0xd0] sm:$0xff]   ;;  %v6726_v6 = vpack.c.bf16 %v849_v0, %v849_v0 }
  0x95   : > { %8380 = vst [vmem:[#allocation33_spill] sm:$0xff] %v6716_v46  ;;  %v1430_v50 = vunpack.c.l.b16 %v6716_v46  ;;  %v1431_v58 = vunpack.c.l.b16 %v6719_v48  ;;  %v5911_v8 = vunpack.c.l.bf16 %v5958_v5  ;;  %v5912_v11 = vunpack.c.h.bf16 %v5958_v5 }
  0x96   : > { %v594_v41 = vpack.c.bf16 %v530_v25, %v530_v25  ;;  %8381 = vst [vmem:[#allocation34_spill] sm:$0xff] %v6719_v48  ;;  %v6728_v7 = vpack.c.bf16 %v850_v1, %v850_v1  ;;  %v1428_v18 = vunpack.c.l.b16 %v6726_v6  ;;  %v5907_v34 = vunpack.c.l.bf16 %v5957_v28 }
  0x97   : > { %v1442_v4 = vpack.c.b16 %v1431_v58, %v1430_v50  ;;  %8382 = vst [vmem:[#allocation35_spill] sm:$0xff] %v6726_v6  ;;  %v847_v26 = vmax.f32 %v5911_v8, 0.0  ;;  %v848_v27 = vmax.f32 %v5912_v11, 0.0  ;;  %v5908_v39 = vunpack.c.h.bf16 %v5957_v28  ;;  %v5942_v6 = vld [vmem:[%s6603_s18 + $0x50] sm:$0xff]  }
  0x98   : > { %1026 = vmatpush.bf16.msra.mxu0 %v1003_v30  ;;  %5971 = vmatpush.bf16.msra.mxu2 %v1003_v30  ;;  %v853_v30 = vmax.f32 %v5923_v17, 0.0  ;;  %v946_v56 = vunpack.c.l.b16 %v594_v41  ;;  %8383 = vst [vmem:[#allocation36_spill] sm:$0xff] %v6728_v7  ;;  %v468_v17 = vunpack.c.1.s8 %v445_v59  ;;  %v1429_v25 = vunpack.c.l.b16 %v6728_v7 }
  0x99   : > { %v6737_v32 = vpack.c.bf16 %v848_v27, %v848_v27  ;;  %v846_v49 = vmax.f32 %v5908_v39, 0.0  ;;  %v5904_v50 = vunpack.c.h.bf16 %v5956_v40  ;;  %v469_v28 = vunpack.c.2.s8 %v445_v59 }
  0x9a   : > { %v6711_v38 = vpack.c.bf16 %v853_v30, %v853_v30  ;;  %v6730_v12 = vpack.c.b16 %v946_v56, %v945_v55  ;;  %v1441_v29 = vpack.c.b16 %v1429_v25, %v1428_v18  ;;  %v6735_v30 = vpack.c.bf16 %v847_v26, %v847_v26 }
  0x9b   : > { %1027 = vmatmul.bf16.vlgmr.msra.gmra.mxu0 %v6685_v31  ;;  %8385 = vst [vmem:[#allocation38_spill] sm:$0xff] %v6737_v32  ;;  %v1427_v44 = vunpack.c.l.b16 %v6737_v32  ;;  %v6745_v58 = vpack.c.bf16 %v846_v49, %v846_v49  ;;  %v844_v0 = vmax.f32 %v5904_v50, 0.0 }
  0x9c   : > { %1454 = vmatpush.bf16.msrb.mxu0 %v1445_v13  ;;  %8378 = vst [vmem:[#allocation31_spill] sm:$0xff] %v6711_v38  ;;  %v1432_v45 = vunpack.c.l.b16 %v6711_v38  ;;  %v467_v13 = vunpack.c.0.s8 %v445_v59  ;;  %v1426_v41 = vunpack.c.l.b16 %v6735_v30  ;;  %v5944_v38 = vld [vmem:[%s6603_s18 + $0x60] sm:$0xff]  }
  0x9d   : > { %8384 = vst [vmem:[#allocation37_spill] sm:$0xff] %v6735_v30  ;;  %v1425_v5 = vunpack.c.l.b16 %v6745_v58  ;;  %v6751_v8 = vpack.c.bf16 %v844_v0, %v844_v0  ;;  %v5855_v61 = vunpack.c.l.bf16 %v5944_v38 }
  0x9e   : > { %v1443_v57 = vpack.c.b16 %v1433_v47, %v1432_v45  ;;  %v531_v35 = vcvt.s32.f32 %v467_v13  ;;  %v845_v45 = vmax.f32 %v5907_v34, 0.0  ;;  %v5903_v47 = vunpack.c.l.bf16 %v5956_v40  ;;  %8387 = vst [vmem:[#allocation40_spill] sm:$0xff] %v6745_v58  ;;  %v5940_v58 = vld [vmem:[%s6603_s18 + $0x40] sm:$0xff]  }
  0x9f   : > { %v1440_v53 = vpack.c.b16 %v1427_v44, %v1426_v41  ;;  %8389 = vst [vmem:[#allocation42_spill] sm:$0xff] %v6751_v8  ;;  %v1423_v25 = vunpack.c.l.b16 %v6751_v8  ;;  %v533_v34 = vcvt.s32.f32 %v469_v28  ;;  %v455_v44 = vld [vmem:[%s6611_s23 + $0x60] sm:$0xff]  ;;  %v456_v28 = vld [vmem:[%s6611_s23 + $0x68] sm:$0xff] }
  0xa0   : > { %1455 = vmatpush.bf16.msrb.mxu0 %v1444_v37  ;;  %v532_v37 = vcvt.s32.f32 %v468_v17  ;;  %v6743_v54 = vpack.c.bf16 %v845_v45, %v845_v45  ;;  %v843_v55 = vmax.f32 %v5903_v47, 0.0  ;;  %v595_v56 = vpack.c.bf16 %v531_v35, %v531_v35  ;;  %v5788_v8 = vld [vmem:[#allocation8 + $0x38] sm:$0xff] }
  0xa1   : > { %v507_v47 = vunpack.c.0.s8 %v455_v44  ;;  %v508_v49 = vunpack.c.1.s8 %v455_v44 }
  0xa2   : > { %8386 = vst [vmem:[#allocation39_spill] sm:$0xff] %v6743_v54  ;;  %v1424_v1 = vunpack.c.l.b16 %v6743_v54  ;;  %v947_v13 = vunpack.c.l.b16 %v595_v56 }
  0xa3   : > { %v571_v50 = vcvt.s32.f32 %v507_v47 }
  0xa4   : > { %1456 = vmatpush.bf16.msrb.mxu0 %v1443_v57  ;;  %v596_v57 = vpack.c.bf16 %v532_v37, %v532_v37  ;;  %v1439_v18 = vpack.c.b16 %v1425_v5, %v1424_v1  ;;  %v597_v37 = vpack.c.bf16 %v533_v34, %v533_v34  ;;  %v509_v1 = vunpack.c.2.s8 %v455_v44 }
  0xa5   : > { %v510_v5 = vunpack.c.3.s8 %v455_v44  ;;  %v512_v34 = vunpack.c.1.s8 %v456_v28 }
  0xa6   : > { %v948_v17 = vunpack.c.l.b16 %v596_v57  ;;  %v949_v40 = vunpack.c.l.b16 %v597_v37 }
  0xa8   : > { %1457 = vmatpush.bf16.msrb.mxu0 %v1442_v4  ;;  %v6748_v4 = vpack.c.bf16 %v843_v55, %v843_v55  ;;  %v6755_v27 = vpack.c.b16 %v948_v17, %v947_v13  ;;  %v574_v13 = vcvt.s32.f32 %v510_v5 }
  0xaa   : > { %8388 = vst [vmem:[#allocation41_spill] sm:$0xff] %v6748_v4  ;;  %v1422_v11 = vunpack.c.l.b16 %v6748_v4  ;;  %v5787_v4 = vld [vmem:[#allocation8 + $0x30] sm:$0xff] }
  0xab   : > { %1032 = vmatmul.bf16.gmra.mxu0 %v6689_v43 }
  0xac   : > { %1458 = vmatpush.bf16.msrb.mxu0 %v1441_v29  ;;  %v1438_v26 = vpack.c.b16 %v1423_v25, %v1422_v11  ;;  %v470_v29 = vunpack.c.3.s8 %v445_v59  ;;  %v635_v59 = vpack.c.bf16 %v571_v50, %v571_v50  ;;  %v573_v11 = vcvt.s32.f32 %v509_v1  ;;  %v6772_v50 = vld [vmem:[%s6611_s23 + $0x18] sm:$0xff] }
  0xae   : > { %v534_v35 = vcvt.s32.f32 %v470_v29  ;;  %v1374_v56 = vunpack.c.l.b16 %v635_v59  ;;  %v637_v17 = vpack.c.bf16 %v573_v11, %v573_v11  ;;  %v511_v29 = vunpack.c.0.s8 %v456_v28 }
  0xaf   : > { %v514_v59 = vunpack.c.3.s8 %v456_v28 }
  0xb0   : > { %1459 = vmatpush.bf16.msrb.mxu0 %v1440_v53  ;;  %v598_v39 = vpack.c.bf16 %v534_v35, %v534_v35  ;;  %v572_v53 = vcvt.s32.f32 %v508_v49  ;;  %v1376_v25 = vunpack.c.l.b16 %v637_v17  ;;  %v575_v37 = vcvt.s32.f32 %v511_v29  ;;  %v5947_v29 = vld [vmem:[%s6603_s18 + $0x78] sm:$0xff]  }
  0xb2   : > { %v950_v41 = vunpack.c.l.b16 %v598_v39  ;;  %v636_v55 = vpack.c.bf16 %v572_v53, %v572_v53  ;;  %v576_v39 = vcvt.s32.f32 %v512_v34  ;;  %v513_v53 = vunpack.c.2.s8 %v456_v28 }
  0xb3   : > { %v5867_v34 = vunpack.c.l.bf16 %v5947_v29  ;;  %v5868_v28 = vunpack.c.h.bf16 %v5947_v29 }
  0xb4   : > { %1460 = vmatpush.bf16.msrb.mxu0 %v1439_v18  ;;  %v6759_v45 = vpack.c.b16 %v950_v41, %v949_v40  ;;  %v1375_v57 = vunpack.c.l.b16 %v636_v55  ;;  %v638_v18 = vpack.c.bf16 %v574_v13, %v574_v13  ;;  %v639_v40 = vpack.c.bf16 %v575_v37, %v575_v37 }
  0xb5   : > { %v640_v41 = vpack.c.bf16 %v576_v39, %v576_v39  ;;  %v471_v55 = vunpack.c.0.s8 %v6772_v50  ;;  %v577_v11 = vcvt.s32.f32 %v513_v53  ;;  %v578_v13 = vcvt.s32.f32 %v514_v59  ;;  %v5946_v53 = vld [vmem:[%s6603_s18 + $0x70] sm:$0xff]  }
  0xb6   : > { %v6762_v0 = vpack.c.b16 %v1375_v57, %v1374_v56  ;;  %v1378_v44 = vunpack.c.l.b16 %v639_v40  ;;  %v472_v56 = vunpack.c.1.s8 %v6772_v50  ;;  %v6783_v59 = vld [vmem:[%s6611_s23 + $0x70] sm:$0xff] }
  0xb7   : > { %v1379_v47 = vunpack.c.l.b16 %v640_v41  ;;  %v535_v1 = vcvt.s32.f32 %v471_v55  ;;  %v641_v39 = vpack.c.bf16 %v577_v11, %v577_v11  ;;  %v642_v40 = vpack.c.bf16 %v578_v13, %v578_v13 }
  0xb8   : > { %1461 = vmatpush.bf16.msrb.mxu0 %v1438_v26  ;;  %8390 = vst [vmem:[#allocation43_spill] sm:$0xff] %v6762_v0  ;;  %v1377_v26 = vunpack.c.l.b16 %v638_v18  ;;  %v536_v5 = vcvt.s32.f32 %v472_v56  ;;  %v826_v55 = vmax.f32 %v5868_v28, 0.0 }
  0xb9   : > { %v6769_v49 = vpack.c.b16 %v1379_v47, %v1378_v44  ;;  %v599_v17 = vpack.c.bf16 %v535_v1, %v535_v1  ;;  %v825_v47 = vmax.f32 %v5867_v34, 0.0 }
  0xba   : > { %v6766_v35 = vpack.c.b16 %v1377_v26, %v1376_v25  ;;  %v600_v18 = vpack.c.bf16 %v536_v5, %v536_v5  ;;  %v6787_v5 = vpack.c.bf16 %v826_v55, %v826_v55  ;;  %v516_v55 = vunpack.c.1.s8 %v6783_v59 }
  0xbb   : > { %1037 = vmatmul.bf16.gmra.mxu0 %v6698_v3  ;;  %8392 = vst [vmem:[#allocation45_spill] sm:$0xff] %v6769_v49  ;;  %v951_v25 = vunpack.c.l.b16 %v599_v17  ;;  %v6785_v1 = vpack.c.bf16 %v825_v47, %v825_v47  ;;  %v5863_v17 = vunpack.c.l.bf16 %v5946_v53  ;;  %v515_v47 = vunpack.c.0.s8 %v6783_v59 }
  0xbc   : > { %8391 = vst [vmem:[#allocation44_spill] sm:$0xff] %v6766_v35  ;;  %v952_v26 = vunpack.c.l.b16 %v600_v18  ;;  %v1380_v18 = vunpack.c.l.b16 %v641_v39  ;;  %v1147_v29 = vunpack.c.l.b16 %v6787_v5  ;;  %1807 = vmatpush.bf16.msra.mxu0 %v5788_v8 }
  0xbd   : > { %v823_v34 = vmax.f32 %v5863_v17, 0.0  ;;  %v473_v17 = vunpack.c.2.s8 %v6772_v50 }
  0xbe   : > { %v6778_v41 = vpack.c.b16 %v952_v26, %v951_v25  ;;  %v1381_v25 = vunpack.c.l.b16 %v642_v40  ;;  %v1146_v26 = vunpack.c.l.b16 %v6785_v1 }
  0xc0   : > { %8393 = vst [vmem:[#allocation46_spill] sm:$0xff] %v6778_v41  ;;  %1057 = vmatmul.bf16.vlgmr.msra.gmra.mxu2 %v6778_v41  ;;  %1808 = vmatpush.bf16.msra.mxu0 %v5787_v4 }
  0xcb   : > { %1042 = vmatmul.bf16.gmra.mxu0 %v6730_v12 }
  0xdb   : > { %1047 = vmatmul.bf16.gmra.mxu0 %v6755_v27 }
  0xeb   : > { %1052 = vmatmul.bf16.gmra.mxu0 %v6759_v45 }
  0xfb   : > { %1462 = vmatmul.bf16.vlgmr.msrb.gmra.mxu0 %v6762_v0 }
 0x10b   : > { %1467 = vmatmul.bf16.gmra.mxu0 %v6766_v35 }
 0x118   : > { %v1028_v57 = vpop.f32.mrf.mxu0 }
 0x119   : > { %v1503_v37 = vpack.c.bf16 %v1028_v57, %v1028_v57  ;;  %v5864_v57 = vunpack.c.h.bf16 %v5946_v53  ;;  %v5945_v53 = vld [vmem:[%s6603_s18 + $0x68] sm:$0xff]  }
 0x11a   : > { %v5859_v40 = vunpack.c.l.bf16 %v5945_v53  ;;  %v5860_v35 = vunpack.c.h.bf16 %v5945_v53 }
 0x11b   : > { %1472 = vmatmul.bf16.gmra.mxu0 %v6769_v49  ;;  %v6789_v11 = vunpack.c.l.b16 %v1503_v37  ;;  %v824_v28 = vmax.f32 %v5864_v57, 0.0  ;;  %v1155_v37 = vpack.c.b16 %v1147_v29, %v1146_v26  ;;  %v6800_v49 = vpack.c.bf16 %v823_v34, %v823_v34 }
 0x11c   : > { %v821_v46 = vmax.f32 %v5859_v40, 0.0  ;;  %v474_v26 = vunpack.c.3.s8 %v6772_v50  ;;  %v579_v29 = vcvt.s32.f32 %v515_v47  ;;  %v580_v34 = vcvt.s32.f32 %v516_v55 }
 0x11d   : > { %v6802_v39 = vpack.c.bf16 %v824_v28, %v824_v28  ;;  %1164 = vmatpush.bf16.msra.mxu1 %v1155_v37  ;;  %v822_v48 = vmax.f32 %v5860_v35, 0.0  ;;  %v537_v28 = vcvt.s32.f32 %v473_v17  ;;  %v5856_v35 = vunpack.c.h.bf16 %v5944_v38 }
 0x11e   : > { %v538_v53 = vcvt.s32.f32 %v474_v26  ;;  %v643_v47 = vpack.c.bf16 %v579_v29, %v579_v29  ;;  %v644_v55 = vpack.c.bf16 %v580_v34, %v580_v34  ;;  %v819_v17 = vmax.f32 %v5855_v61, 0.0 }
 0x11f   : > { %v1145_v0 = vunpack.c.l.b16 %v6802_v39  ;;  %v6814_v37 = vpack.c.bf16 %v822_v48, %v822_v48  ;;  %v601_v42 = vpack.c.bf16 %v537_v28, %v537_v28  ;;  %v5851_v26 = vunpack.c.l.bf16 %v5943_v14 }
 0x120   : > { %v1030_v44 = vpop.f32.mrf.mxu0  ;;  %v602_v50 = vpack.c.bf16 %v538_v53, %v538_v53  ;;  %v5852_v48 = vunpack.c.h.bf16 %v5943_v14  ;;  %v5847_v14 = vunpack.c.l.bf16 %v5942_v6 }
 0x121   : > { %v1504_v56 = vpack.c.bf16 %v1030_v44, %v1030_v44  ;;  %v1144_v44 = vunpack.c.l.b16 %v6800_v49  ;;  %8396 = vst [vmem:[#allocation49_spill] sm:$0xff] %v6814_v37  ;;  %v817_v29 = vmax.f32 %v5851_v26, 0.0 }
 0x122   : > { %v818_v53 = vmax.f32 %v5852_v48, 0.0 }
 0x123   : > { %v6791_v13 = vunpack.c.l.b16 %v1504_v56  ;;  %v6804_v56 = vpack.c.b16 %v1381_v25, %v1380_v18  ;;  %v1154_v18 = vpack.c.b16 %v1145_v0, %v1144_v44  ;;  %v6811_v25 = vpack.c.bf16 %v821_v46, %v821_v46 }
 0x124   : > { %v1143_v0 = vunpack.c.l.b16 %v6814_v37  ;;  %v953_v46 = vunpack.c.l.b16 %v601_v42  ;;  %v954_v44 = vunpack.c.l.b16 %v602_v50  ;;  %v1382_v42 = vunpack.c.l.b16 %v643_v47 }
 0x125   : > { %8394 = vst [vmem:[#allocation47_spill] sm:$0xff] %v6804_v56  ;;  %1165 = vmatpush.bf16.msra.mxu1 %v1154_v18  ;;  %v1142_v40 = vunpack.c.l.b16 %v6811_v25  ;;  %v6819_v18 = vpack.c.bf16 %v819_v17, %v819_v17  ;;  %v6836_v17 = vpack.c.bf16 %v818_v53, %v818_v53 }
 0x126   : > { %8395 = vst [vmem:[#allocation48_spill] sm:$0xff] %v6811_v25  ;;  %v6821_v28 = vpack.c.b16 %v954_v44, %v953_v46  ;;  %v815_v46 = vmax.f32 %v5847_v14, 0.0  ;;  %v5941_v44 = vld [vmem:[%s6603_s18 + $0x48] sm:$0xff]  }
 0x127   : > { %8397 = vst [vmem:[#allocation50_spill] sm:$0xff] %v6819_v18  ;;  %v1153_v7 = vpack.c.b16 %v1143_v0, %v1142_v40  ;;  %v1140_v61 = vunpack.c.l.b16 %v6819_v18  ;;  %v5843_v48 = vunpack.c.l.bf16 %v5941_v44  ;;  %v5844_v32 = vunpack.c.h.bf16 %v5941_v44 }
 0x128   : > { %v1033_v57 = vpop.f32.mrf.mxu0  ;;  %8398 = vst [vmem:[#allocation51_spill] sm:$0xff] %v6821_v28  ;;  %1062 = vmatmul.bf16.gmra.mxu2 %v6821_v28  ;;  %v6846_v53 = vpack.c.bf16 %v815_v46, %v815_v46 }
 0x129   : > { %v1505_v15 = vpack.c.bf16 %v1033_v57, %v1033_v57  ;;  %1166 = vmatpush.bf16.msra.mxu1 %v1153_v7  ;;  %v6828_v57 = vpack.c.bf16 %v817_v29, %v817_v29  ;;  %v5848_v7 = vunpack.c.h.bf16 %v5942_v6  ;;  %v813_v14 = vmax.f32 %v5843_v48, 0.0 }
 0x12a   : > { %v1136_v26 = vunpack.c.l.b16 %v6846_v53 }
 0x12b   : > { %1477 = vmatmul.bf16.gmra.mxu0 %v6804_v56  ;;  %v820_v56 = vmax.f32 %v5856_v35, 0.0  ;;  %v6830_v50 = vunpack.c.l.b16 %v1505_v15  ;;  %v1383_v35 = vunpack.c.l.b16 %v644_v55  ;;  %v1138_v0 = vunpack.c.l.b16 %v6828_v57 }
 0x12c   : > { %v518_v15 = vunpack.c.3.s8 %v6783_v59  ;;  %v1139_v55 = vunpack.c.l.b16 %v6836_v17 }
 0x12d   : > { %v6823_v38 = vpack.c.bf16 %v820_v56, %v820_v56  ;;  %v517_v56 = vunpack.c.2.s8 %v6783_v59  ;;  %v6844_v29 = vpack.c.b16 %v1383_v35, %v1382_v42  ;;  %v814_v59 = vmax.f32 %v5844_v32, 0.0  ;;  %v447_v32 = vld [vmem:[%s6611_s23 + $0x20] sm:$0xff] }
 0x12e   : > { %v1151_v6 = vpack.c.b16 %v1139_v55, %v1138_v0  ;;  %v582_v54 = vcvt.s32.f32 %v518_v15  ;;  %v6852_v42 = vpack.c.bf16 %v813_v14, %v813_v14  ;;  %v5839_v35 = vunpack.c.l.bf16 %v5940_v58 }
 0x12f   : > { %8399 = vst [vmem:[#allocation52_spill] sm:$0xff] %v6823_v38  ;;  %v475_v48 = vunpack.c.0.s8 %v447_v32 }
 0x130   : > { %v1035_v60 = vpop.f32.mrf.mxu0  ;;  %8400 = vst [vmem:[#allocation53_spill] sm:$0xff] %v6844_v29  ;;  %v811_v46 = vmax.f32 %v5839_v35, 0.0  ;;  %v646_v14 = vpack.c.bf16 %v582_v54, %v582_v54 }
 0x131   : > { %v1506_v34 = vpack.c.bf16 %v1035_v60, %v1035_v60  ;;  %v1141_v60 = vunpack.c.l.b16 %v6823_v38  ;;  %v5786_v38 = vld [vmem:[#allocation8 + $0x28] sm:$0xff] }
 0x132   : > { %1809 = vmatpush.bf16.msra.mxu0 %v5786_v38  ;;  %v478_v38 = vunpack.c.3.s8 %v447_v32 }
 0x133   : > { %v6832_v40 = vunpack.c.l.b16 %v1506_v34  ;;  %v1152_v47 = vpack.c.b16 %v1141_v60, %v1140_v61  ;;  %v816_v34 = vmax.f32 %v5848_v7, 0.0  ;;  %v581_v60 = vcvt.s32.f32 %v517_v56 }
 0x134   : > { %v6856_v56 = vpack.c.bf16 %v814_v59, %v814_v59  ;;  %v1134_v7 = vunpack.c.l.b16 %v6852_v42  ;;  %v539_v59 = vcvt.s32.f32 %v475_v48 }
 0x135   : > { %1167 = vmatpush.bf16.msra.mxu1 %v1152_v47  ;;  %v6848_v30 = vpack.c.bf16 %v816_v34, %v816_v34  ;;  %v5840_v47 = vunpack.c.h.bf16 %v5940_v58  ;;  %v645_v55 = vpack.c.bf16 %v581_v60, %v581_v60  ;;  %v476_v34 = vunpack.c.1.s8 %v447_v32 }
 0x136   : > { %v1135_v58 = vunpack.c.l.b16 %v6856_v56 }
 0x137   : > { %v1137_v0 = vunpack.c.l.b16 %v6848_v30  ;;  %v812_v44 = vmax.f32 %v5840_v47, 0.0  ;;  %v540_v28 = vcvt.s32.f32 %v476_v34  ;;  %v1384_v18 = vunpack.c.l.b16 %v645_v55 }
 0x138   : > { %v1038_v61 = vpop.f32.mrf.mxu0  ;;  %v1149_v47 = vpack.c.b16 %v1135_v58, %v1134_v7 }
 0x139   : > { %1168 = vmatpush.bf16.msra.mxu1 %v1151_v6  ;;  %v1150_v15 = vpack.c.b16 %v1137_v0, %v1136_v26  ;;  %v6863_v6 = vpack.c.bf16 %v812_v44, %v812_v44  ;;  %v1507_v8 = vpack.c.bf16 %v1038_v61, %v1038_v61  ;;  %v603_v0 = vpack.c.bf16 %v539_v59, %v539_v59 }
 0x13a   : > { %v604_v41 = vpack.c.bf16 %v540_v28, %v540_v28  ;;  %v5785_v28 = vld [vmem:[#allocation8 + $0x20] sm:$0xff] }
 0x13b   : > { %1482 = vmatmul.bf16.gmra.mxu0 %v6844_v29  ;;  %v6861_v29 = vpack.c.bf16 %v811_v46, %v811_v46  ;;  %v1133_v60 = vunpack.c.l.b16 %v6863_v6  ;;  %v1385_v46 = vunpack.c.l.b16 %v646_v14  ;;  %v6867_v44 = vunpack.c.l.b16 %v1507_v8 }
 0x13c   : > { %v1084_v34 = vunpack.c.l.b16 %v603_v0  ;;  %v1085_v4 = vunpack.c.l.b16 %v604_v41  ;;  %1810 = vmatpush.bf16.msra.mxu0 %v5785_v28  ;;  %v477_v41 = vunpack.c.2.s8 %v447_v32  ;;  %v5783_v0 = vld [vmem:[#allocation8 + $0x10] sm:$0xff] }
 0x13d   : > { %1169 = vmatpush.bf16.msra.mxu1 %v1150_v15  ;;  %v1132_v26 = vunpack.c.l.b16 %v6861_v29  ;;  %v458_v15 = vld [vmem:[%s6611_s23 + $0x78] sm:$0xff]  ;;  %v6876_v55 = vpack.c.b16 %v1385_v46, %v1384_v18  ;;  %v542_v18 = vcvt.s32.f32 %v478_v38  ;;  %v5781_v38 = vld [vmem:[#allocation8] sm:$0xff] }
 0x13e   : > { %v519_v58 = vunpack.c.0.s8 %v458_v15  ;;  %v6874_v59 = vpack.c.b16 %v1085_v4, %v1084_v34  ;;  %v541_v4 = vcvt.s32.f32 %v477_v41 }
 0x13f   : > { %v1148_v48 = vpack.c.b16 %v1133_v60, %v1132_v26  ;;  %8402 = vst [vmem:[#allocation55_spill] sm:$0xff] %v6876_v55 }
 0x140   : > { %v1040_v35 = vpop.f32.mrf.mxu0  ;;  %8401 = vst [vmem:[#allocation54_spill] sm:$0xff] %v6874_v59  ;;  %v583_v8 = vcvt.s32.f32 %v519_v58  ;;  %v605_v28 = vpack.c.bf16 %v541_v4, %v541_v4  ;;  %v606_v58 = vpack.c.bf16 %v542_v18, %v542_v18  ;;  %v448_v4 = vld [vmem:[%s6611_s23 + $0x28] sm:$0xff] }
 0x141   : > { %v1508_v54 = vpack.c.bf16 %v1040_v35, %v1040_v35  ;;  %1170 = vmatpush.bf16.msra.mxu1 %v1149_v47  ;;  %v520_v35 = vunpack.c.1.s8 %v458_v15  ;;  %v5784_v47 = vld [vmem:[#allocation8 + $0x18] sm:$0xff]  ;;  %v480_v18 = vunpack.c.1.s8 %v448_v4 }
 0x142   : > { %1811 = vmatpush.bf16.msra.mxu0 %v5784_v47  ;;  %v647_v26 = vpack.c.bf16 %v583_v8, %v583_v8  ;;  %v1086_v32 = vunpack.c.l.b16 %v605_v28  ;;  %v1087_v8 = vunpack.c.l.b16 %v606_v58  ;;  %v522_v47 = vunpack.c.3.s8 %v458_v15 }
 0x143   : > { %v6869_v61 = vunpack.c.l.b16 %v1508_v54  ;;  %v584_v54 = vcvt.s32.f32 %v520_v35  ;;  %v544_v58 = vcvt.s32.f32 %v480_v18  ;;  %v482_v18 = vunpack.c.3.s8 %v448_v4 }
 0x144   : > { %v1386_v35 = vunpack.c.l.b16 %v647_v26  ;;  %v6886_v41 = vpack.c.b16 %v1087_v8, %v1086_v32 }
 0x145   : > { %1171 = vmatpush.bf16.msra.mxu1 %v1148_v48  ;;  %v648_v60 = vpack.c.bf16 %v584_v54, %v584_v54  ;;  %v521_v54 = vunpack.c.2.s8 %v458_v15 }
 0x146   : > { %1812 = vmatpush.bf16.msra.mxu0 %v5783_v0  ;;  %8403 = vst [vmem:[#allocation56_spill] sm:$0xff] %v6886_v41 }
 0x147   : > { %v1387_v7 = vunpack.c.l.b16 %v648_v60  ;;  %v585_v60 = vcvt.s32.f32 %v521_v54 }
 0x148   : > { %v1043_v14 = vpop.f32.mrf.mxu0  ;;  %1172 = vmatmul.bf16.vlgmr.msra.gmra.mxu1 %v6874_v59  ;;  %v5782_v59 = vld [vmem:[#allocation8 + $0x8] sm:$0xff] }
 0x149   : > { %v1509_v34 = vpack.c.bf16 %v1043_v14, %v1043_v14  ;;  %v6888_v0 = vpack.c.b16 %v1387_v7, %v1386_v35  ;;  %v608_v35 = vpack.c.bf16 %v544_v58, %v544_v58 }
 0x14a   : > { %1813 = vmatpush.bf16.msra.mxu0 %v5782_v59  ;;  %v479_v59 = vunpack.c.0.s8 %v448_v4 }
 0x14b   : > { %1487 = vmatmul.bf16.gmra.mxu0 %v6876_v55  ;;  %v6880_v25 = vunpack.c.l.b16 %v1509_v34  ;;  %8404 = vst [vmem:[#allocation57_spill] sm:$0xff] %v6888_v0  ;;  %v586_v34 = vcvt.s32.f32 %v522_v47 }
 0x14c   : > { %v543_v15 = vcvt.s32.f32 %v479_v59  ;;  %v481_v59 = vunpack.c.2.s8 %v448_v4 }
 0x14e   : > { %1814 = vmatpush.bf16.msra.mxu0 %v5781_v38  ;;  %v607_v7 = vpack.c.bf16 %v543_v15, %v543_v15 }
 0x150   : > { %v1045_v46 = vpop.f32.mrf.mxu0 }
 0x151   : > { %v1510_v48 = vpack.c.bf16 %v1045_v46, %v1045_v46  ;;  %v649_v46 = vpack.c.bf16 %v585_v60, %v585_v60 }
 0x153   : > { %v6882_v55 = vunpack.c.l.b16 %v1510_v48  ;;  %v650_v48 = vpack.c.bf16 %v586_v34, %v586_v34  ;;  %v1388_v14 = vunpack.c.l.b16 %v649_v46 }
 0x155   : > { %v1389_v38 = vunpack.c.l.b16 %v650_v48  ;;  %v545_v48 = vcvt.s32.f32 %v481_v59  ;;  %v449_v59 = vld [vmem:[%s6611_s23 + $0x30] sm:$0xff] }
 0x158   : > { %v1048_v26 = vpop.f32.mrf.mxu0  ;;  %1177 = vmatmul.bf16.gmra.mxu1 %v6886_v41  ;;  %v1088_v41 = vunpack.c.l.b16 %v607_v7 }
 0x159   : > { %v1511_v28 = vpack.c.bf16 %v1048_v26, %v1048_v26  ;;  %v6901_v26 = vpack.c.b16 %v1389_v38, %v1388_v14 }
 0x15b   : > { %1492 = vmatmul.bf16.gmra.mxu0 %v6888_v0  ;;  %v6893_v54 = vunpack.c.l.b16 %v1511_v28  ;;  %v1089_v0 = vunpack.c.l.b16 %v608_v35  ;;  %8406 = vst [vmem:[#allocation59_spill] sm:$0xff] %v6901_v26  ;;  %v546_v28 = vcvt.s32.f32 %v482_v18  ;;  %v483_v18 = vunpack.c.0.s8 %v449_v59 }
 0x15d   : > { %v6899_v60 = vpack.c.b16 %v1089_v0, %v1088_v41 }
 0x15f   : > { %8405 = vst [vmem:[#allocation58_spill] sm:$0xff] %v6899_v60 }
 0x160   : > { %v1050_v32 = vpop.f32.mrf.mxu0 }
 0x161   : > { %v1512_v8 = vpack.c.bf16 %v1050_v32, %v1050_v32  ;;  %v609_v32 = vpack.c.bf16 %v545_v48, %v545_v48 }
 0x163   : > { %v6895_v47 = vunpack.c.l.b16 %v1512_v8  ;;  %v610_v8 = vpack.c.bf16 %v546_v28, %v546_v28  ;;  %v1090_v14 = vunpack.c.l.b16 %v609_v32  ;;  %v547_v28 = vcvt.s32.f32 %v483_v18 }
 0x164   : > { %v485_v18 = vunpack.c.2.s8 %v449_v59 }
 0x165   : > { %v1091_v0 = vunpack.c.l.b16 %v610_v8  ;;  %v611_v8 = vpack.c.bf16 %v547_v28, %v547_v28 }
 0x166   : > { %v549_v28 = vcvt.s32.f32 %v485_v18 }
 0x167   : > { %v6911_v38 = vpack.c.b16 %v1091_v0, %v1090_v14  ;;  %v1092_v0 = vunpack.c.l.b16 %v611_v8 }
 0x168   : > { %v1053_v34 = vpop.f32.mrf.mxu0  ;;  %1182 = vmatmul.bf16.gmra.mxu1 %v6899_v60 }
 0x169   : > { %v1513_v46 = vpack.c.bf16 %v1053_v34, %v1053_v34  ;;  %8407 = vst [vmem:[#allocation60_spill] sm:$0xff] %v6911_v38  ;;  %v8408_v34 = vpack.c.b16 %v6791_v13, %v6789_v11 }
 0x16b   : > { %1497 = vmatmul.bf16.gmra.mxu0 %v6901_v26  ;;  %v6905_v7 = vunpack.c.l.b16 %v1513_v46  ;;  %v484_v46 = vunpack.c.1.s8 %v449_v59 }
 0x170   : > { %v1055_v15 = vpop.f32.mrf.mxu0 }
 0x171   : > { %v1514_v58 = vpack.c.bf16 %v1055_v15, %v1055_v15  ;;  %v548_v15 = vcvt.s32.f32 %v484_v46  ;;  %v486_v46 = vunpack.c.3.s8 %v449_v59 }
 0x173   : > { %v6907_v41 = vunpack.c.l.b16 %v1514_v58  ;;  %v612_v37 = vpack.c.bf16 %v548_v15, %v548_v15  ;;  %v550_v15 = vcvt.s32.f32 %v486_v46 }
 0x175   : > { %v1093_v26 = vunpack.c.l.b16 %v612_v37  ;;  %v614_v8 = vpack.c.bf16 %v550_v15, %v550_v15 }
 0x177   : > { %v6924_v13 = vpack.c.b16 %v1093_v26, %v1092_v0 }
 0x178   : > { %v1463_v4 = vpop.f32.mrf.mxu0  ;;  %1187 = vmatmul.bf16.gmra.mxu1 %v6911_v38 }
 0x179   : > { %v1551_v48 = vpack.c.bf16 %v1463_v4, %v1463_v4  ;;  %8409 = vst [vmem:[#allocation61_spill] sm:$0xff] %v6924_v13  ;;  %v8410_v4 = vpack.c.b16 %v6832_v40, %v6830_v50 }
 0x17b   : > { %1815 = vmatmul.bf16.vlgmr.msra.gmra.mxu0 %v8408_v34  ;;  %v6918_v35 = vunpack.c.l.b16 %v1551_v48 }
 0x180   : > { %v1465_v58 = vpop.f32.mrf.mxu0 }
 0x181   : > { %v1552_v32 = vpack.c.bf16 %v1465_v58, %v1465_v58 }
 0x183   : > { %v6920_v14 = vunpack.c.l.b16 %v1552_v32  ;;  %v613_v32 = vpack.c.bf16 %v549_v28, %v549_v28 }
 0x185   : > { %v1094_v11 = vunpack.c.l.b16 %v613_v32 }
 0x188   : > { %v1468_v34 = vpop.f32.mrf.mxu0  ;;  %1192 = vmatmul.bf16.gmra.mxu1 %v6924_v13  ;;  %v1095_v13 = vunpack.c.l.b16 %v614_v8 }
 0x189   : > { %v1553_v48 = vpack.c.bf16 %v1468_v34, %v1468_v34  ;;  %v8414_v34 = vpack.c.b16 %v6869_v61, %v6867_v44 }
 0x18a   : > { %v6936_v40 = vpack.c.b16 %v1095_v13, %v1094_v11 }
 0x18b   : > { %1820 = vmatmul.bf16.gmra.mxu0 %v8410_v4  ;;  %v6930_v26 = vunpack.c.l.b16 %v1553_v48  ;;  %v450_v4 = vld [vmem:[%s6611_s23 + $0x38] sm:$0xff] }
 0x18c   : > { %8413 = vst [vmem:[#allocation64_spill] sm:$0xff] %v6936_v40  ;;  %v487_v18 = vunpack.c.0.s8 %v450_v4  ;;  %v488_v46 = vunpack.c.1.s8 %v450_v4 }
 0x18d   : > { %8411 = vst [vmem:[#allocation62_spill] sm:$0xff] %v6930_v26 }
 0x18e   : > { %v551_v28 = vcvt.s32.f32 %v487_v18  ;;  %v552_v15 = vcvt.s32.f32 %v488_v46 }
 0x190   : > { %v1470_v58 = vpop.f32.mrf.mxu0  ;;  %v615_v13 = vpack.c.bf16 %v551_v28, %v551_v28  ;;  %v616_v50 = vpack.c.bf16 %v552_v15, %v552_v15 }
 0x191   : > { %v1554_v37 = vpack.c.bf16 %v1470_v58, %v1470_v58  ;;  %v5955_v58 = vld [vmem:[%s6603_s18 + $0xb8] sm:$0xff]  }
 0x192   : > { %v5899_v32 = vunpack.c.l.bf16 %v5955_v58  ;;  %v5900_v8 = vunpack.c.h.bf16 %v5955_v58  ;;  %v1096_v61 = vunpack.c.l.b16 %v615_v13 }
 0x193   : > { %v6932_v0 = vunpack.c.l.b16 %v1554_v37 }
 0x194   : > { %v841_v38 = vmax.f32 %v5899_v32, 0.0 }
 0x195   : > { %8412 = vst [vmem:[#allocation63_spill] sm:$0xff] %v6932_v0 }
 0x196   : > { %v6949_v26 = vpack.c.bf16 %v841_v38, %v841_v38 }
 0x198   : > { %v1473_v59 = vpop.f32.mrf.mxu0  ;;  %1197 = vmatmul.bf16.gmra.mxu1 %v6936_v40  ;;  %v842_v40 = vmax.f32 %v5900_v8, 0.0  ;;  %8417 = vst [vmem:[#allocation67_spill] sm:$0xff] %v6949_v26  ;;  %v1291_v15 = vunpack.c.l.b16 %v6949_v26 }
 0x199   : > { %v1555_v48 = vpack.c.bf16 %v1473_v59, %v1473_v59  ;;  %v5954_v59 = vld [vmem:[%s6603_s18 + $0xb0] sm:$0xff]  }
 0x19a   : > { %v6951_v18 = vpack.c.bf16 %v842_v40, %v842_v40  ;;  %v5895_v46 = vunpack.c.l.bf16 %v5954_v59  ;;  %v5896_v0 = vunpack.c.h.bf16 %v5954_v59 }
 0x19b   : > { %1825 = vmatmul.bf16.gmra.mxu0 %v8414_v34  ;;  %v6944_v60 = vunpack.c.l.b16 %v1555_v48  ;;  %v1097_v34 = vunpack.c.l.b16 %v616_v50  ;;  %v5953_v50 = vld [vmem:[%s6603_s18 + $0xa8] sm:$0xff]  }
 0x19c   : > { %8418 = vst [vmem:[#allocation68_spill] sm:$0xff] %v6951_v18  ;;  %v1292_v48 = vunpack.c.l.b16 %v6951_v18  ;;  %v840_v32 = vmax.f32 %v5896_v0, 0.0  ;;  %v5891_v13 = vunpack.c.l.bf16 %v5953_v50  ;;  %v8422_v0 = vpack.c.b16 %v6882_v55, %v6880_v25 }
 0x19d   : > { %8415 = vst [vmem:[#allocation65_spill] sm:$0xff] %v6944_v60  ;;  %v6953_v58 = vpack.c.b16 %v1097_v34, %v1096_v61  ;;  %v5892_v61 = vunpack.c.h.bf16 %v5953_v50 }
 0x19e   : > { %v1300_v38 = vpack.c.b16 %v1292_v48, %v1291_v15  ;;  %v6962_v40 = vpack.c.bf16 %v840_v32, %v840_v32  ;;  %v837_v28 = vmax.f32 %v5891_v13, 0.0  ;;  %v5952_v15 = vld [vmem:[%s6603_s18 + $0xa0] sm:$0xff]  }
 0x19f   : > { %8419 = vst [vmem:[#allocation69_spill] sm:$0xff] %v6953_v58  ;;  %v5887_v32 = vunpack.c.l.bf16 %v5952_v15  ;;  %v5888_v50 = vunpack.c.h.bf16 %v5952_v15 }
 0x1a0   : > { %v1475_v37 = vpop.f32.mrf.mxu0  ;;  %8421 = vst [vmem:[#allocation71_spill] sm:$0xff] %v6962_v40  ;;  %1309 = vmatpush.bf16.msrb.mxu2 %v1300_v38  ;;  %v1290_v59 = vunpack.c.l.b16 %v6962_v40  ;;  %v489_v38 = vunpack.c.2.s8 %v450_v4 }
 0x1a1   : > { %v1556_v11 = vpack.c.bf16 %v1475_v37, %v1475_v37  ;;  %v839_v37 = vmax.f32 %v5895_v46, 0.0  ;;  %v838_v46 = vmax.f32 %v5892_v61, 0.0  ;;  %v835_v13 = vmax.f32 %v5887_v32, 0.0 }
 0x1a2   : > { %v836_v40 = vmax.f32 %v5888_v50, 0.0  ;;  %v553_v55 = vcvt.s32.f32 %v489_v38 }
 0x1a3   : > { %v6946_v44 = vunpack.c.l.b16 %v1556_v11  ;;  %v6960_v11 = vpack.c.bf16 %v839_v37, %v839_v37  ;;  %v6971_v37 = vpack.c.bf16 %v837_v28, %v837_v28  ;;  %v6973_v18 = vpack.c.bf16 %v838_v46, %v838_v46 }
 0x1a4   : > { %v6978_v28 = vpack.c.bf16 %v835_v13, %v835_v13  ;;  %v617_v60 = vpack.c.bf16 %v553_v55, %v553_v55  ;;  %v5950_v13 = vld [vmem:[%s6603_s18 + $0x90] sm:$0xff]  }
 0x1a5   : > { %8416 = vst [vmem:[#allocation66_spill] sm:$0xff] %v6946_v44  ;;  %v1289_v34 = vunpack.c.l.b16 %v6960_v11  ;;  %v1288_v25 = vunpack.c.l.b16 %v6973_v18  ;;  %v5880_v55 = vunpack.c.h.bf16 %v5950_v13 }
 0x1a6   : > { %8420 = vst [vmem:[#allocation70_spill] sm:$0xff] %v6960_v11  ;;  %v1287_v11 = vunpack.c.l.b16 %v6971_v37  ;;  %v1285_v32 = vunpack.c.l.b16 %v6978_v28 }
 0x1a7   : > { %v1299_v48 = vpack.c.b16 %v1290_v59, %v1289_v34  ;;  %8423 = vst [vmem:[#allocation72_spill] sm:$0xff] %v6971_v37  ;;  %v6980_v59 = vpack.c.bf16 %v836_v40, %v836_v40  ;;  %v1098_v40 = vunpack.c.l.b16 %v617_v60 }
 0x1a8   : > { %v1478_v8 = vpop.f32.mrf.mxu0  ;;  %1202 = vmatmul.bf16.gmra.mxu1 %v6953_v58  ;;  %8424 = vst [vmem:[#allocation73_spill] sm:$0xff] %v6973_v18  ;;  %v490_v58 = vunpack.c.3.s8 %v450_v4 }
 0x1a9   : > { %1310 = vmatpush.bf16.msrb.mxu2 %v1299_v48  ;;  %v1557_v26 = vpack.c.bf16 %v1478_v8, %v1478_v8  ;;  %8425 = vst [vmem:[#allocation74_spill] sm:$0xff] %v6978_v28  ;;  %v1298_v48 = vpack.c.b16 %v1288_v25, %v1287_v11  ;;  %v1286_v8 = vunpack.c.l.b16 %v6980_v59  ;;  %v5879_v25 = vunpack.c.l.bf16 %v5950_v13 }
 0x1aa   : > { %v554_v61 = vcvt.s32.f32 %v490_v58  ;;  %8426 = vst [vmem:[#allocation75_spill] sm:$0xff] %v6980_v59 }
 0x1ab   : > { %1830 = vmatmul.bf16.gmra.mxu0 %v8422_v0  ;;  %v5951_v0 = vld [vmem:[%s6603_s18 + $0x98] sm:$0xff]   ;;  %v6984_v58 = vunpack.c.l.b16 %v1557_v26  ;;  %v1297_v44 = vpack.c.b16 %v1286_v8, %v1285_v32  ;;  %v831_v60 = vmax.f32 %v5879_v25, 0.0 }
 0x1ac   : > { %v5883_v46 = vunpack.c.l.bf16 %v5951_v0  ;;  %v5884_v15 = vunpack.c.h.bf16 %v5951_v0  ;;  %v618_v37 = vpack.c.bf16 %v554_v61, %v554_v61 }
 0x1ad   : > { %1311 = vmatpush.bf16.msrb.mxu2 %v1298_v48 }
 0x1ae   : > { %v833_v50 = vmax.f32 %v5883_v46, 0.0  ;;  %v834_v38 = vmax.f32 %v5884_v15, 0.0  ;;  %v1099_v0 = vunpack.c.l.b16 %v618_v37  ;;  %v5949_v37 = vld [vmem:[%s6603_s18 + $0x88] sm:$0xff]  }
 0x1af   : > { %v5875_v8 = vunpack.c.l.bf16 %v5949_v37 }
 0x1b0   : > { %v1480_v34 = vpop.f32.mrf.mxu0  ;;  %v6991_v11 = vpack.c.bf16 %v834_v38, %v834_v38  ;;  %v6995_v46 = vpack.c.b16 %v1099_v0, %v1098_v40  ;;  %v7000_v38 = vpack.c.bf16 %v831_v60, %v831_v60 }
 0x1b1   : > { %v1558_v4 = vpack.c.bf16 %v1480_v34, %v1480_v34  ;;  %v6989_v34 = vpack.c.bf16 %v833_v50, %v833_v50  ;;  %1312 = vmatpush.bf16.msrb.mxu2 %v1297_v44  ;;  %v5876_v50 = vunpack.c.h.bf16 %v5949_v37  ;;  %v829_v40 = vmax.f32 %v5875_v8, 0.0 }
 0x1b2   : > { %8428 = vst [vmem:[#allocation77_spill] sm:$0xff] %v6991_v11  ;;  %v1284_v15 = vunpack.c.l.b16 %v6991_v11  ;;  %v8432_v44 = vpack.c.b16 %v6895_v47, %v6893_v54  ;;  %v1281_v25 = vunpack.c.l.b16 %v7000_v38  ;;  %v451_v54 = vld [vmem:[%s6611_s23 + $0x40] sm:$0xff] }
 0x1b3   : > { %v6986_v18 = vunpack.c.l.b16 %v1558_v4  ;;  %8427 = vst [vmem:[#allocation76_spill] sm:$0xff] %v6989_v34  ;;  %v1283_v26 = vunpack.c.l.b16 %v6989_v34  ;;  %v832_v4 = vmax.f32 %v5880_v55, 0.0  ;;  %v830_v0 = vmax.f32 %v5876_v50, 0.0 }
 0x1b4   : > { %8429 = vst [vmem:[#allocation78_spill] sm:$0xff] %v6995_v46  ;;  %v492_v59 = vunpack.c.1.s8 %v451_v54 }
 0x1b5   : > { %v1296_v32 = vpack.c.b16 %v1284_v15, %v1283_v26  ;;  %8430 = vst [vmem:[#allocation79_spill] sm:$0xff] %v7000_v38  ;;  %v7002_v13 = vpack.c.bf16 %v832_v4, %v832_v4  ;;  %v5948_v26 = vld [vmem:[%s6603_s18 + $0x80] sm:$0xff]   ;;  %v7011_v15 = vpack.c.bf16 %v829_v40, %v829_v40  ;;  %v7013_v60 = vpack.c.bf16 %v830_v0, %v830_v0  ;;  %v1058_v38 = vpop.f32.mrf.mxu2 }
 0x1b6   : > { %v5871_v4 = vunpack.c.l.bf16 %v5948_v26  ;;  %v5872_v61 = vunpack.c.h.bf16 %v5948_v26 }
 0x1b7   : > { %8431 = vst [vmem:[#allocation80_spill] sm:$0xff] %v7002_v13  ;;  %1313 = vmatpush.bf16.msrb.mxu2 %v1296_v32  ;;  %v1282_v55 = vunpack.c.l.b16 %v7002_v13  ;;  %v1279_v8 = vunpack.c.l.b16 %v7011_v15  ;;  %v1280_v50 = vunpack.c.l.b16 %v7013_v60 }
 0x1b8   : > { %v1483_v48 = vpop.f32.mrf.mxu0  ;;  %1207 = vmatmul.bf16.gmra.mxu1 %v6995_v46  ;;  %8433 = vst [vmem:[#allocation81_spill] sm:$0xff] %v7011_v15  ;;  %v827_v46 = vmax.f32 %v5871_v4, 0.0  ;;  %v828_v32 = vmax.f32 %v5872_v61, 0.0 }
 0x1b9   : > { %8434 = vst [vmem:[#allocation82_spill] sm:$0xff] %v7013_v60  ;;  %v1295_v37 = vpack.c.b16 %v1282_v55, %v1281_v25  ;;  %v1559_v47 = vpack.c.bf16 %v1483_v48, %v1483_v48  ;;  %v1294_v40 = vpack.c.b16 %v1280_v50, %v1279_v8  ;;  %v556_v55 = vcvt.s32.f32 %v492_v59 }
 0x1ba   : > { %v7018_v13 = vpack.c.bf16 %v827_v46, %v827_v46  ;;  %v7020_v34 = vpack.c.bf16 %v828_v32, %v828_v32 }
 0x1bb   : > { %1835 = vmatmul.bf16.gmra.mxu0 %v8432_v44  ;;  %1314 = vmatpush.bf16.msrb.mxu2 %v1295_v37  ;;  %v491_v44 = vunpack.c.0.s8 %v451_v54  ;;  %v7023_v11 = vunpack.c.l.b16 %v1559_v47  ;;  %v620_v37 = vpack.c.bf16 %v556_v55, %v556_v55  ;;  %v1515_v55 = vpack.c.bf16 %v1058_v38, %v1058_v38 }
 0x1bc   : > { %8435 = vst [vmem:[#allocation83_spill] sm:$0xff] %v7018_v13  ;;  %v1277_v26 = vunpack.c.l.b16 %v7018_v13  ;;  %v1278_v61 = vunpack.c.l.b16 %v7020_v34 }
 0x1bd   : > { %8436 = vst [vmem:[#allocation84_spill] sm:$0xff] %v7020_v34  ;;  %v555_v25 = vcvt.s32.f32 %v491_v44  ;;  %v1230_v8 = vunpack.c.l.b16 %v620_v37  ;;  %v1060_v47 = vpop.f32.mrf.mxu2  ;;  %v8439_v44 = vpack.c.b16 %v6907_v41, %v6905_v7  ;;  %v1643_v13 = vunpack.c.l.b16 %v1515_v55 }
 0x1be   : > { %8437 = vst [vmem:[#allocation85_spill] sm:$0xff] %v7023_v11  ;;  %v1293_v15 = vpack.c.b16 %v1278_v61, %v1277_v26  ;;  %v1516_v61 = vpack.c.bf16 %v1060_v47, %v1060_v47 }
 0x1bf   : > { %1315 = vmatpush.bf16.msrb.mxu2 %v1294_v40  ;;  %v619_v48 = vpack.c.bf16 %v555_v25, %v555_v25  ;;  %v494_v25 = vunpack.c.3.s8 %v451_v54 }
 0x1c0   : > { %v1485_v28 = vpop.f32.mrf.mxu0  ;;  %v1644_v41 = vunpack.c.l.b16 %v1516_v61 }
 0x1c1   : > { %v1560_v0 = vpack.c.bf16 %v1485_v28, %v1485_v28  ;;  %v1229_v28 = vunpack.c.l.b16 %v619_v48  ;;  %v558_v37 = vcvt.s32.f32 %v494_v25 }
 0x1c3   : > { %v7025_v4 = vunpack.c.l.b16 %v1560_v0  ;;  %1316 = vmatpush.bf16.msrb.mxu2 %v1293_v15  ;;  %v7032_v32 = vpack.c.b16 %v1230_v8, %v1229_v28  ;;  %v493_v0 = vunpack.c.2.s8 %v451_v54 }
 0x1c5   : > { %v7030_v59 = vpop.f32.mrf.mxu1  ;;  %8438 = vst [vmem:[#allocation86_spill] sm:$0xff] %v7032_v32  ;;  %v557_v15 = vcvt.s32.f32 %v493_v0  ;;  %v1063_v7 = vpop.f32.mrf.mxu2  ;;  %v1701_v0 = vpack.c.b16 %v1644_v41, %v1643_v13 }
 0x1c6   : > { %1317 = vmatmul.bf16.vlgmr.msrb.gmra.mxu2 %v7032_v32  ;;  %v622_v32 = vpack.c.bf16 %v558_v37, %v558_v37  ;;  %v1517_v61 = vpack.c.bf16 %v1063_v7, %v1063_v7 }
 0x1c7   : > { %v621_v8 = vpack.c.bf16 %v557_v15, %v557_v15 }
 0x1c8   : > { %v1488_v50 = vpop.f32.mrf.mxu0 }
 0x1c9   : > { %v1561_v40 = vpack.c.bf16 %v1488_v50, %v1488_v50  ;;  %v1231_v50 = vunpack.c.l.b16 %v621_v8 }
 0x1cb   : > { %1840 = vmatmul.bf16.gmra.mxu0 %v8439_v44  ;;  %v7038_v60 = vunpack.c.l.b16 %v1561_v40  ;;  %v1232_v44 = vunpack.c.l.b16 %v622_v32 }
 0x1cd   : > { %v1175_v46 = vpop.f32.mrf.mxu1  ;;  %8440 = vst [vmem:[#allocation87_spill] sm:$0xff] %v7038_v60  ;;  %v7044_v54 = vpack.c.b16 %v1232_v44, %v1231_v50  ;;  %v1065_v25 = vpop.f32.mrf.mxu2 }
 0x1ce   : > { %v1518_v32 = vpack.c.bf16 %v1065_v25, %v1065_v25 }
 0x1cf   : > { %8442 = vst [vmem:[#allocation89_spill] sm:$0xff] %v7044_v54 }
 0x1d0   : > { %v1490_v26 = vpop.f32.mrf.mxu0 }
 0x1d1   : > { %v1562_v48 = vpack.c.bf16 %v1490_v26, %v1490_v26  ;;  %v452_v26 = vld [vmem:[%s6611_s23 + $0x48] sm:$0xff] }
 0x1d2   : > { %v495_v55 = vunpack.c.0.s8 %v452_v26  ;;  %v496_v15 = vunpack.c.1.s8 %v452_v26 }
 0x1d3   : > { %v7040_v28 = vunpack.c.l.b16 %v1562_v48 }
 0x1d4   : > { %v559_v34 = vcvt.s32.f32 %v495_v55  ;;  %v560_v38 = vcvt.s32.f32 %v496_v15  ;;  %v497_v55 = vunpack.c.2.s8 %v452_v26  ;;  %v498_v15 = vunpack.c.3.s8 %v452_v26 }
 0x1d5   : > { %8441 = vst [vmem:[#allocation88_spill] sm:$0xff] %v7040_v28  ;;  %v7047_v40 = vpop.f32.mrf.mxu1 }
 0x1d6   : > { %1322 = vmatmul.bf16.gmra.mxu2 %v7044_v54  ;;  %v623_v13 = vpack.c.bf16 %v559_v34, %v559_v34  ;;  %v624_v41 = vpack.c.bf16 %v560_v38, %v560_v38  ;;  %v1646_v54 = vunpack.c.l.b16 %v1518_v32  ;;  %v1519_v34 = vpack.c.bf16 %v7030_v59, %v7030_v59 }
 0x1d7   : > { %v1520_v32 = vpack.c.bf16 %v1175_v46, %v1175_v46 }
 0x1d8   : > { %v1493_v47 = vpop.f32.mrf.mxu0  ;;  %v1233_v60 = vunpack.c.l.b16 %v623_v13  ;;  %v1234_v28 = vunpack.c.l.b16 %v624_v41  ;;  %v561_v13 = vcvt.s32.f32 %v497_v55  ;;  %v562_v41 = vcvt.s32.f32 %v498_v15 }
 0x1d9   : > { %v1563_v48 = vpack.c.bf16 %v1493_v47, %v1493_v47 }
 0x1da   : > { %v7056_v7 = vpack.c.b16 %v1234_v28, %v1233_v60 }
 0x1db   : > { %1845 = vmatmul.bf16.gmra.mxu0 %v1701_v0  ;;  %v7050_v50 = vunpack.c.l.b16 %v1563_v48  ;;  %v1645_v0 = vunpack.c.l.b16 %v1517_v61 }
 0x1dc   : > { %8445 = vst [vmem:[#allocation92_spill] sm:$0xff] %v7056_v7 }
 0x1dd   : > { %8443 = vst [vmem:[#allocation90_spill] sm:$0xff] %v7050_v50  ;;  %v1180_v11 = vpop.f32.mrf.mxu1 }
 0x1e0   : > { %v1495_v37 = vpop.f32.mrf.mxu0 }
 0x1e1   : > { %v1564_v8 = vpack.c.bf16 %v1495_v37, %v1495_v37  ;;  %v1702_v37 = vpack.c.b16 %v1646_v54, %v1645_v0  ;;  %v625_v54 = vpack.c.bf16 %v561_v13, %v561_v13  ;;  %v626_v0 = vpack.c.bf16 %v562_v41, %v562_v41 }
 0x1e3   : > { %v7052_v44 = vunpack.c.l.b16 %v1564_v8  ;;  %v1235_v26 = vunpack.c.l.b16 %v625_v54  ;;  %v1236_v47 = vunpack.c.l.b16 %v626_v0  ;;  %v7078_v54 = vunpack.c.l.bf16 %v6681_v16 }
 0x1e5   : > { %8444 = vst [vmem:[#allocation91_spill] sm:$0xff] %v7052_v44  ;;  %v7061_v61 = vpop.f32.mrf.mxu1 }
 0x1e6   : > { %1327 = vmatmul.bf16.gmra.mxu2 %v7056_v7  ;;  %v7069_v7 = vpack.c.b16 %v1236_v47, %v1235_v26  ;;  %8450 = vst [vmem:[#allocation97_spill] sm:$0xff] %v7078_v54  ;;  %v1521_v47 = vpack.c.bf16 %v7047_v40, %v7047_v40 }
 0x1e8   : > { %v1498_v25 = vpop.f32.mrf.mxu0  ;;  %8448 = vst [vmem:[#allocation95_spill] sm:$0xff] %v7069_v7 }
 0x1e9   : > { %v1565_v48 = vpack.c.bf16 %v1498_v25, %v1498_v25  ;;  %v1647_v25 = vunpack.c.l.b16 %v1519_v34  ;;  %v453_v34 = vld [vmem:[%s6611_s23 + $0x50] sm:$0xff] }
 0x1ea   : > { %v499_v13 = vunpack.c.0.s8 %v453_v34  ;;  %v500_v41 = vunpack.c.1.s8 %v453_v34 }
 0x1eb   : > { %1850 = vmatmul.bf16.gmra.mxu0 %v1702_v37  ;;  %v7063_v60 = vunpack.c.l.b16 %v1565_v48  ;;  %v1648_v37 = vunpack.c.l.b16 %v1520_v32  ;;  %v7073_v48 = vunpack.c.l.bf16 %v6677_v10 }
 0x1ec   : > { %v563_v26 = vcvt.s32.f32 %v499_v13 }
 0x1ed   : > { %8446 = vst [vmem:[#allocation93_spill] sm:$0xff] %v7063_v60  ;;  %v1703_v55 = vpack.c.b16 %v1648_v37, %v1647_v25  ;;  %v1185_v15 = vpop.f32.mrf.mxu1  ;;  %v1522_v25 = vpack.c.bf16 %v1180_v11, %v1180_v11 }
 0x1ee   : > { %8449 = vst [vmem:[#allocation96_spill] sm:$0xff] %v7073_v48 }
 0x1f0   : > { %v1500_v38 = vpop.f32.mrf.mxu0 }
 0x1f1   : > { %v1566_v8 = vpack.c.bf16 %v1500_v38, %v1500_v38 }
 0x1f3   : > { %v7065_v28 = vunpack.c.l.b16 %v1566_v8 }
 0x1f5   : > { %8447 = vst [vmem:[#allocation94_spill] sm:$0xff] %v7065_v28  ;;  %v7082_v60 = vpop.f32.mrf.mxu1 }
 0x1f6   : > { %1332 = vmatmul.bf16.gmra.mxu2 %v7069_v7  ;;  %v1649_v7 = vunpack.c.l.b16 %v1521_v47 }
 0x1f8   : > { %v1816_v46 = vpop.f32.mrf.mxu0 }
 0x1f9   : > { %v1976_v38 = vpack.c.bf16 %v1816_v46, %v1816_v46  ;;  %v564_v46 = vcvt.s32.f32 %v500_v41 }
 0x1fb   : > { %v2104_v8 = vunpack.c.l.bf16 %v1976_v38  ;;  %1855 = vmatmul.bf16.gmra.mxu0 %v1703_v55  ;;  %v627_v38 = vpack.c.bf16 %v563_v26, %v563_v26  ;;  %v628_v55 = vpack.c.bf16 %v564_v46, %v564_v46  ;;  %v502_v46 = vunpack.c.3.s8 %v453_v34 }
 0x1fd   : > { %v2168_v32 = vadd.f32 %v2104_v8, %v7073_v48  ;;  %v1650_v8 = vunpack.c.l.b16 %v1522_v25  ;;  %v1237_v16 = vunpack.c.l.b16 %v627_v38  ;;  %v1238_v28 = vunpack.c.l.b16 %v628_v55  ;;  %v1190_v26 = vpop.f32.mrf.mxu1 }
 0x1ff   : > { %v2360_v10 = vmax.f32 %v2168_v32, 0.0  ;;  %v7085_v50 = vpack.c.b16 %v1238_v28, %v1237_v16  ;;  %v1704_v13 = vpack.c.b16 %v1650_v8, %v1649_v7  ;;  %v7089_v32 = vunpack.c.l.bf16 %v6671_v2 }
 0x200   : > { %v1818_v0 = vpop.f32.mrf.mxu0  ;;  %v1523_v7 = vpack.c.bf16 %v7061_v61, %v7061_v61  ;;  %v1524_v2 = vpack.c.bf16 %v1185_v15, %v1185_v15  ;;  %v566_v16 = vcvt.s32.f32 %v502_v46 }
 0x201   : > { %v1977_v37 = vpack.c.bf16 %v1818_v0, %v1818_v0  ;;  %8451 = vst [vmem:[#allocation98_spill] sm:$0xff] %v7085_v50  ;;  %v2424_v44 = vpack.c.bf16 %v2360_v10, %v2360_v10  ;;  %v7095_v10 = vunpack.c.l.bf16 %v6675_v9 }
 0x202   : > { %8452 = vst [vmem:[#allocation99_spill] sm:$0xff] %v7089_v32 }
 0x203   : > { %v2105_v59 = vunpack.c.l.bf16 %v1977_v37  ;;  %v2504_v25 = vunpack.c.l.b16 %v2424_v44  ;;  %8453 = vst [vmem:[#allocation100_spill] sm:$0xff] %v7095_v10 }
 0x205   : > { %v2169_v48 = vadd.f32 %v2105_v59, %v7078_v54  ;;  %v1193_v15 = vpop.f32.mrf.mxu1 }
 0x206   : > { %1337 = vmatmul.bf16.gmra.mxu2 %v7085_v50 }
 0x207   : > { %v2361_v40 = vmax.f32 %v2169_v48, 0.0  ;;  %v501_v48 = vunpack.c.2.s8 %v453_v34 }
 0x208   : > { %v1821_v11 = vpop.f32.mrf.mxu0 }
 0x209   : > { %v1978_v0 = vpack.c.bf16 %v1821_v11, %v1821_v11  ;;  %v2425_v41 = vpack.c.bf16 %v2361_v40, %v2361_v40  ;;  %v565_v8 = vcvt.s32.f32 %v501_v48 }
 0x20b   : > { %v2106_v47 = vunpack.c.l.bf16 %v1978_v0  ;;  %1860 = vmatmul.bf16.gmra.mxu0 %v1704_v13  ;;  %v2505_v37 = vunpack.c.l.b16 %v2425_v41  ;;  %v629_v11 = vpack.c.bf16 %v565_v8, %v565_v8  ;;  %v630_v0 = vpack.c.bf16 %v566_v16, %v566_v16  ;;  %v454_v16 = vld [vmem:[%s6611_s23 + $0x58] sm:$0xff] }
 0x20c   : > { %v1651_v13 = vunpack.c.l.b16 %v1523_v7  ;;  %v1652_v41 = vunpack.c.l.b16 %v1524_v2 }
 0x20d   : > { %v7091_v59 = vpack.c.b16 %v2505_v37, %v2504_v25  ;;  %v2170_v28 = vadd.f32 %v2106_v47, %v7089_v32  ;;  %v1239_v34 = vunpack.c.l.b16 %v629_v11  ;;  %v1240_v25 = vunpack.c.l.b16 %v630_v0 }
 0x20e   : > { %v1705_v48 = vpack.c.b16 %v1652_v41, %v1651_v13  ;;  %v504_v11 = vunpack.c.1.s8 %v454_v16  ;;  %v1525_v0 = vpack.c.bf16 %v7082_v60, %v7082_v60 }
 0x20f   : > { %v2362_v44 = vmax.f32 %v2170_v28, 0.0  ;;  %v7100_v9 = vpack.c.b16 %v1240_v25, %v1239_v34  ;;  %v7104_v28 = vunpack.c.l.bf16 %v6666_v62  ;;  %v1526_v62 = vpack.c.bf16 %v1190_v26, %v1190_v26  ;;  %v1195_v25 = vpop.f32.mrf.mxu1 }
 0x210   : > { %v1823_v38 = vpop.f32.mrf.mxu0  ;;  %v568_v34 = vcvt.s32.f32 %v504_v11 }
 0x211   : > { %v1979_v55 = vpack.c.bf16 %v1823_v38, %v1823_v38  ;;  %8454 = vst [vmem:[#allocation101_spill] sm:$0xff] %v7100_v9  ;;  %v2426_v61 = vpack.c.bf16 %v2362_v44, %v2362_v44  ;;  %v503_v44 = vunpack.c.0.s8 %v454_v16 }
 0x212   : > { %8455 = vst [vmem:[#allocation102_spill] sm:$0xff] %v7104_v28 }
 0x213   : > { %v2107_v40 = vunpack.c.l.bf16 %v1979_v55  ;;  %v2506_v2 = vunpack.c.l.b16 %v2426_v61 }
 0x215   : > { %v2171_v47 = vadd.f32 %v2107_v40, %v7095_v10 }
 0x216   : > { %1342 = vmatmul.bf16.gmra.mxu2 %v7100_v9  ;;  %v7151_v9 = vunpack.c.l.bf16 %v6636_v21 }
 0x217   : > { %v2363_v37 = vmax.f32 %v2171_v47, 0.0  ;;  %v567_v47 = vcvt.s32.f32 %v503_v44 }
 0x218   : > { %v1826_v32 = vpop.f32.mrf.mxu0  ;;  %8463 = vst [vmem:[#allocation110_spill] sm:$0xff] %v7151_v9 }
 0x219   : > { %v1980_v38 = vpack.c.bf16 %v1826_v32, %v1826_v32  ;;  %v2427_v46 = vpack.c.bf16 %v2363_v37, %v2363_v37  ;;  %v7111_v32 = vunpack.c.l.bf16 %v6668_v63 }
 0x21b   : > { %v2108_v7 = vunpack.c.l.bf16 %v1980_v38  ;;  %1865 = vmatmul.bf16.gmra.mxu0 %v1705_v48  ;;  %v2507_v55 = vunpack.c.l.b16 %v2427_v46  ;;  %8456 = vst [vmem:[#allocation103_spill] sm:$0xff] %v7111_v32  ;;  %v631_v38 = vpack.c.bf16 %v567_v47, %v567_v47  ;;  %v632_v48 = vpack.c.bf16 %v568_v34, %v568_v34 }
 0x21c   : > { %v1653_v46 = vunpack.c.l.b16 %v1525_v0 }
 0x21d   : > { %v7106_v8 = vpack.c.b16 %v2507_v55, %v2506_v2  ;;  %v2172_v40 = vadd.f32 %v2108_v7, %v7104_v28  ;;  %v1654_v7 = vunpack.c.l.b16 %v1526_v62  ;;  %v1241_v55 = vunpack.c.l.b16 %v631_v38 }
 0x21e   : > { %v1242_v63 = vunpack.c.l.b16 %v632_v48  ;;  %v1528_v48 = vpack.c.bf16 %v1195_v25, %v1195_v25 }
 0x21f   : > { %v2364_v37 = vmax.f32 %v2172_v40, 0.0  ;;  %v7120_v40 = vunpack.c.l.bf16 %v6660_v51 }
 0x220   : > { %v1828_v13 = vpop.f32.mrf.mxu0  ;;  %v7116_v28 = vpack.c.b16 %v1242_v63, %v1241_v55 }
 0x221   : > { %v1981_v41 = vpack.c.bf16 %v1828_v13, %v1828_v13  ;;  %v2428_v60 = vpack.c.bf16 %v2364_v37, %v2364_v37  ;;  %v1706_v13 = vpack.c.b16 %v1654_v7, %v1653_v46  ;;  %8458 = vst [vmem:[#allocation105_spill] sm:$0xff] %v7120_v40  ;;  %v506_v37 = vunpack.c.3.s8 %v454_v16 }
 0x222   : > { %8457 = vst [vmem:[#allocation104_spill] sm:$0xff] %v7116_v28 }
 0x223   : > { %v2109_v61 = vunpack.c.l.bf16 %v1981_v41  ;;  %v2508_v0 = vunpack.c.l.b16 %v2428_v60  ;;  %v1198_v41 = vpop.f32.mrf.mxu1  ;;  %v570_v7 = vcvt.s32.f32 %v506_v37 }
 0x225   : > { %v2173_v2 = vadd.f32 %v2109_v61, %v7111_v32  ;;  %v505_v61 = vunpack.c.2.s8 %v454_v16  ;;  %v634_v60 = vpack.c.bf16 %v570_v7, %v570_v7 }
 0x226   : > { %1347 = vmatmul.bf16.gmra.mxu2 %v7116_v28 }
 0x227   : > { %v2365_v10 = vmax.f32 %v2173_v2, 0.0  ;;  %v569_v51 = vcvt.s32.f32 %v505_v61 }
 0x228   : > { %v1831_v54 = vpop.f32.mrf.mxu0 }
 0x229   : > { %v1982_v26 = vpack.c.bf16 %v1831_v54, %v1831_v54  ;;  %v2429_v44 = vpack.c.bf16 %v2365_v10, %v2365_v10  ;;  %v7126_v54 = vunpack.c.l.bf16 %v6662_v52  ;;  %v1527_v10 = vpack.c.bf16 %v1193_v15, %v1193_v15 }
 0x22a   : > { %v633_v63 = vpack.c.bf16 %v569_v51, %v569_v51 }
 0x22b   : > { %v2110_v11 = vunpack.c.l.bf16 %v1982_v26  ;;  %1870 = vmatmul.bf16.gmra.mxu0 %v1706_v13  ;;  %v2509_v62 = vunpack.c.l.b16 %v2429_v44  ;;  %8459 = vst [vmem:[#allocation106_spill] sm:$0xff] %v7126_v54  ;;  %v1655_v26 = vunpack.c.l.b16 %v1527_v10  ;;  %v1656_v13 = vunpack.c.l.b16 %v1528_v48  ;;  %v1200_v16 = vpop.f32.mrf.mxu1 }
 0x22c   : > { %v1530_v51 = vpack.c.bf16 %v1200_v16, %v1200_v16 }
 0x22d   : > { %v7122_v47 = vpack.c.b16 %v2509_v62, %v2508_v0  ;;  %v2174_v34 = vadd.f32 %v2110_v11, %v7120_v40  ;;  %v1243_v11 = vunpack.c.l.b16 %v633_v63  ;;  %v1244_v0 = vunpack.c.l.b16 %v634_v60 }
 0x22e   : > { %v1707_v25 = vpack.c.b16 %v1656_v13, %v1655_v26 }
 0x22f   : > { %v2366_v2 = vmax.f32 %v2174_v34, 0.0  ;;  %v7129_v62 = vpack.c.b16 %v1244_v0, %v1243_v11 }
 0x230   : > { %v1833_v38 = vpop.f32.mrf.mxu0 }
 0x231   : > { %v1983_v46 = vpack.c.bf16 %v1833_v38, %v1833_v38  ;;  %8460 = vst [vmem:[#allocation107_spill] sm:$0xff] %v7129_v62  ;;  %v2430_v15 = vpack.c.bf16 %v2366_v2, %v2366_v2 }
 0x233   : > { %v2111_v55 = vunpack.c.l.bf16 %v1983_v46  ;;  %v2510_v34 = vunpack.c.l.b16 %v2430_v15  ;;  %v1203_v48 = vpop.f32.mrf.mxu1  ;;  %v1529_v46 = vpack.c.bf16 %v1198_v41, %v1198_v41 }
 0x235   : > { %v2175_v44 = vadd.f32 %v2111_v55, %v7126_v54  ;;  %v1657_v7 = vunpack.c.l.b16 %v1529_v46  ;;  %v1658_v55 = vunpack.c.l.b16 %v1530_v51 }
 0x236   : > { %1352 = vmatmul.bf16.gmra.mxu2 %v7129_v62 }
 0x237   : > { %v2367_v52 = vmax.f32 %v2175_v44, 0.0  ;;  %v1708_v2 = vpack.c.b16 %v1658_v55, %v1657_v7  ;;  %v1531_v44 = vpack.c.bf16 %v1203_v48, %v1203_v48 }
 0x238   : > { %v7131_v40 = vpop.f32.mrf.mxu0 }
 0x239   : > { %v2431_v61 = vpack.c.bf16 %v2367_v52, %v2367_v52  ;;  %v1659_v52 = vunpack.c.l.b16 %v1531_v44  ;;  %v1984_v21 = vpack.c.bf16 %v7131_v40, %v7131_v40  ;;  %v7175_v40 = vunpack.c.l.bf16 %v6650_v33 }
 0x23b   : > { %1875 = vmatmul.bf16.gmra.mxu0 %v1707_v25  ;;  %v2511_v37 = vunpack.c.l.b16 %v2431_v61  ;;  %v1205_v60 = vpop.f32.mrf.mxu1 }
 0x23c   : > { %v1532_v11 = vpack.c.bf16 %v1205_v60, %v1205_v60 }
 0x23d   : > { %v7134_v10 = vpack.c.b16 %v2511_v37, %v2510_v34 }
 0x23e   : > { %v1660_v15 = vunpack.c.l.b16 %v1532_v11  ;;  %v7143_v11 = vunpack.c.l.bf16 %v6632_v19  ;;  %v7155_v19 = vunpack.c.l.bf16 %v6634_v20 }
 0x240   : > { %v7136_v38 = vpop.f32.mrf.mxu0  ;;  %v1709_v34 = vpack.c.b16 %v1660_v15, %v1659_v52  ;;  %8461 = vst [vmem:[#allocation108_spill] sm:$0xff] %v7143_v11  ;;  %v7146_v15 = vunpack.c.l.bf16 %v6638_v22 }
 0x241   : > { %8464 = vst [vmem:[#allocation111_spill] sm:$0xff] %v7155_v19  ;;  %v1985_v22 = vpack.c.bf16 %v7136_v38, %v7136_v38 }
 0x242   : > { %8462 = vst [vmem:[#allocation109_spill] sm:$0xff] %v7146_v15 }
 0x243   : > { %v1208_v0 = vpop.f32.mrf.mxu1 }
 0x244   : > { %v1533_v46 = vpack.c.bf16 %v1208_v0, %v1208_v0 }
 0x246   : > { %v1661_v7 = vunpack.c.l.b16 %v1533_v46 }
 0x248   : > { %v1841_v63 = vpop.f32.mrf.mxu0 }
 0x249   : > { %v1318_v26 = vpop.f32.mrf.mxu2 }
 0x24a   : > { %v1535_v46 = vpack.c.bf16 %v1318_v26, %v1318_v26 }
 0x24b   : > { %1880 = vmatmul.bf16.gmra.mxu0 %v1708_v2  ;;  %v1210_v41 = vpop.f32.mrf.mxu1 }
 0x24c   : > { %v1534_v51 = vpack.c.bf16 %v1210_v41, %v1210_v41  ;;  %v1986_v41 = vpack.c.bf16 %v1841_v63, %v1841_v63  ;;  %v1663_v20 = vunpack.c.l.b16 %v1535_v46 }
 0x24e   : > { %v1662_v55 = vunpack.c.l.b16 %v1534_v51 }
 0x250   : > { %v1843_v13 = vpop.f32.mrf.mxu0  ;;  %v1710_v32 = vpack.c.b16 %v1662_v55, %v1661_v7  ;;  %v7166_v55 = vunpack.c.l.bf16 %v6640_v23  ;;  %v2112_v23 = vunpack.c.l.bf16 %v1984_v21  ;;  %v7183_v21 = vunpack.c.l.bf16 %v6861_v29 }
 0x251   : > { %v1320_v25 = vpop.f32.mrf.mxu2 }
 0x252   : > { %8466 = vst [vmem:[#allocation113_spill] sm:$0xff] %v7166_v55 }
 0x253   : > { %8468 = vst [vmem:[#allocation115_spill] sm:$0xff] %v7183_v21 }
 0x258   : > { %v1846_v61 = vpop.f32.mrf.mxu0 }
 0x259   : > { %v7138_v37 = vpop.f32.mrf.mxu2  ;;  %v1988_v44 = vpack.c.bf16 %v1846_v61, %v1846_v61 }
 0x25b   : > { %1885 = vmatmul.bf16.gmra.mxu0 %v1709_v34  ;;  %v1987_v34 = vpack.c.bf16 %v1843_v13, %v1843_v13  ;;  %v7160_v13 = vunpack.c.l.bf16 %v6642_v24  ;;  %v7170_v24 = vunpack.c.l.bf16 %v6654_v36 }
 0x25d   : > { %8465 = vst [vmem:[#allocation112_spill] sm:$0xff] %v7160_v13  ;;  %v2115_v63 = vunpack.c.l.bf16 %v1987_v34 }
 0x25e   : > { %8467 = vst [vmem:[#allocation114_spill] sm:$0xff] %v7170_v24 }
 0x25f   : > { %v2179_v34 = vadd.f32 %v2115_v63, %v7160_v13 }
 0x260   : > { %v1848_v16 = vpop.f32.mrf.mxu0 }
 0x261   : > { %v7140_v2 = vpop.f32.mrf.mxu2  ;;  %v1989_v48 = vpack.c.bf16 %v1848_v16, %v1848_v16  ;;  %v1536_v16 = vpack.c.bf16 %v1320_v25, %v1320_v25  ;;  %v2114_v25 = vunpack.c.l.bf16 %v1986_v41 }
 0x262   : > { %v1538_v29 = vpack.c.bf16 %v7140_v2, %v7140_v2 }
 0x263   : > { %v2117_v0 = vunpack.c.l.bf16 %v1989_v48  ;;  %v2178_v41 = vadd.f32 %v2114_v25, %v7166_v55 }
 0x265   : > { %v2181_v26 = vadd.f32 %v2117_v0, %v7146_v15  ;;  %v2370_v33 = vmax.f32 %v2178_v41, 0.0  ;;  %v7191_v41 = vunpack.c.l.bf16 %v6863_v6 }
 0x267   : > { %8469 = vst [vmem:[#allocation116_spill] sm:$0xff] %v7191_v41 }
 0x268   : > { %v1851_v54 = vpop.f32.mrf.mxu0 }
 0x269   : > { %v1990_v60 = vpack.c.bf16 %v1851_v54, %v1851_v54  ;;  %v7148_v51 = vpop.f32.mrf.mxu2  ;;  %v2116_v54 = vunpack.c.l.bf16 %v1988_v44  ;;  %v1664_v44 = vunpack.c.l.b16 %v1536_v16 }
 0x26b   : > { %v2118_v52 = vunpack.c.l.bf16 %v1990_v60  ;;  %1890 = vmatmul.bf16.gmra.mxu0 %v1710_v32  ;;  %v2180_v48 = vadd.f32 %v2116_v54, %v7151_v9  ;;  %v1711_v54 = vpack.c.b16 %v1664_v44, %v1663_v20 }
 0x26d   : > { %v2182_v61 = vadd.f32 %v2118_v52, %v7143_v11  ;;  %v2113_v52 = vunpack.c.l.bf16 %v1985_v22  ;;  %v2372_v46 = vmax.f32 %v2180_v48, 0.0 }
 0x26f   : > { %v2374_v60 = vmax.f32 %v2182_v61, 0.0  ;;  %v2177_v16 = vadd.f32 %v2113_v52, %v7170_v24 }
 0x270   : > { %v1853_v32 = vpop.f32.mrf.mxu0 }
 0x271   : > { %v1991_v7 = vpack.c.bf16 %v1853_v32, %v1853_v32  ;;  %v2373_v32 = vmax.f32 %v2181_v26, 0.0  ;;  %v7179_v9 = vpop.f32.mrf.mxu2  ;;  %v2176_v26 = vadd.f32 %v2112_v23, %v7175_v40  ;;  %v2369_v24 = vmax.f32 %v2177_v16, 0.0 }
 0x273   : > { %v2119_v38 = vunpack.c.l.bf16 %v1991_v7  ;;  %v2438_v7 = vpack.c.bf16 %v2374_v60, %v2374_v60  ;;  %v2437_v13 = vpack.c.bf16 %v2373_v32, %v2373_v32  ;;  %v2436_v60 = vpack.c.bf16 %v2372_v46, %v2372_v46 }
 0x274   : > { %v2368_v55 = vmax.f32 %v2176_v26, 0.0 }
 0x275   : > { %v2183_v0 = vadd.f32 %v2119_v38, %v7155_v19  ;;  %v2371_v38 = vmax.f32 %v2179_v34, 0.0  ;;  %v2518_v20 = vunpack.c.l.b16 %v2438_v7  ;;  %v2517_v52 = vunpack.c.l.b16 %v2437_v13 }
 0x276   : > { %v1537_v34 = vpack.c.bf16 %v7138_v37, %v7138_v37  ;;  %v2516_v23 = vunpack.c.l.b16 %v2436_v60  ;;  %v2433_v7 = vpack.c.bf16 %v2369_v24, %v2369_v24 }
 0x277   : > { %v2375_v61 = vmax.f32 %v2183_v0, 0.0  ;;  %v2435_v0 = vpack.c.bf16 %v2371_v38, %v2371_v38 }
 0x278   : > { %v1856_v36 = vpop.f32.mrf.mxu0  ;;  %v2526_v13 = vpack.c.b16 %v2517_v52, %v2516_v23  ;;  %v1665_v26 = vunpack.c.l.b16 %v1537_v34 }
 0x279   : > { %v1992_v22 = vpack.c.bf16 %v1856_v36, %v1856_v36  ;;  %v2439_v63 = vpack.c.bf16 %v2375_v61, %v2375_v61  ;;  %v2434_v36 = vpack.c.bf16 %v2370_v33, %v2370_v33  ;;  %v2515_v61 = vunpack.c.l.b16 %v2435_v0 }
 0x27a   : > { %v1666_v33 = vunpack.c.l.b16 %v1538_v29 }
 0x27b   : > { %v2120_v25 = vunpack.c.l.bf16 %v1992_v22  ;;  %1895 = vmatmul.bf16.gmra.mxu0 %v1711_v54  ;;  %v2519_v48 = vunpack.c.l.b16 %v2439_v63  ;;  %v2514_v16 = vunpack.c.l.b16 %v2434_v36  ;;  %v2432_v22 = vpack.c.bf16 %v2368_v55, %v2368_v55  ;;  %v7193_v63 = vpop.f32.mrf.mxu2 }
 0x27c   : > { %v1712_v60 = vpack.c.b16 %v1666_v33, %v1665_v26 }
 0x27d   : > { %v2527_v44 = vpack.c.b16 %v2519_v48, %v2518_v20  ;;  %v2184_v32 = vadd.f32 %v2120_v25, %v7183_v21  ;;  %v2525_v2 = vpack.c.b16 %v2515_v61, %v2514_v16  ;;  %v2513_v20 = vunpack.c.l.b16 %v2433_v7 }
 0x27e   : > { %v1540_v61 = vpack.c.bf16 %v7179_v9, %v7179_v9 }
 0x27f   : > { %2536 = vmatpush.bf16.msrb.mxu1 %v2527_v44  ;;  %v2376_v38 = vmax.f32 %v2184_v32, 0.0  ;;  %v2512_v44 = vunpack.c.l.b16 %v2432_v22  ;;  %v7197_v32 = vunpack.c.l.bf16 %v6852_v42  ;;  %v7208_v42 = vunpack.c.l.bf16 %v6856_v56 }
 0x280   : > { %v1858_v46 = vpop.f32.mrf.mxu0 }
 0x281   : > { %v1993_v54 = vpack.c.bf16 %v1858_v46, %v1858_v46  ;;  %v2440_v6 = vpack.c.bf16 %v2376_v38, %v2376_v38  ;;  %v2524_v55 = vpack.c.b16 %v2513_v20, %v2512_v44  ;;  %8470 = vst [vmem:[#allocation117_spill] sm:$0xff] %v7197_v32 }
 0x282   : > { %8471 = vst [vmem:[#allocation118_spill] sm:$0xff] %v7208_v42 }
 0x283   : > { %v2121_v37 = vunpack.c.l.bf16 %v1993_v54  ;;  %2537 = vmatpush.bf16.msrb.mxu1 %v2526_v13  ;;  %v2601_v36 = vunpack.c.l.b16 %v2440_v6  ;;  %v1335_v29 = vpop.f32.mrf.mxu2  ;;  %v1539_v13 = vpack.c.bf16 %v7148_v51, %v7148_v51 }
 0x285   : > { %v2185_v25 = vadd.f32 %v2121_v37, %v7191_v41  ;;  %v1667_v38 = vunpack.c.l.b16 %v1539_v13  ;;  %v1668_v37 = vunpack.c.l.b16 %v1540_v61 }
 0x287   : > { %v2377_v48 = vmax.f32 %v2185_v25, 0.0  ;;  %2538 = vmatpush.bf16.msrb.mxu1 %v2525_v2 }
 0x288   : > { %v1861_v52 = vpop.f32.mrf.mxu0 }
 0x289   : > { %v2441_v24 = vpack.c.bf16 %v2377_v48, %v2377_v48  ;;  %v1994_v0 = vpack.c.bf16 %v1861_v52, %v1861_v52 }
 0x28b   : > { %v2602_v23 = vunpack.c.l.b16 %v2441_v24  ;;  %v2122_v34 = vunpack.c.l.bf16 %v1994_v0  ;;  %1900 = vmatmul.bf16.gmra.mxu0 %v1712_v60  ;;  %2539 = vmatpush.bf16.msrb.mxu1 %v2524_v55  ;;  %v1338_v25 = vpop.f32.mrf.mxu2  ;;  %v7214_v60 = vunpack.c.l.bf16 %v6846_v53  ;;  %v1542_v24 = vpack.c.bf16 %v1335_v29, %v1335_v29 }
 0x28d   : > { %v7199_v46 = vpack.c.b16 %v2602_v23, %v2601_v36  ;;  %v2186_v54 = vadd.f32 %v2122_v34, %v7197_v32  ;;  %8472 = vst [vmem:[#allocation119_spill] sm:$0xff] %v7214_v60  ;;  %v7224_v36 = vunpack.c.l.bf16 %v6848_v30 }
 0x28f   : > { %2540 = vmatpush.bf16.msrb.mxu1 %v7134_v10  ;;  %v2378_v22 = vmax.f32 %v2186_v54, 0.0  ;;  %v1713_v10 = vpack.c.b16 %v1668_v37, %v1667_v38  ;;  %8473 = vst [vmem:[#allocation120_spill] sm:$0xff] %v7224_v36 }
 0x290   : > { %v1863_v7 = vpop.f32.mrf.mxu0 }
 0x291   : > { %v1995_v16 = vpack.c.bf16 %v1863_v7, %v1863_v7  ;;  %v2442_v51 = vpack.c.bf16 %v2378_v22, %v2378_v22 }
 0x293   : > { %v2123_v26 = vunpack.c.l.bf16 %v1995_v16  ;;  %2541 = vmatpush.bf16.msrb.mxu1 %v7122_v47  ;;  %v2603_v56 = vunpack.c.l.b16 %v2442_v51  ;;  %v1340_v55 = vpop.f32.mrf.mxu2 }
 0x295   : > { %v2187_v33 = vadd.f32 %v2123_v26, %v7208_v42 }
 0x297   : > { %v2379_v2 = vmax.f32 %v2187_v33, 0.0  ;;  %2542 = vmatpush.bf16.msrb.mxu1 %v7106_v8  ;;  %v1541_v8 = vpack.c.bf16 %v7193_v63, %v7193_v63  ;;  %v7228_v33 = vunpack.c.l.bf16 %v6828_v57 }
 0x298   : > { %v1866_v9 = vpop.f32.mrf.mxu0 }
 0x299   : > { %v2443_v20 = vpack.c.bf16 %v2379_v2, %v2379_v2  ;;  %v1996_v6 = vpack.c.bf16 %v1866_v9, %v1866_v9  ;;  %v1669_v34 = vunpack.c.l.b16 %v1541_v8  ;;  %8474 = vst [vmem:[#allocation121_spill] sm:$0xff] %v7228_v33  ;;  %v1544_v9 = vpack.c.bf16 %v1340_v55, %v1340_v55 }
 0x29b   : > { %v2604_v48 = vunpack.c.l.b16 %v2443_v20  ;;  %v2124_v44 = vunpack.c.l.bf16 %v1996_v6  ;;  %1905 = vmatmul.bf16.gmra.mxu0 %v1713_v10  ;;  %2543 = vmatpush.bf16.msrb.mxu1 %v7091_v59  ;;  %v1670_v59 = vunpack.c.l.b16 %v1542_v24  ;;  %v1343_v63 = vpop.f32.mrf.mxu2  ;;  %v1543_v10 = vpack.c.bf16 %v1338_v25, %v1338_v25 }
 0x29c   : > { %v7235_v6 = vunpack.c.l.bf16 %v6836_v17  ;;  %v1672_v57 = vunpack.c.l.b16 %v1544_v9 }
 0x29d   : > { %v7217_v47 = vpack.c.b16 %v2604_v48, %v2603_v56  ;;  %v2188_v52 = vadd.f32 %v2124_v44, %v7214_v60  ;;  %v1714_v16 = vpack.c.b16 %v1670_v59, %v1669_v34  ;;  %v1671_v44 = vunpack.c.l.b16 %v1543_v10 }
 0x29e   : > { %2544 = vmatmul.bf16.vlgmr.msrb.gmra.mxu1 %v6685_v31  ;;  %8475 = vst [vmem:[#allocation122_spill] sm:$0xff] %v7235_v6 }
 0x29f   : > { %v2380_v23 = vmax.f32 %v2188_v52, 0.0 }
 0x2a0   : > { %v1868_v0 = vpop.f32.mrf.mxu0 }
 0x2a1   : > { %v1997_v53 = vpack.c.bf16 %v1868_v0, %v1868_v0  ;;  %v2444_v61 = vpack.c.bf16 %v2380_v23, %v2380_v23  ;;  %v1715_v23 = vpack.c.b16 %v1672_v57, %v1671_v44 }
 0x2a3   : > { %v2125_v54 = vunpack.c.l.bf16 %v1997_v53  ;;  %v2605_v29 = vunpack.c.l.b16 %v2444_v61  ;;  %v1345_v8 = vpop.f32.mrf.mxu2 }
 0x2a4   : > { %v1546_v61 = vpack.c.bf16 %v1345_v8, %v1345_v8 }
 0x2a5   : > { %v2189_v13 = vadd.f32 %v2125_v54, %v7224_v36 }
 0x2a7   : > { %v2381_v7 = vmax.f32 %v2189_v13, 0.0  ;;  %v1545_v13 = vpack.c.bf16 %v1343_v63, %v1343_v63 }
 0x2a8   : > { %v1871_v22 = vpop.f32.mrf.mxu0 }
 0x2a9   : > { %v2445_v38 = vpack.c.bf16 %v2381_v7, %v2381_v7  ;;  %v1998_v26 = vpack.c.bf16 %v1871_v22, %v1871_v22  ;;  %v1674_v22 = vunpack.c.l.b16 %v1546_v61 }
 0x2ab   : > { %v2606_v37 = vunpack.c.l.b16 %v2445_v38  ;;  %v2126_v30 = vunpack.c.l.bf16 %v1998_v26  ;;  %1910 = vmatmul.bf16.gmra.mxu0 %v1714_v16  ;;  %v1348_v17 = vpop.f32.mrf.mxu2  ;;  %v1673_v16 = vunpack.c.l.b16 %v1545_v13  ;;  %v7249_v13 = vunpack.c.l.bf16 %v6802_v39 }
 0x2ad   : > { %v7230_v51 = vpack.c.b16 %v2606_v37, %v2605_v29  ;;  %v2190_v2 = vadd.f32 %v2126_v30, %v7228_v33  ;;  %v1716_v38 = vpack.c.b16 %v1674_v22, %v1673_v16  ;;  %v1547_v37 = vpack.c.bf16 %v1348_v17, %v1348_v17  ;;  %8477 = vst [vmem:[#allocation124_spill] sm:$0xff] %v7249_v13 }
 0x2ae   : > { %2549 = vmatmul.bf16.gmra.mxu1 %v6689_v43 }
 0x2af   : > { %v2382_v48 = vmax.f32 %v2190_v2, 0.0  ;;  %v1675_v9 = vunpack.c.l.b16 %v1547_v37 }
 0x2b0   : > { %v1873_v20 = vpop.f32.mrf.mxu0 }
 0x2b1   : > { %v1999_v56 = vpack.c.bf16 %v1873_v20, %v1873_v20  ;;  %v2446_v0 = vpack.c.bf16 %v2382_v48, %v2382_v48 }
 0x2b3   : > { %v2127_v52 = vunpack.c.l.bf16 %v1999_v56  ;;  %v2607_v25 = vunpack.c.l.b16 %v2446_v0  ;;  %v1350_v29 = vpop.f32.mrf.mxu2 }
 0x2b4   : > { %v1548_v30 = vpack.c.bf16 %v1350_v29, %v1350_v29 }
 0x2b5   : > { %v2191_v24 = vadd.f32 %v2127_v52, %v7235_v6 }
 0x2b6   : > { %v1676_v20 = vunpack.c.l.b16 %v1548_v30  ;;  %v8480_v30 = vld [vmem:[#allocation49_spill] sm:$0xff] }
 0x2b7   : > { %v2383_v53 = vmax.f32 %v2191_v24, 0.0 }
 0x2b8   : > { %v7238_v34 = vpop.f32.mrf.mxu0  ;;  %v1717_v56 = vpack.c.b16 %v1676_v20, %v1675_v9 }
 0x2b9   : > { %v2447_v54 = vpack.c.bf16 %v2383_v53, %v2383_v53 }
 0x2bb   : > { %v2608_v55 = vunpack.c.l.b16 %v2447_v54  ;;  %1915 = vmatmul.bf16.gmra.mxu0 %v1715_v23  ;;  %v1353_v10 = vpop.f32.mrf.mxu2 }
 0x2bc   : > { %v1549_v44 = vpack.c.bf16 %v1353_v10, %v1353_v10  ;;  %v7260_v10 = vunpack.c.l.bf16 %v8480_v30 }
 0x2bd   : > { %v7240_v59 = vpack.c.b16 %v2608_v55, %v2607_v25  ;;  %v7246_v25 = vunpack.c.l.bf16 %v6785_v1  ;;  %v7257_v1 = vunpack.c.l.bf16 %v6787_v5 }
 0x2be   : > { %2554 = vmatmul.bf16.gmra.mxu1 %v6698_v3  ;;  %v1677_v8 = vunpack.c.l.b16 %v1549_v44  ;;  %8481 = vst [vmem:[#allocation49_spill] sm:$0xff] %v7260_v10 }
 0x2bf   : > { %8476 = vst [vmem:[#allocation123_spill] sm:$0xff] %v7246_v25 }
 0x2c0   : > { %v1878_v7 = vpop.f32.mrf.mxu0  ;;  %8479 = vst [vmem:[#allocation126_spill] sm:$0xff] %v7257_v1 }
 0x2c1   : > { %v2001_v39 = vpack.c.bf16 %v1878_v7, %v1878_v7 }
 0x2c3   : > { %v1355_v63 = vpop.f32.mrf.mxu2 }
 0x2c4   : > { %v1550_v52 = vpack.c.bf16 %v1355_v63, %v1355_v63 }
 0x2c6   : > { %v1678_v24 = vunpack.c.l.b16 %v1550_v52 }
 0x2c8   : > { %v1881_v26 = vpop.f32.mrf.mxu0  ;;  %v1718_v0 = vpack.c.b16 %v1678_v24, %v1677_v8  ;;  %v2129_v24 = vunpack.c.l.bf16 %v2001_v39 }
 0x2c9   : > { %v2002_v22 = vpack.c.bf16 %v1881_v26, %v1881_v26  ;;  %v2000_v26 = vpack.c.bf16 %v7238_v34, %v7238_v34 }
 0x2cb   : > { %1920 = vmatmul.bf16.gmra.mxu0 %v1716_v38  ;;  %v7253_v38 = vunpack.c.l.bf16 %v6800_v49  ;;  %v8482_v49 = vld [vmem:[#allocation48_spill] sm:$0xff]  ;;  %v2130_v63 = vunpack.c.l.bf16 %v2002_v22  ;;  %v2128_v34 = vunpack.c.l.bf16 %v2000_v26  ;;  %v8488_v26 = vpack.c.b16 %v6920_v14, %v6918_v35 }
 0x2cd   : > { %8478 = vst [vmem:[#allocation125_spill] sm:$0xff] %v7253_v38 }
 0x2ce   : > { %2559 = vmatmul.bf16.gmra.mxu1 %v6730_v12 }
 0x2d0   : > { %v1883_v2 = vpop.f32.mrf.mxu0 }
 0x2d1   : > { %v2003_v61 = vpack.c.bf16 %v1883_v2, %v1883_v2 }
 0x2d3   : > { %v2131_v20 = vunpack.c.l.bf16 %v2003_v61 }
 0x2d5   : > { %v2195_v7 = vadd.f32 %v2131_v20, %v7260_v10 }
 0x2d8   : > { %v1886_v48 = vpop.f32.mrf.mxu0 }
 0x2d9   : > { %v2004_v55 = vpack.c.bf16 %v1886_v48, %v1886_v48  ;;  %v7266_v48 = vunpack.c.l.bf16 %v8482_v49 }
 0x2db   : > { %1925 = vmatmul.bf16.gmra.mxu0 %v1717_v56  ;;  %v2132_v29 = vunpack.c.l.bf16 %v2004_v55  ;;  %8483 = vst [vmem:[#allocation48_spill] sm:$0xff] %v7266_v48  ;;  %v2194_v55 = vadd.f32 %v2130_v63, %v7266_v48  ;;  %v8582_v48 = vld [vmem:[#allocation34_spill] sm:$0xff] }
 0x2dd   : > { %v2196_v44 = vadd.f32 %v2132_v29, %v7253_v38  ;;  %v2386_v20 = vmax.f32 %v2194_v55, 0.0 }
 0x2de   : > { %2564 = vmatmul.bf16.gmra.mxu1 %v6755_v27 }
 0x2e0   : > { %v1888_v57 = vpop.f32.mrf.mxu0 }
 0x2e1   : > { %v2005_v23 = vpack.c.bf16 %v1888_v57, %v1888_v57  ;;  %v8484_v57 = vld [vmem:[#allocation52_spill] sm:$0xff] }
 0x2e2   : > { %v7270_v8 = vunpack.c.l.bf16 %v8484_v57  ;;  %v8489_v57 = vld [vmem:[#allocation46_spill] sm:$0xff] }
 0x2e3   : > { %v2133_v16 = vunpack.c.l.bf16 %v2005_v23  ;;  %v8486_v23 = vld [vmem:[#allocation50_spill] sm:$0xff] }
 0x2e4   : > { %8485 = vst [vmem:[#allocation52_spill] sm:$0xff] %v7270_v8  ;;  %v2193_v29 = vadd.f32 %v2129_v24, %v7270_v8 }
 0x2e5   : > { %v2197_v2 = vadd.f32 %v2133_v16, %v7249_v13 }
 0x2e6   : > { %v2385_v63 = vmax.f32 %v2193_v29, 0.0 }
 0x2e8   : > { %v1891_v53 = vpop.f32.mrf.mxu0 }
 0x2e9   : > { %v2006_v54 = vpack.c.bf16 %v1891_v53, %v1891_v53 }
 0x2eb   : > { %v2134_v17 = vunpack.c.l.bf16 %v2006_v54  ;;  %1930 = vmatmul.bf16.gmra.mxu0 %v1718_v0  ;;  %v2389_v0 = vmax.f32 %v2197_v2, 0.0  ;;  %v7275_v54 = vunpack.c.l.bf16 %v8486_v23  ;;  %v2449_v23 = vpack.c.bf16 %v2385_v63, %v2385_v63 }
 0x2ed   : > { %v2198_v37 = vadd.f32 %v2134_v17, %v7246_v25  ;;  %8487 = vst [vmem:[#allocation50_spill] sm:$0xff] %v7275_v54  ;;  %v2388_v17 = vmax.f32 %v2196_v44, 0.0  ;;  %v2453_v30 = vpack.c.bf16 %v2389_v0, %v2389_v0  ;;  %v2192_v39 = vadd.f32 %v2128_v34, %v7275_v54 }
 0x2ee   : > { %2569 = vmatmul.bf16.gmra.mxu1 %v6759_v45 }
 0x2ef   : > { %v2390_v5 = vmax.f32 %v2198_v37, 0.0  ;;  %v2387_v37 = vmax.f32 %v2195_v7, 0.0  ;;  %v2452_v2 = vpack.c.bf16 %v2388_v17, %v2388_v17  ;;  %v2384_v24 = vmax.f32 %v2192_v39, 0.0  ;;  %v8493_v39 = vld [vmem:[#allocation51_spill] sm:$0xff] }
 0x2f0   : > { %v1893_v9 = vpop.f32.mrf.mxu0  ;;  %v2450_v7 = vpack.c.bf16 %v2386_v20, %v2386_v20 }
 0x2f1   : > { %v2007_v56 = vpack.c.bf16 %v1893_v9, %v1893_v9  ;;  %v2454_v61 = vpack.c.bf16 %v2390_v5, %v2390_v5  ;;  %v2451_v44 = vpack.c.bf16 %v2387_v37, %v2387_v37  ;;  %v2614_v5 = vunpack.c.l.b16 %v2453_v30  ;;  %v8490_v30 = vld [vmem:[#allocation63_spill] sm:$0xff] }
 0x2f2   : > { %v2613_v0 = vunpack.c.l.b16 %v2452_v2  ;;  %v2448_v17 = vpack.c.bf16 %v2384_v24, %v2384_v24  ;;  %v6082_v24 = vld [vmem:[#allocation8 + $0x28] sm:$0xff] }
 0x2f3   : > { %v2135_v52 = vunpack.c.l.bf16 %v2007_v56  ;;  %v2615_v56 = vunpack.c.l.b16 %v2454_v61  ;;  %v2612_v34 = vunpack.c.l.b16 %v2451_v44  ;;  %v2611_v61 = vunpack.c.l.b16 %v2450_v7  ;;  %v6080_v44 = vld [vmem:[#allocation8 + $0x38] sm:$0xff] }
 0x2f4   : > { %v2623_v55 = vpack.c.b16 %v2614_v5, %v2613_v0  ;;  %v2609_v14 = vunpack.c.l.b16 %v2448_v17  ;;  %v8497_v5 = vld [vmem:[#allocation54_spill] sm:$0xff]  ;;  %v8498_v7 = vpack.c.b16 %v6986_v18, %v6984_v58  ;;  %v6084_v0 = vld [vmem:[#allocation8 + $0x18] sm:$0xff]  ;;  %v8500_v18 = vld [vmem:[#allocation85_spill] sm:$0xff] }
 0x2f5   : > { %v2199_v53 = vadd.f32 %v2135_v52, %v7257_v1  ;;  %v2622_v35 = vpack.c.b16 %v2612_v34, %v2611_v61  ;;  %v6085_v34 = vld [vmem:[#allocation8 + $0x10] sm:$0xff]  ;;  %v6087_v61 = vld [vmem:[#allocation8] sm:$0xff]  ;;  %v8501_v58 = vpack.c.b16 %v7025_v4, %v8500_v18 }
 0x2f6   : > { %v8512_v18 = vld [vmem:[#allocation81_spill] sm:$0xff] }
 0x2f7   : > { %v2391_v16 = vmax.f32 %v2199_v53, 0.0 }
 0x2f8   : > { %v7278_v22 = vpop.f32.mrf.mxu0 }
 0x2f9   : > { %v2455_v9 = vpack.c.bf16 %v2391_v16, %v2391_v16  ;;  %v2610_v16 = vunpack.c.l.b16 %v2449_v23 }
 0x2fb   : > { %v2616_v49 = vunpack.c.l.b16 %v2455_v9  ;;  %1935 = vmatmul.bf16.gmra.mxu0 %v8488_v26  ;;  %v2621_v37 = vpack.c.b16 %v2610_v16, %v2609_v14  ;;  %v8491_v9 = vld [vmem:[#allocation62_spill] sm:$0xff]  ;;  %v8495_v26 = vld [vmem:[#allocation65_spill] sm:$0xff]  ;;  %v2008_v16 = vpack.c.bf16 %v7278_v22, %v7278_v22  ;;  %v8502_v14 = vld [vmem:[#allocation84_spill] sm:$0xff] }
 0x2fd   : > { %v2624_v52 = vpack.c.b16 %v2616_v49, %v2615_v56  ;;  %v8492_v56 = vpack.c.b16 %v8490_v30, %v8491_v9  ;;  %v8494_v49 = vld [vmem:[#allocation66_spill] sm:$0xff]  ;;  %v8504_v30 = vld [vmem:[#allocation83_spill] sm:$0xff] }
 0x2fe   : > { %2574 = vmatmul.bf16.gmra.mxu1 %v8489_v57  ;;  %v8496_v63 = vpack.c.b16 %v8494_v49, %v8495_v26  ;;  %v7317_v9 = vunpack.c.l.bf16 %v8504_v30  ;;  %v8506_v26 = vld [vmem:[#allocation58_spill] sm:$0xff] }
 0x2ff   : > { %2633 = vmatpush.bf16.msra.mxu2 %v2624_v52 }
 0x300   : > { %v1898_v53 = vpop.f32.mrf.mxu0  ;;  %8505 = vst [vmem:[#allocation62_spill] sm:$0xff] %v7317_v9 }
 0x303   : > { %2634 = vmatpush.bf16.msra.mxu2 %v2623_v55  ;;  %v6086_v55 = vld [vmem:[#allocation8 + $0x8] sm:$0xff] }
 0x307   : > { %2635 = vmatpush.bf16.msra.mxu2 %v2622_v35  ;;  %v2009_v35 = vpack.c.bf16 %v1898_v53, %v1898_v53 }
 0x308   : > { %v1901_v29 = vpop.f32.mrf.mxu0 }
 0x309   : > { %v2137_v49 = vunpack.c.l.bf16 %v2009_v35 }
 0x30b   : > { %1940 = vmatmul.bf16.gmra.mxu0 %v8492_v56  ;;  %2636 = vmatpush.bf16.msra.mxu2 %v2621_v37  ;;  %v7314_v37 = vunpack.c.l.bf16 %v8502_v14  ;;  %v2136_v56 = vunpack.c.l.bf16 %v2008_v16  ;;  %v8510_v16 = vld [vmem:[#allocation82_spill] sm:$0xff] }
 0x30c   : > { %v7330_v35 = vunpack.c.l.bf16 %v8510_v16  ;;  %v8515_v16 = vld [vmem:[#allocation77_spill] sm:$0xff] }
 0x30d   : > { %8503 = vst [vmem:[#allocation63_spill] sm:$0xff] %v7314_v37  ;;  %v2201_v22 = vadd.f32 %v2137_v49, %v7314_v37  ;;  %v8524_v37 = vld [vmem:[#allocation79_spill] sm:$0xff] }
 0x30e   : > { %2579 = vmatmul.bf16.gmra.mxu1 %v8493_v39  ;;  %8511 = vst [vmem:[#allocation66_spill] sm:$0xff] %v7330_v35 }
 0x30f   : > { %2637 = vmatpush.bf16.msra.mxu2 %v7240_v59  ;;  %v6081_v59 = vld [vmem:[#allocation8 + $0x30] sm:$0xff] }
 0x310   : > { %v1903_v20 = vpop.f32.mrf.mxu0 }
 0x313   : > { %2638 = vmatpush.bf16.msra.mxu2 %v7230_v51 }
 0x317   : > { %2639 = vmatpush.bf16.msra.mxu2 %v7217_v47  ;;  %v6083_v47 = vld [vmem:[#allocation8 + $0x20] sm:$0xff] }
 0x318   : > { %v7293_v2 = vpop.f32.mrf.mxu0 }
 0x31b   : > { %1945 = vmatmul.bf16.gmra.mxu0 %v8496_v63  ;;  %2640 = vmatpush.bf16.msra.mxu2 %v7199_v46  ;;  %v8499_v46 = vld [vmem:[#allocation56_spill] sm:$0xff] }
 0x31e   : > { %2641 = vmatmul.bf16.vlgmr.msra.gmra.mxu2 %v8497_v5 }
 0x31f   : > { %3132 = vmatpush.bf16.msrb.mxu2 %v6080_v44  ;;  %v2200_v44 = vadd.f32 %v2136_v56, %v7317_v9 }
 0x320   : > { %v7300_v52 = vpop.f32.mrf.mxu0 }
 0x321   : > { %v2392_v53 = vmax.f32 %v2200_v44, 0.0  ;;  %v8514_v44 = vld [vmem:[#allocation60_spill] sm:$0xff] }
 0x323   : > { %3133 = vmatpush.bf16.msrb.mxu2 %v6081_v59  ;;  %v2393_v59 = vmax.f32 %v2201_v22, 0.0 }
 0x327   : > { %3134 = vmatpush.bf16.msrb.mxu2 %v6082_v24  ;;  %v2456_v24 = vpack.c.bf16 %v2392_v53, %v2392_v53 }
 0x328   : > { %v1911_v51 = vpop.f32.mrf.mxu0 }
 0x329   : > { %v2698_v14 = vunpack.c.l.b16 %v2456_v24  ;;  %v2012_v24 = vpack.c.bf16 %v7293_v2, %v7293_v2  ;;  %v7359_v2 = vunpack.c.l.bf16 %v8524_v37 }
 0x32b   : > { %3135 = vmatpush.bf16.msrb.mxu2 %v6083_v47  ;;  %1950 = vmatmul.bf16.gmra.mxu0 %v8498_v7  ;;  %v2457_v47 = vpack.c.bf16 %v2393_v59, %v2393_v59  ;;  %v2010_v7 = vpack.c.bf16 %v1901_v29, %v1901_v29 }
 0x32d   : > { %v2699_v30 = vunpack.c.l.b16 %v2457_v47  ;;  %v2138_v56 = vunpack.c.l.bf16 %v2010_v7  ;;  %v2013_v47 = vpack.c.bf16 %v7300_v52, %v7300_v52  ;;  %v8517_v7 = vld [vmem:[#allocation76_spill] sm:$0xff] }
 0x32e   : > { %2646 = vmatmul.bf16.gmra.mxu2 %v8499_v46 }
 0x32f   : > { %3136 = vmatpush.bf16.msrb.mxu2 %v6084_v0  ;;  %v2011_v0 = vpack.c.bf16 %v1903_v20, %v1903_v20  ;;  %v7340_v53 = vpack.c.b16 %v2699_v30, %v2698_v14  ;;  %v2141_v52 = vunpack.c.l.bf16 %v2013_v47 }
 0x330   : > { %v1913_v23 = vpop.f32.mrf.mxu0 }
 0x331   : > { %v2139_v49 = vunpack.c.l.bf16 %v2011_v0  ;;  %v7350_v0 = vunpack.c.l.bf16 %v8517_v7 }
 0x333   : > { %3137 = vmatpush.bf16.msrb.mxu2 %v6085_v34  ;;  %v8507_v34 = vld [vmem:[#allocation88_spill] sm:$0xff]  ;;  %v2203_v20 = vadd.f32 %v2139_v49, %v7330_v35  ;;  %8518 = vst [vmem:[#allocation84_spill] sm:$0xff] %v7350_v0 }
 0x334   : > { %8525 = vst [vmem:[#allocation88_spill] sm:$0xff] %v7359_v2 }
 0x337   : > { %3138 = vmatpush.bf16.msrb.mxu2 %v6086_v55  ;;  %v8508_v55 = vld [vmem:[#allocation87_spill] sm:$0xff] }
 0x338   : > { %v7306_v17 = vpop.f32.mrf.mxu0 }
 0x33b   : > { %3139 = vmatpush.bf16.msrb.mxu2 %v6087_v61  ;;  %1955 = vmatmul.bf16.gmra.mxu0 %v8501_v58  ;;  %v8509_v61 = vpack.c.b16 %v8507_v34, %v8508_v55  ;;  %v7333_v58 = vunpack.c.l.bf16 %v8512_v18  ;;  %v2395_v34 = vmax.f32 %v2203_v20, 0.0  ;;  %v2014_v55 = vpack.c.bf16 %v1911_v51, %v1911_v51  ;;  %v8519_v20 = vld [vmem:[#allocation91_spill] sm:$0xff]  ;;  %v8520_v51 = vld [vmem:[#allocation90_spill] sm:$0xff] }
 0x33c   : > { %v7343_v18 = vunpack.c.l.bf16 %v8515_v16  ;;  %v8522_v16 = vld [vmem:[#allocation80_spill] sm:$0xff] }
 0x33d   : > { %8513 = vst [vmem:[#allocation65_spill] sm:$0xff] %v7333_v58  ;;  %v2202_v29 = vadd.f32 %v2138_v56, %v7333_v58  ;;  %v2459_v14 = vpack.c.bf16 %v2395_v34, %v2395_v34  ;;  %v2142_v30 = vunpack.c.l.bf16 %v2014_v55  ;;  %v7356_v9 = vunpack.c.l.bf16 %v8522_v16  ;;  %v8526_v34 = vld [vmem:[#allocation61_spill] sm:$0xff] }
 0x33e   : > { %2651 = vmatmul.bf16.gmra.mxu2 %v8506_v26  ;;  %8516 = vst [vmem:[#allocation85_spill] sm:$0xff] %v7343_v18  ;;  %v2140_v58 = vunpack.c.l.bf16 %v2012_v24 }
 0x33f   : > { %v2394_v59 = vmax.f32 %v2202_v29, 0.0  ;;  %8523 = vst [vmem:[#allocation83_spill] sm:$0xff] %v7356_v9  ;;  %v2701_v7 = vunpack.c.l.b16 %v2459_v14 }
 0x340   : > { %v7320_v63 = vpop.f32.mrf.mxu0  ;;  %v2204_v55 = vadd.f32 %v2140_v58, %v7359_v2  ;;  %v8527_v58 = vld [vmem:[#allocation67_spill] sm:$0xff] }
 0x341   : > { %v2458_v49 = vpack.c.bf16 %v2394_v59, %v2394_v59  ;;  %v7369_v2 = vunpack.c.l.bf16 %v8527_v58 }
 0x342   : > { %v2396_v37 = vmax.f32 %v2204_v55, 0.0 }
 0x343   : > { %v2700_v35 = vunpack.c.l.b16 %v2458_v49  ;;  %8528 = vst [vmem:[#allocation87_spill] sm:$0xff] %v7369_v2 }
 0x345   : > { %v7366_v16 = vpack.c.b16 %v2701_v7, %v2700_v35 }
 0x348   : > { %v7324_v4 = vpop.f32.mrf.mxu0 }
 0x349   : > { %v2018_v35 = vpack.c.bf16 %v7324_v4, %v7324_v4  ;;  %v2016_v4 = vpack.c.bf16 %v7306_v17, %v7306_v17 }
 0x34b   : > { %1960 = vmatmul.bf16.gmra.mxu0 %v8509_v61  ;;  %v2015_v61 = vpack.c.bf16 %v1913_v23, %v1913_v23  ;;  %v8521_v23 = vpack.c.b16 %v8519_v20, %v8520_v51 }
 0x34d   : > { %v2143_v29 = vunpack.c.l.bf16 %v2015_v61  ;;  %v2205_v61 = vadd.f32 %v2141_v52, %v7356_v9  ;;  %v8529_v52 = vld [vmem:[#allocation71_spill] sm:$0xff]  ;;  %v8543_v9 = vld [vmem:[#allocation68_spill] sm:$0xff] }
 0x34e   : > { %2656 = vmatmul.bf16.gmra.mxu2 %v8514_v44  ;;  %v2206_v44 = vadd.f32 %v2142_v30, %v7350_v0  ;;  %v2460_v30 = vpack.c.bf16 %v2396_v37, %v2396_v37 }
 0x34f   : > { %v2207_v59 = vadd.f32 %v2143_v29, %v7343_v18  ;;  %v2397_v24 = vmax.f32 %v2205_v61, 0.0 }
 0x350   : > { %v7336_v22 = vpop.f32.mrf.mxu0  ;;  %v2398_v51 = vmax.f32 %v2206_v44, 0.0  ;;  %v7372_v44 = vunpack.c.l.bf16 %v8529_v52 }
 0x351   : > { %v2461_v0 = vpack.c.bf16 %v2397_v24, %v2397_v24  ;;  %v2019_v7 = vpack.c.bf16 %v7336_v22, %v7336_v22  ;;  %v7384_v24 = vpop.f32.mrf.mxu1 }
 0x352   : > { %v2462_v47 = vpack.c.bf16 %v2398_v51, %v2398_v51  ;;  %8530 = vst [vmem:[#allocation82_spill] sm:$0xff] %v7372_v44  ;;  %v8533_v51 = vld [vmem:[#allocation94_spill] sm:$0xff] }
 0x353   : > { %v2703_v22 = vunpack.c.l.b16 %v2461_v0 }
 0x354   : > { %v2704_v18 = vunpack.c.l.b16 %v2462_v47  ;;  %v8536_v47 = vld [vmem:[#allocation73_spill] sm:$0xff] }
 0x358   : > { %v1926_v56 = vpop.f32.mrf.mxu0 }
 0x359   : > { %v2020_v14 = vpack.c.bf16 %v1926_v56, %v1926_v56  ;;  %v8531_v56 = vld [vmem:[#allocation70_spill] sm:$0xff] }
 0x35b   : > { %1965 = vmatmul.bf16.gmra.mxu0 %v8521_v23  ;;  %v2399_v23 = vmax.f32 %v2207_v59, 0.0  ;;  %v7379_v59 = vunpack.c.l.bf16 %v8531_v56  ;;  %v2148_v55 = vunpack.c.l.bf16 %v2020_v14  ;;  %v2146_v56 = vunpack.c.l.bf16 %v2018_v35  ;;  %v8545_v35 = vld [vmem:[#allocation75_spill] sm:$0xff] }
 0x35d   : > { %v2463_v49 = vpack.c.bf16 %v2399_v23, %v2399_v23  ;;  %8532 = vst [vmem:[#allocation81_spill] sm:$0xff] %v7379_v59  ;;  %v8534_v23 = vld [vmem:[#allocation93_spill] sm:$0xff] }
 0x35e   : > { %2661 = vmatmul.bf16.gmra.mxu2 %v8526_v34  ;;  %v8535_v37 = vpack.c.b16 %v8533_v51, %v8534_v23  ;;  %v2147_v51 = vunpack.c.l.bf16 %v2019_v7  ;;  %v8540_v23 = vld [vmem:[#allocation64_spill] sm:$0xff]  ;;  %v7411_v7 = vunpack.c.l.bf16 %v8545_v35 }
 0x35f   : > { %v2705_v34 = vunpack.c.l.b16 %v2463_v49  ;;  %v7387_v49 = vunpack.c.l.bf16 %v8536_v47 }
 0x360   : > { %v1928_v20 = vpop.f32.mrf.mxu0  ;;  %8546 = vst [vmem:[#allocation80_spill] sm:$0xff] %v7411_v7 }
 0x361   : > { %v2021_v26 = vpack.c.bf16 %v1928_v20, %v1928_v20  ;;  %8537 = vst [vmem:[#allocation77_spill] sm:$0xff] %v7387_v49  ;;  %v7392_v52 = vpack.c.b16 %v2705_v34, %v2704_v18 }
 0x363   : > { %v2149_v61 = vunpack.c.l.bf16 %v2021_v26  ;;  %v8538_v26 = vld [vmem:[#allocation72_spill] sm:$0xff] }
 0x364   : > { %v7397_v14 = vunpack.c.l.bf16 %v8538_v26 }
 0x365   : > { %v2213_v17 = vadd.f32 %v2149_v61, %v7372_v44  ;;  %v2211_v61 = vadd.f32 %v2147_v51, %v7387_v49 }
 0x366   : > { %8539 = vst [vmem:[#allocation76_spill] sm:$0xff] %v7397_v14 }
 0x367   : > { %v2403_v35 = vmax.f32 %v2211_v61, 0.0 }
 0x368   : > { %v1931_v29 = vpop.f32.mrf.mxu0 }
 0x369   : > { %v2022_v46 = vpack.c.bf16 %v1931_v29, %v1931_v29  ;;  %v2702_v29 = vunpack.c.l.b16 %v2460_v30  ;;  %v8541_v30 = vld [vmem:[#allocation74_spill] sm:$0xff] }
 0x36a   : > { %v7403_v0 = vunpack.c.l.bf16 %v8541_v30  ;;  %v2405_v30 = vmax.f32 %v2213_v17, 0.0 }
 0x36b   : > { %v2150_v20 = vunpack.c.l.bf16 %v2022_v46  ;;  %1970 = vmatmul.bf16.gmra.mxu0 %v8535_v37  ;;  %v2017_v46 = vpack.c.bf16 %v7320_v63, %v7320_v63  ;;  %v2212_v37 = vadd.f32 %v2148_v55, %v7379_v59  ;;  %v7406_v63 = vunpack.c.l.bf16 %v8543_v9  ;;  %v7417_v9 = vpop.f32.mrf.mxu1 }
 0x36c   : > { %8542 = vst [vmem:[#allocation91_spill] sm:$0xff] %v7403_v0  ;;  %v7408_v26 = vpack.c.b16 %v2703_v22, %v2702_v29  ;;  %v2210_v55 = vadd.f32 %v2146_v56, %v7397_v14 }
 0x36d   : > { %v2214_v58 = vadd.f32 %v2150_v20, %v7369_v2  ;;  %v2144_v20 = vunpack.c.l.bf16 %v2016_v4  ;;  %8544 = vst [vmem:[#allocation90_spill] sm:$0xff] %v7406_v63  ;;  %v2145_v2 = vunpack.c.l.bf16 %v2017_v46  ;;  %v2404_v59 = vmax.f32 %v2212_v37, 0.0 }
 0x36e   : > { %2666 = vmatmul.bf16.gmra.mxu2 %v8540_v23  ;;  %v2402_v22 = vmax.f32 %v2210_v55, 0.0  ;;  %v2469_v46 = vpack.c.bf16 %v2405_v30, %v2405_v30  ;;  %v8549_v30 = vld [vmem:[#allocation69_spill] sm:$0xff] }
 0x36f   : > { %v2406_v34 = vmax.f32 %v2214_v58, 0.0  ;;  %v2208_v4 = vadd.f32 %v2144_v20, %v7403_v0  ;;  %v2209_v29 = vadd.f32 %v2145_v2, %v7411_v7  ;;  %v2468_v23 = vpack.c.bf16 %v2404_v59, %v2404_v59 }
 0x370   : > { %v1933_v18 = vpop.f32.mrf.mxu0  ;;  %v2466_v49 = vpack.c.bf16 %v2402_v22, %v2402_v22  ;;  %v2467_v20 = vpack.c.bf16 %v2403_v35, %v2403_v35 }
 0x371   : > { %v2023_v47 = vpack.c.bf16 %v1933_v18, %v1933_v18  ;;  %v2470_v58 = vpack.c.bf16 %v2406_v34, %v2406_v34  ;;  %v2400_v14 = vmax.f32 %v2208_v4, 0.0  ;;  %v8547_v34 = vld [vmem:[#allocation41_spill] sm:$0xff] }
 0x372   : > { %v7421_v0 = vunpack.c.l.bf16 %v8547_v34  ;;  %v2709_v4 = vunpack.c.l.b16 %v2467_v20 }
 0x373   : > { %v2151_v44 = vunpack.c.l.bf16 %v2023_v47  ;;  %v2712_v51 = vunpack.c.l.b16 %v2470_v58  ;;  %v2401_v47 = vmax.f32 %v2209_v29, 0.0  ;;  %v2464_v61 = vpack.c.bf16 %v2400_v14, %v2400_v14  ;;  %v7425_v29 = vpop.f32.mrf.mxu1 }
 0x374   : > { %8548 = vst [vmem:[#allocation79_spill] sm:$0xff] %v7421_v0 }
 0x375   : > { %v2215_v18 = vadd.f32 %v2151_v44, %v7406_v63  ;;  %v2710_v44 = vunpack.c.l.b16 %v2468_v23  ;;  %v2711_v63 = vunpack.c.l.b16 %v2469_v46  ;;  %v2465_v59 = vpack.c.bf16 %v2401_v47, %v2401_v47  ;;  %v8550_v23 = vld [vmem:[#allocation42_spill] sm:$0xff] }
 0x376   : > { %v7428_v46 = vunpack.c.l.bf16 %v8550_v23 }
 0x377   : > { %v2407_v5 = vmax.f32 %v2215_v18, 0.0  ;;  %v2708_v18 = vunpack.c.l.b16 %v2466_v49  ;;  %v2720_v58 = vpack.c.b16 %v2711_v63, %v2710_v44 }
 0x378   : > { %v1936_v56 = vpop.f32.mrf.mxu0  ;;  %8551 = vst [vmem:[#allocation67_spill] sm:$0xff] %v7428_v46 }
 0x379   : > { %v2471_v37 = vpack.c.bf16 %v2407_v5, %v2407_v5  ;;  %v2024_v17 = vpack.c.bf16 %v1936_v56, %v1936_v56  ;;  %v2706_v56 = vunpack.c.l.b16 %v2464_v61  ;;  %v2719_v49 = vpack.c.b16 %v2709_v4, %v2708_v18  ;;  %v8552_v61 = vld [vmem:[#allocation39_spill] sm:$0xff]  ;;  %v8554_v4 = vld [vmem:[#allocation78_spill] sm:$0xff] }
 0x37b   : > { %v2713_v39 = vunpack.c.l.b16 %v2471_v37  ;;  %v2152_v2 = vunpack.c.l.bf16 %v2024_v17 }
 0x37d   : > { %v2721_v55 = vpack.c.b16 %v2713_v39, %v2712_v51  ;;  %v2216_v5 = vadd.f32 %v2152_v2, %v7421_v0  ;;  %v2707_v39 = vunpack.c.l.b16 %v2465_v59  ;;  %v2552_v2 = vpop.f32.mrf.mxu1  ;;  %v7432_v59 = vunpack.c.l.bf16 %v8552_v61 }
 0x37e   : > { %2671 = vmatmul.bf16.gmra.mxu2 %v8549_v30 }
 0x37f   : > { %2730 = vmatpush.bf16.msra.mxu1 %v2721_v55  ;;  %5972 = vmatpush.bf16.msra.mxu3 %v2721_v55  ;;  %v2408_v14 = vmax.f32 %v2216_v5, 0.0  ;;  %v2718_v63 = vpack.c.b16 %v2707_v39, %v2706_v56  ;;  %8553 = vst [vmem:[#allocation71_spill] sm:$0xff] %v7432_v59  ;;  %v8555_v56 = vld [vmem:[#allocation40_spill] sm:$0xff] }
 0x380   : > { %v1938_v22 = vpop.f32.mrf.mxu0  ;;  %v7441_v39 = vunpack.c.l.bf16 %v8555_v56 }
 0x381   : > { %v2025_v35 = vpack.c.bf16 %v1938_v22, %v1938_v22  ;;  %v2472_v17 = vpack.c.bf16 %v2408_v14, %v2408_v14 }
 0x382   : > { %8556 = vst [vmem:[#allocation70_spill] sm:$0xff] %v7441_v39 }
 0x383   : > { %v2153_v51 = vunpack.c.l.bf16 %v2025_v35  ;;  %2731 = vmatpush.bf16.msra.mxu1 %v2720_v58  ;;  %5973 = vmatpush.bf16.msra.mxu3 %v2720_v58  ;;  %v2795_v55 = vunpack.c.l.b16 %v2472_v17  ;;  %v2877_v17 = vpack.c.bf16 %v7417_v9, %v7417_v9 }
 0x385   : > { %v2217_v37 = vadd.f32 %v2153_v51, %v7428_v46 }
 0x387   : > { %v2409_v47 = vmax.f32 %v2217_v37, 0.0  ;;  %2732 = vmatpush.bf16.msra.mxu1 %v2719_v49  ;;  %5974 = vmatpush.bf16.msra.mxu3 %v2719_v49  ;;  %v7445_v49 = vpop.f32.mrf.mxu1  ;;  %v2876_v37 = vpack.c.bf16 %v7384_v24, %v7384_v24 }
 0x388   : > { %v1941_v20 = vpop.f32.mrf.mxu0 }
 0x389   : > { %v2473_v34 = vpack.c.bf16 %v2409_v47, %v2409_v47  ;;  %v2026_v44 = vpack.c.bf16 %v1941_v20, %v1941_v20  ;;  %v3004_v20 = vunpack.c.l.b16 %v2876_v37  ;;  %v8560_v37 = vld [vmem:[#allocation38_spill] sm:$0xff] }
 0x38b   : > { %v2796_v22 = vunpack.c.l.b16 %v2473_v34  ;;  %v2154_v5 = vunpack.c.l.bf16 %v2026_v44  ;;  %2733 = vmatpush.bf16.msra.mxu1 %v2718_v63  ;;  %5975 = vmatpush.bf16.msra.mxu3 %v2718_v63  ;;  %v3005_v34 = vunpack.c.l.b16 %v2877_v17  ;;  %v7465_v17 = vunpack.c.l.bf16 %v8560_v37 }
 0x38d   : > { %v7434_v18 = vpack.c.b16 %v2796_v22, %v2795_v55  ;;  %v2218_v58 = vadd.f32 %v2154_v5, %v7432_v59  ;;  %v8557_v5 = vld [vmem:[#allocation37_spill] sm:$0xff]  ;;  %v3068_v9 = vpack.c.b16 %v3005_v34, %v3004_v20  ;;  %8561 = vst [vmem:[#allocation93_spill] sm:$0xff] %v7465_v17  ;;  %v2879_v20 = vpack.c.bf16 %v2552_v2, %v2552_v2 }
 0x38e   : > { %2676 = vmatmul.bf16.gmra.mxu2 %v8554_v4  ;;  %v7455_v24 = vunpack.c.l.bf16 %v8557_v5 }
 0x38f   : > { %2734 = vmatpush.bf16.msra.mxu1 %v7392_v52  ;;  %5976 = vmatpush.bf16.msra.mxu3 %v7392_v52  ;;  %v2410_v14 = vmax.f32 %v2218_v58, 0.0 }
 0x390   : > { %v1943_v35 = vpop.f32.mrf.mxu0  ;;  %8558 = vst [vmem:[#allocation94_spill] sm:$0xff] %v7455_v24 }
 0x391   : > { %v2027_v23 = vpack.c.bf16 %v1943_v35, %v1943_v35  ;;  %v2474_v47 = vpack.c.bf16 %v2410_v14, %v2410_v14  ;;  %v2557_v35 = vpop.f32.mrf.mxu1 }
 0x393   : > { %v2155_v51 = vunpack.c.l.bf16 %v2027_v23  ;;  %2735 = vmatpush.bf16.msra.mxu1 %v7408_v26  ;;  %5977 = vmatpush.bf16.msra.mxu3 %v7408_v26  ;;  %v2797_v22 = vunpack.c.l.b16 %v2474_v47 }
 0x395   : > { %v2219_v52 = vadd.f32 %v2155_v51, %v7441_v39 }
 0x397   : > { %v2411_v63 = vmax.f32 %v2219_v52, 0.0  ;;  %2736 = vmatpush.bf16.msra.mxu1 %v7366_v16  ;;  %5978 = vmatpush.bf16.msra.mxu3 %v7366_v16  ;;  %v8559_v16 = vld [vmem:[#allocation86_spill] sm:$0xff] }
 0x398   : > { %v1946_v44 = vpop.f32.mrf.mxu0 }
 0x399   : > { %v2475_v26 = vpack.c.bf16 %v2411_v63, %v2411_v63  ;;  %v2028_v55 = vpack.c.bf16 %v1946_v44, %v1946_v44 }
 0x39b   : > { %v2798_v61 = vunpack.c.l.b16 %v2475_v26  ;;  %v2156_v58 = vunpack.c.l.bf16 %v2028_v55  ;;  %2737 = vmatpush.bf16.msra.mxu1 %v7340_v53  ;;  %5979 = vmatpush.bf16.msra.mxu3 %v7340_v53  ;;  %v2878_v53 = vpack.c.bf16 %v7425_v29, %v7425_v29  ;;  %v2560_v55 = vpop.f32.mrf.mxu1 }
 0x39d   : > { %v7459_v23 = vpack.c.b16 %v2798_v61, %v2797_v22  ;;  %v2220_v56 = vadd.f32 %v2156_v58, %v7455_v24  ;;  %v3006_v22 = vunpack.c.l.b16 %v2878_v53  ;;  %v3007_v61 = vunpack.c.l.b16 %v2879_v20 }
 0x39e   : > { %3140 = vmatmul.bf16.vlgmr.msrb.gmra.mxu2 %v3068_v9  ;;  %2738 = vmatmul.bf16.vlgmr.msra.gmra.mxu1 %v8559_v16 }
 0x39f   : > { %2768 = vmatmul.bf16.vlgmr.msra.gmra.mxu3 %v7116_v28  ;;  %v2412_v47 = vmax.f32 %v2220_v56, 0.0 }
 0x3a0   : > { %v1948_v14 = vpop.f32.mrf.mxu0 }
 0x3a1   : > { %v2029_v51 = vpack.c.bf16 %v1948_v14, %v1948_v14  ;;  %v2642_v52 = vpop.f32.mrf.mxu2  ;;  %v2476_v44 = vpack.c.bf16 %v2412_v47, %v2412_v47  ;;  %v3069_v47 = vpack.c.b16 %v3007_v61, %v3006_v22  ;;  %v2880_v61 = vpack.c.bf16 %v7445_v49, %v7445_v49 }
 0x3a2   : > { %v2892_v5 = vpack.c.bf16 %v2642_v52, %v2642_v52  ;;  %v8564_v52 = vld [vmem:[#allocation89_spill] sm:$0xff] }
 0x3a3   : > { %v2157_v63 = vunpack.c.l.bf16 %v2029_v51  ;;  %v2799_v0 = vunpack.c.l.b16 %v2476_v44  ;;  %v8562_v51 = vld [vmem:[#allocation35_spill] sm:$0xff] }
 0x3a4   : > { %v7471_v39 = vunpack.c.l.bf16 %v8562_v51  ;;  %v7473_v2 = vunpack.c.l.b16 %v2892_v5 }
 0x3a5   : > { %v2221_v34 = vadd.f32 %v2157_v63, %v7465_v17 }
 0x3a6   : > { %8563 = vst [vmem:[#allocation73_spill] sm:$0xff] %v7471_v39 }
 0x3a7   : > { %v2413_v26 = vmax.f32 %v2221_v34, 0.0 }
 0x3a8   : > { %v1951_v58 = vpop.f32.mrf.mxu0 }
 0x3a9   : > { %v2477_v9 = vpack.c.bf16 %v2413_v26, %v2413_v26  ;;  %v2030_v14 = vpack.c.bf16 %v1951_v58, %v1951_v58  ;;  %v2644_v37 = vpop.f32.mrf.mxu2  ;;  %v8565_v58 = vld [vmem:[#allocation36_spill] sm:$0xff] }
 0x3aa   : > { %v2893_v46 = vpack.c.bf16 %v2644_v37, %v2644_v37  ;;  %v7485_v5 = vunpack.c.l.bf16 %v8565_v58 }
 0x3ab   : > { %v2800_v56 = vunpack.c.l.b16 %v2477_v9  ;;  %v2158_v29 = vunpack.c.l.bf16 %v2030_v14  ;;  %v2562_v9 = vpop.f32.mrf.mxu1  ;;  %v2881_v14 = vpack.c.bf16 %v2557_v35, %v2557_v35 }
 0x3ac   : > { %v7475_v63 = vunpack.c.l.b16 %v2893_v46  ;;  %8566 = vst [vmem:[#allocation72_spill] sm:$0xff] %v7485_v5 }
 0x3ad   : > { %v7477_v34 = vpack.c.b16 %v2800_v56, %v2799_v0  ;;  %v2222_v20 = vadd.f32 %v2158_v29, %v7471_v39  ;;  %v3008_v29 = vunpack.c.l.b16 %v2880_v61 }
 0x3ae   : > { %3145 = vmatmul.bf16.gmra.mxu2 %v3069_v47  ;;  %2743 = vmatmul.bf16.gmra.mxu1 %v8564_v52  ;;  %v3009_v47 = vunpack.c.l.b16 %v2881_v14  ;;  %v2882_v14 = vpack.c.bf16 %v2560_v55, %v2560_v55 }
 0x3af   : > { %2773 = vmatmul.bf16.gmra.mxu3 %v7129_v62  ;;  %v2414_v22 = vmax.f32 %v2222_v20, 0.0 }
 0x3b0   : > { %v1953_v44 = vpop.f32.mrf.mxu0  ;;  %v3070_v49 = vpack.c.b16 %v3009_v47, %v3008_v29 }
 0x3b1   : > { %v2031_v26 = vpack.c.bf16 %v1953_v44, %v1953_v44  ;;  %v2647_v46 = vpop.f32.mrf.mxu2  ;;  %v2478_v56 = vpack.c.bf16 %v2414_v22, %v2414_v22  ;;  %v8567_v22 = vld [vmem:[#allocation92_spill] sm:$0xff] }
 0x3b2   : > { %v2894_v53 = vpack.c.bf16 %v2647_v46, %v2647_v46 }
 0x3b3   : > { %v2159_v0 = vunpack.c.l.bf16 %v2031_v26  ;;  %v2801_v24 = vunpack.c.l.b16 %v2478_v56  ;;  %v2565_v20 = vpop.f32.mrf.mxu1 }
 0x3b4   : > { %v7492_v26 = vunpack.c.l.b16 %v2894_v53 }
 0x3b5   : > { %v2223_v37 = vadd.f32 %v2159_v0, %v7485_v5 }
 0x3b7   : > { %v2415_v51 = vmax.f32 %v2223_v37, 0.0  ;;  %v2883_v37 = vpack.c.bf16 %v2562_v9, %v2562_v9 }
 0x3b8   : > { %v7490_v59 = vpop.f32.mrf.mxu0 }
 0x3b9   : > { %v2479_v44 = vpack.c.bf16 %v2415_v51, %v2415_v51  ;;  %v2649_v58 = vpop.f32.mrf.mxu2  ;;  %v3010_v51 = vunpack.c.l.b16 %v2882_v14  ;;  %v3011_v53 = vunpack.c.l.b16 %v2883_v37  ;;  %v2884_v37 = vpack.c.bf16 %v2565_v20, %v2565_v20 }
 0x3ba   : > { %v2895_v17 = vpack.c.bf16 %v2649_v58, %v2649_v58 }
 0x3bb   : > { %v2802_v39 = vunpack.c.l.b16 %v2479_v44  ;;  %v2567_v56 = vpop.f32.mrf.mxu1  ;;  %v3071_v58 = vpack.c.b16 %v3011_v53, %v3010_v51  ;;  %v3012_v5 = vunpack.c.l.b16 %v2884_v37 }
 0x3bc   : > { %v7494_v62 = vunpack.c.l.b16 %v2895_v17 }
 0x3bd   : > { %v7496_v35 = vpack.c.b16 %v2802_v39, %v2801_v24 }
 0x3be   : > { %3150 = vmatmul.bf16.gmra.mxu2 %v3070_v49  ;;  %2748 = vmatmul.bf16.gmra.mxu1 %v8567_v22  ;;  %v8568_v49 = vld [vmem:[#allocation95_spill] sm:$0xff] }
 0x3c0   : > { %v7501_v0 = vpop.f32.mrf.mxu0 }
 0x3c1   : > { %v2652_v61 = vpop.f32.mrf.mxu2 }
 0x3c2   : > { %v2896_v44 = vpack.c.bf16 %v2652_v61, %v2652_v61  ;;  %v2885_v61 = vpack.c.bf16 %v2567_v56, %v2567_v56 }
 0x3c3   : > { %v2570_v9 = vpop.f32.mrf.mxu1 }
 0x3c4   : > { %v7505_v24 = vunpack.c.l.b16 %v2896_v44  ;;  %v3013_v28 = vunpack.c.l.b16 %v2885_v61  ;;  %v2886_v61 = vpack.c.bf16 %v2570_v9, %v2570_v9 }
 0x3c6   : > { %v3072_v53 = vpack.c.b16 %v3013_v28, %v3012_v5  ;;  %v3014_v55 = vunpack.c.l.b16 %v2886_v61  ;;  %v8569_v5 = vld [vmem:[#allocation27_spill] sm:$0xff] }
 0x3c8   : > { %v7503_v17 = vpop.f32.mrf.mxu0 }
 0x3c9   : > { %v2654_v29 = vpop.f32.mrf.mxu2 }
 0x3ca   : > { %v2897_v39 = vpack.c.bf16 %v2654_v29, %v2654_v29 }
 0x3cb   : > { %v2572_v52 = vpop.f32.mrf.mxu1 }
 0x3cc   : > { %v7507_v47 = vunpack.c.l.b16 %v2897_v39 }
 0x3ce   : > { %3155 = vmatmul.bf16.gmra.mxu2 %v3071_v58  ;;  %2753 = vmatmul.bf16.gmra.mxu1 %v8568_v49 }
 0x3d0   : > { %v1963_v46 = vpop.f32.mrf.mxu0 }
 0x3d1   : > { %v2657_v14 = vpop.f32.mrf.mxu2  ;;  %v2035_v9 = vpack.c.bf16 %v1963_v46, %v1963_v46 }
 0x3d2   : > { %v2898_v22 = vpack.c.bf16 %v2657_v14, %v2657_v14  ;;  %v2887_v14 = vpack.c.bf16 %v2572_v52, %v2572_v52  ;;  %v8571_v52 = vld [vmem:[#allocation30_spill] sm:$0xff] }
 0x3d3   : > { %v2575_v37 = vpop.f32.mrf.mxu1  ;;  %v7527_v61 = vunpack.c.l.bf16 %v8571_v52 }
 0x3d4   : > { %v7512_v16 = vunpack.c.l.b16 %v2898_v22  ;;  %v3015_v49 = vunpack.c.l.b16 %v2887_v14 }
 0x3d5   : > { %8572 = vst [vmem:[#allocation68_spill] sm:$0xff] %v7527_v61 }
 0x3d6   : > { %v3073_v54 = vpack.c.b16 %v3015_v49, %v3014_v55  ;;  %v2033_v49 = vpack.c.bf16 %v7501_v0, %v7501_v0  ;;  %v8576_v55 = vld [vmem:[#allocation32_spill] sm:$0xff] }
 0x3d8   : > { %v1966_v29 = vpop.f32.mrf.mxu0 }
 0x3d9   : > { %v2659_v44 = vpop.f32.mrf.mxu2  ;;  %v2036_v28 = vpack.c.bf16 %v1966_v29, %v1966_v29  ;;  %v8578_v29 = vld [vmem:[#allocation28_spill] sm:$0xff] }
 0x3da   : > { %v2899_v39 = vpack.c.bf16 %v2659_v44, %v2659_v44 }
 0x3db   : > { %v2577_v14 = vpop.f32.mrf.mxu1 }
 0x3dc   : > { %v7514_v51 = vunpack.c.l.b16 %v2899_v39 }
 0x3de   : > { %3160 = vmatmul.bf16.gmra.mxu2 %v3072_v53  ;;  %2758 = vmatmul.bf16.gmra.mxu1 %v7085_v50  ;;  %v7520_v53 = vunpack.c.l.bf16 %v8569_v5 }
 0x3e0   : > { %v1968_v20 = vpop.f32.mrf.mxu0  ;;  %8570 = vst [vmem:[#allocation74_spill] sm:$0xff] %v7520_v53 }
 0x3e1   : > { %v2662_v56 = vpop.f32.mrf.mxu2  ;;  %v2037_v22 = vpack.c.bf16 %v1968_v20, %v1968_v20  ;;  %v8573_v20 = vld [vmem:[#allocation101_spill] sm:$0xff] }
 0x3e2   : > { %v2900_v4 = vpack.c.bf16 %v2662_v56, %v2662_v56 }
 0x3e3   : > { %v2165_v56 = vunpack.c.l.bf16 %v2037_v22  ;;  %v7541_v22 = vunpack.c.l.bf16 %v8576_v55 }
 0x3e4   : > { %v7522_v57 = vunpack.c.l.b16 %v2900_v4  ;;  %v8574_v4 = vld [vmem:[#allocation29_spill] sm:$0xff] }
 0x3e5   : > { %8577 = vst [vmem:[#allocation41_spill] sm:$0xff] %v7541_v22  ;;  %v2229_v5 = vadd.f32 %v2165_v56, %v7527_v61  ;;  %v2888_v56 = vpack.c.bf16 %v2575_v37, %v2575_v37  ;;  %v2161_v61 = vunpack.c.l.bf16 %v2033_v49 }
 0x3e7   : > { %v2421_v1 = vmax.f32 %v2229_v5, 0.0 }
 0x3e8   : > { %v1971_v44 = vpop.f32.mrf.mxu0 }
 0x3e9   : > { %v2038_v30 = vpack.c.bf16 %v1971_v44, %v1971_v44  ;;  %v2664_v39 = vpop.f32.mrf.mxu2  ;;  %v7535_v44 = vunpack.c.l.bf16 %v8574_v4  ;;  %v8580_v4 = vld [vmem:[#allocation31_spill] sm:$0xff] }
 0x3ea   : > { %v2901_v7 = vpack.c.bf16 %v2664_v39, %v2664_v39  ;;  %v2163_v39 = vunpack.c.l.bf16 %v2035_v9  ;;  %v7554_v9 = vunpack.c.l.bf16 %v8582_v48  ;;  %v3016_v48 = vunpack.c.l.b16 %v2888_v56 }
 0x3eb   : > { %v2166_v50 = vunpack.c.l.bf16 %v2038_v30  ;;  %v2034_v30 = vpack.c.bf16 %v7503_v17, %v7503_v17  ;;  %8575 = vst [vmem:[#allocation75_spill] sm:$0xff] %v7535_v44 }
 0x3ec   : > { %v7524_v58 = vunpack.c.l.b16 %v2901_v7  ;;  %v2164_v7 = vunpack.c.l.bf16 %v2036_v28  ;;  %v2032_v28 = vpack.c.bf16 %v7490_v59, %v7490_v59  ;;  %8583 = vst [vmem:[#allocation40_spill] sm:$0xff] %v7554_v9  ;;  %v8584_v59 = vld [vmem:[#allocation33_spill] sm:$0xff] }
 0x3ed   : > { %v2230_v46 = vadd.f32 %v2166_v50, %v7520_v53  ;;  %v7550_v50 = vunpack.c.l.bf16 %v8580_v4  ;;  %v2162_v53 = vunpack.c.l.bf16 %v2034_v30  ;;  %v7559_v38 = vunpack.c.l.bf16 %v8584_v59 }
 0x3ee   : > { %3165 = vmatmul.bf16.gmra.mxu2 %v3073_v54  ;;  %2763 = vmatmul.bf16.gmra.mxu1 %v8573_v20  ;;  %v7545_v20 = vunpack.c.l.bf16 %v8578_v29  ;;  %v2228_v0 = vadd.f32 %v2164_v7, %v7535_v44  ;;  %v2227_v29 = vadd.f32 %v2163_v39, %v7541_v22  ;;  %v2160_v4 = vunpack.c.l.bf16 %v2032_v28  ;;  %v2580_v44 = vpop.f32.mrf.mxu1 }
 0x3ef   : > { %8581 = vst [vmem:[#allocation39_spill] sm:$0xff] %v7550_v50  ;;  %v2422_v55 = vmax.f32 %v2230_v46, 0.0  ;;  %v2226_v30 = vadd.f32 %v2162_v53, %v7550_v50  ;;  %v2485_v39 = vpack.c.bf16 %v2421_v1, %v2421_v1 }
 0x3f0   : > { %v1973_v54 = vpop.f32.mrf.mxu0  ;;  %8579 = vst [vmem:[#allocation42_spill] sm:$0xff] %v7545_v20  ;;  %v2420_v7 = vmax.f32 %v2228_v0, 0.0  ;;  %v2419_v49 = vmax.f32 %v2227_v29, 0.0 }
 0x3f1   : > { %v2039_v52 = vpack.c.bf16 %v1973_v54, %v1973_v54  ;;  %v2667_v17 = vpop.f32.mrf.mxu2  ;;  %v2889_v54 = vpack.c.bf16 %v2577_v14, %v2577_v14  ;;  %8585 = vst [vmem:[#allocation37_spill] sm:$0xff] %v7559_v38  ;;  %v2486_v46 = vpack.c.bf16 %v2422_v55, %v2422_v55  ;;  %v2225_v14 = vadd.f32 %v2161_v61, %v7554_v9 }
 0x3f2   : > { %v2902_v37 = vpack.c.bf16 %v2667_v17, %v2667_v17  ;;  %v2484_v28 = vpack.c.bf16 %v2420_v7, %v2420_v7  ;;  %v2483_v17 = vpack.c.bf16 %v2419_v49, %v2419_v49 }
 0x3f3   : > { %v2167_v8 = vunpack.c.l.bf16 %v2039_v52  ;;  %v3017_v13 = vunpack.c.l.b16 %v2889_v54  ;;  %v2809_v25 = vunpack.c.l.b16 %v2486_v46  ;;  %v2417_v56 = vmax.f32 %v2225_v14, 0.0 }
 0x3f4   : > { %v7564_v0 = vunpack.c.l.b16 %v2902_v37  ;;  %v2808_v54 = vunpack.c.l.b16 %v2485_v39  ;;  %v2806_v7 = vunpack.c.l.b16 %v2483_v17 }
 0x3f5   : > { %v2231_v10 = vadd.f32 %v2167_v8, %v7545_v20  ;;  %v2224_v8 = vadd.f32 %v2160_v4, %v7559_v38  ;;  %v2418_v20 = vmax.f32 %v2226_v30, 0.0  ;;  %v3074_v55 = vpack.c.b16 %v3017_v13, %v3016_v48 }
 0x3f6   : > { %v2481_v30 = vpack.c.bf16 %v2417_v56, %v2417_v56  ;;  %v2582_v46 = vpop.f32.mrf.mxu1  ;;  %v2890_v13 = vpack.c.bf16 %v2580_v44, %v2580_v44 }
 0x3f7   : > { %v2423_v52 = vmax.f32 %v2231_v10, 0.0  ;;  %v2416_v29 = vmax.f32 %v2224_v8, 0.0  ;;  %v2482_v4 = vpack.c.bf16 %v2418_v20, %v2418_v20  ;;  %v2891_v48 = vpack.c.bf16 %v2582_v46, %v2582_v46 }
 0x3f8   : > { %v2804_v14 = vunpack.c.l.b16 %v2481_v30  ;;  %v3018_v39 = vunpack.c.l.b16 %v2890_v13  ;;  %v8586_v46 = vpack.c.b16 %v7475_v63, %v7473_v2  ;;  %v8590_v2 = vpack.c.b16 %v7494_v62, %v7492_v26  ;;  %v8591_v63 = vld [vmem:[#allocation44_spill] sm:$0xff] }
 0x3f9   : > { %v2487_v5 = vpack.c.bf16 %v2423_v52, %v2423_v52  ;;  %v2669_v22 = vpop.f32.mrf.mxu2  ;;  %v8593_v62 = vld [vmem:[#allocation100_spill] sm:$0xff] }
 0x3fa   : > { %v2903_v59 = vpack.c.bf16 %v2669_v22, %v2669_v22  ;;  %v2807_v22 = vunpack.c.l.b16 %v2484_v28 }
 0x3fb   : > { %v2810_v53 = vunpack.c.l.b16 %v2487_v5  ;;  %v2480_v5 = vpack.c.bf16 %v2416_v29, %v2416_v29 }
 0x3fc   : > { %v7566_v10 = vunpack.c.l.b16 %v2903_v59  ;;  %v2817_v37 = vpack.c.b16 %v2808_v54, %v2807_v22  ;;  %v2805_v59 = vunpack.c.l.b16 %v2482_v4 }
 0x3fd   : > { %v2818_v61 = vpack.c.b16 %v2810_v53, %v2809_v25  ;;  %v2803_v49 = vunpack.c.l.b16 %v2480_v5  ;;  %v3019_v53 = vunpack.c.l.b16 %v2891_v48  ;;  %v8588_v5 = vld [vmem:[#allocation96_spill] sm:$0xff] }
 0x3fe   : > { %3170 = vmatmul.bf16.gmra.mxu2 %v3074_v55  ;;  %v3081_v1 = vpack.c.b16 %v7566_v10, %v7564_v0  ;;  %v2816_v25 = vpack.c.b16 %v2806_v7, %v2805_v59  ;;  %v8606_v10 = vld [vmem:[#allocation59_spill] sm:$0xff] }
 0x3ff   : > { %2827 = vmatpush.bf16.msrb.mxu1 %v2818_v61  ;;  %v2815_v28 = vpack.c.b16 %v2804_v14, %v2803_v49  ;;  %v3075_v54 = vpack.c.b16 %v3019_v53, %v3018_v39 }
 0x401   : > { %v2672_v52 = vpop.f32.mrf.mxu2 }
 0x402   : > { %v2904_v8 = vpack.c.bf16 %v2672_v52, %v2672_v52  ;;  %v8587_v52 = vld [vmem:[#allocation43_spill] sm:$0xff] }
 0x403   : > { %2828 = vmatpush.bf16.msrb.mxu1 %v2817_v37 }
 0x404   : > { %v7570_v56 = vunpack.c.l.b16 %v2904_v8 }
 0x407   : > { %2829 = vmatpush.bf16.msrb.mxu1 %v2816_v25  ;;  %v8589_v25 = vld [vmem:[#allocation97_spill] sm:$0xff] }
 0x409   : > { %v2674_v20 = vpop.f32.mrf.mxu2 }
 0x40a   : > { %v2905_v55 = vpack.c.bf16 %v2674_v20, %v2674_v20 }
 0x40b   : > { %2830 = vmatpush.bf16.msrb.mxu1 %v2815_v28 }
 0x40c   : > { %v7572_v17 = vunpack.c.l.b16 %v2905_v55 }
 0x40e   : > { %3175 = vmatmul.bf16.gmra.mxu2 %v3075_v54  ;;  %v3082_v44 = vpack.c.b16 %v7572_v17, %v7570_v56 }
 0x40f   : > { %2831 = vmatpush.bf16.msrb.mxu1 %v7496_v35 }
 0x411   : > { %v2677_v61 = vpop.f32.mrf.mxu2 }
 0x412   : > { %v2906_v29 = vpack.c.bf16 %v2677_v61, %v2677_v61 }
 0x413   : > { %2832 = vmatpush.bf16.msrb.mxu1 %v7477_v34 }
 0x414   : > { %v7580_v30 = vunpack.c.l.b16 %v2906_v29 }
 0x417   : > { %2833 = vmatpush.bf16.msrb.mxu1 %v7459_v23 }
 0x419   : > { %v2679_v4 = vpop.f32.mrf.mxu2 }
 0x41a   : > { %v2907_v22 = vpack.c.bf16 %v2679_v4, %v2679_v4  ;;  %v8592_v4 = vld [vmem:[#allocation99_spill] sm:$0xff] }
 0x41b   : > { %2834 = vmatpush.bf16.msrb.mxu1 %v7434_v18 }
 0x41c   : > { %v7582_v7 = vunpack.c.l.b16 %v2907_v22 }
 0x41e   : > { %3180 = vmatmul.bf16.gmra.mxu2 %v8586_v46  ;;  %v3083_v35 = vpack.c.b16 %v7582_v7, %v7580_v30  ;;  %2835 = vmatmul.bf16.vlgmr.msrb.gmra.mxu1 %v8587_v52 }
 0x421   : > { %v3141_v34 = vpop.f32.mrf.mxu2 }
 0x422   : > { %v3301_v23 = vpack.c.bf16 %v3141_v34, %v3141_v34 }
 0x424   : > { %v3365_v37 = vunpack.c.l.bf16 %v3301_v23 }
 0x426   : > { %v3429_v59 = vadd.f32 %v3365_v37, %v8588_v5 }
 0x428   : > { %v3621_v48 = vmax.f32 %v3429_v59, 0.0  ;;  %v8594_v59 = vpack.c.b16 %v7507_v47, %v7505_v24  ;;  %v8597_v24 = vld [vmem:[#allocation103_spill] sm:$0xff] }
 0x429   : > { %v3143_v13 = vpop.f32.mrf.mxu2 }
 0x42a   : > { %v3302_v18 = vpack.c.bf16 %v3143_v13, %v3143_v13  ;;  %v3685_v53 = vpack.c.bf16 %v3621_v48, %v3621_v48  ;;  %v8595_v13 = vld [vmem:[#allocation45_spill] sm:$0xff] }
 0x42c   : > { %v3366_v14 = vunpack.c.l.bf16 %v3302_v18  ;;  %v3765_v54 = vunpack.c.l.b16 %v3685_v53 }
 0x42e   : > { %v3430_v49 = vadd.f32 %v3366_v14, %v8589_v25  ;;  %3185 = vmatmul.bf16.gmra.mxu2 %v8590_v2  ;;  %2840 = vmatmul.bf16.gmra.mxu1 %v8591_v63 }
 0x430   : > { %v3622_v39 = vmax.f32 %v3430_v49, 0.0 }
 0x431   : > { %v3146_v8 = vpop.f32.mrf.mxu2 }
 0x432   : > { %v3303_v20 = vpack.c.bf16 %v3146_v8, %v3146_v8  ;;  %v3686_v28 = vpack.c.bf16 %v3622_v39, %v3622_v39 }
 0x434   : > { %v3367_v55 = vunpack.c.l.bf16 %v3303_v20  ;;  %v3766_v61 = vunpack.c.l.b16 %v3686_v28  ;;  %v8596_v28 = vld [vmem:[#allocation102_spill] sm:$0xff] }
 0x436   : > { %v7596_v29 = vpack.c.b16 %v3766_v61, %v3765_v54  ;;  %v3431_v22 = vadd.f32 %v3367_v55, %v8592_v4 }
 0x438   : > { %v3623_v23 = vmax.f32 %v3431_v22, 0.0 }
 0x439   : > { %v3148_v46 = vpop.f32.mrf.mxu2 }
 0x43a   : > { %v3304_v34 = vpack.c.bf16 %v3148_v46, %v3148_v46  ;;  %v3687_v48 = vpack.c.bf16 %v3623_v23, %v3623_v23  ;;  %v8599_v23 = vld [vmem:[#allocation47_spill] sm:$0xff] }
 0x43c   : > { %v3368_v37 = vunpack.c.l.bf16 %v3304_v34  ;;  %v3767_v53 = vunpack.c.l.b16 %v3687_v48  ;;  %v8598_v34 = vpack.c.b16 %v7514_v51, %v7512_v16  ;;  %v8601_v16 = vld [vmem:[#allocation106_spill] sm:$0xff] }
 0x43e   : > { %v3432_v26 = vadd.f32 %v3368_v37, %v8593_v62  ;;  %3190 = vmatmul.bf16.gmra.mxu2 %v8594_v59  ;;  %2845 = vmatmul.bf16.gmra.mxu1 %v8595_v13 }
 0x440   : > { %v3624_v18 = vmax.f32 %v3432_v26, 0.0 }
 0x441   : > { %v3151_v14 = vpop.f32.mrf.mxu2 }
 0x442   : > { %v3305_v49 = vpack.c.bf16 %v3151_v14, %v3151_v14  ;;  %v3688_v2 = vpack.c.bf16 %v3624_v18, %v3624_v18 }
 0x444   : > { %v3369_v39 = vunpack.c.l.bf16 %v3305_v49  ;;  %v3768_v8 = vunpack.c.l.b16 %v3688_v2 }
 0x446   : > { %v7604_v20 = vpack.c.b16 %v3768_v8, %v3767_v53  ;;  %v3433_v55 = vadd.f32 %v3369_v39, %v8596_v28  ;;  %v8600_v53 = vld [vmem:[#allocation105_spill] sm:$0xff] }
 0x448   : > { %v3625_v22 = vmax.f32 %v3433_v55, 0.0 }
 0x449   : > { %v3153_v54 = vpop.f32.mrf.mxu2 }
 0x44a   : > { %v3306_v61 = vpack.c.bf16 %v3153_v54, %v3153_v54  ;;  %v3689_v26 = vpack.c.bf16 %v3625_v22, %v3625_v22  ;;  %v8603_v22 = vld [vmem:[#allocation53_spill] sm:$0xff] }
 0x44c   : > { %v3370_v46 = vunpack.c.l.bf16 %v3306_v61  ;;  %v3769_v49 = vunpack.c.l.b16 %v3689_v26 }
 0x44e   : > { %v3434_v47 = vadd.f32 %v3370_v46, %v8597_v24  ;;  %3195 = vmatmul.bf16.gmra.mxu2 %v8598_v34  ;;  %2850 = vmatmul.bf16.gmra.mxu1 %v8599_v23 }
 0x450   : > { %v3626_v37 = vmax.f32 %v3434_v47, 0.0  ;;  %v8602_v47 = vpack.c.b16 %v7524_v58, %v7522_v57 }
 0x451   : > { %v3156_v59 = vpop.f32.mrf.mxu2 }
 0x452   : > { %v3307_v18 = vpack.c.bf16 %v3156_v59, %v3156_v59  ;;  %v3690_v48 = vpack.c.bf16 %v3626_v37, %v3626_v37 }
 0x454   : > { %v3371_v14 = vunpack.c.l.bf16 %v3307_v18  ;;  %v3770_v2 = vunpack.c.l.b16 %v3690_v48 }
 0x456   : > { %v7612_v39 = vpack.c.b16 %v3770_v2, %v3769_v49  ;;  %v3435_v8 = vadd.f32 %v3371_v14, %v8600_v53  ;;  %v8604_v2 = vld [vmem:[#allocation55_spill] sm:$0xff] }
 0x458   : > { %v3627_v61 = vmax.f32 %v3435_v8, 0.0  ;;  %v2739_v8 = vpop.f32.mrf.mxu1 }
 0x459   : > { %v3158_v55 = vpop.f32.mrf.mxu2 }
 0x45a   : > { %v3308_v54 = vpack.c.bf16 %v3158_v55, %v3158_v55  ;;  %v3691_v37 = vpack.c.bf16 %v3627_v61, %v3627_v61 }
 0x45c   : > { %v3372_v46 = vunpack.c.l.bf16 %v3308_v54  ;;  %v3771_v18 = vunpack.c.l.b16 %v3691_v37  ;;  %v8605_v54 = vld [vmem:[#allocation57_spill] sm:$0xff] }
 0x45e   : > { %v3436_v51 = vadd.f32 %v3372_v46, %v8601_v16  ;;  %3200 = vmatmul.bf16.gmra.mxu2 %v8602_v47  ;;  %2855 = vmatmul.bf16.gmra.mxu1 %v8603_v22 }
 0x460   : > { %v3628_v34 = vmax.f32 %v3436_v51, 0.0  ;;  %v2741_v55 = vpop.f32.mrf.mxu1 }
 0x461   : > { %v3161_v26 = vpop.f32.mrf.mxu2 }
 0x462   : > { %v3692_v59 = vpack.c.bf16 %v3628_v34, %v3628_v34 }
 0x464   : > { %v3772_v48 = vunpack.c.l.b16 %v3692_v59  ;;  %v2908_v59 = vpack.c.bf16 %v2739_v8, %v2739_v8  ;;  %v8607_v8 = vld [vmem:[#allocation110_spill] sm:$0xff] }
 0x466   : > { %v7620_v49 = vpack.c.b16 %v3772_v48, %v3771_v18  ;;  %v2909_v18 = vpack.c.bf16 %v2741_v55, %v2741_v55  ;;  %v3036_v53 = vunpack.c.l.b16 %v2908_v59 }
 0x468   : > { %v2744_v46 = vpop.f32.mrf.mxu1  ;;  %v3037_v24 = vunpack.c.l.b16 %v2909_v18 }
 0x469   : > { %v3163_v14 = vpop.f32.mrf.mxu2 }
 0x46a   : > { %v3310_v30 = vpack.c.bf16 %v3163_v14, %v3163_v14 }
 0x46e   : > { %3205 = vmatmul.bf16.gmra.mxu2 %v3081_v1  ;;  %2860 = vmatmul.bf16.gmra.mxu1 %v8604_v2 }
 0x470   : > { %v2746_v0 = vpop.f32.mrf.mxu1 }
 0x471   : > { %v3166_v57 = vpop.f32.mrf.mxu2 }
 0x472   : > { %v3311_v48 = vpack.c.bf16 %v3166_v57, %v3166_v57  ;;  %v3084_v57 = vpack.c.b16 %v3037_v24, %v3036_v53 }
 0x479   : > { %v3168_v58 = vpop.f32.mrf.mxu2 }
 0x47a   : > { %v3312_v17 = vpack.c.bf16 %v3168_v58, %v3168_v58 }
 0x47e   : > { %3210 = vmatmul.bf16.gmra.mxu2 %v3082_v44  ;;  %2865 = vmatmul.bf16.gmra.mxu1 %v8605_v54 }
 0x481   : > { %v3171_v61 = vpop.f32.mrf.mxu2 }
 0x482   : > { %v3313_v37 = vpack.c.bf16 %v3171_v61, %v3171_v61  ;;  %v7636_v61 = vpop.f32.mrf.mxu1 }
 0x484   : > { %v3377_v16 = vunpack.c.l.bf16 %v3313_v37  ;;  %v8608_v37 = vld [vmem:[#allocation112_spill] sm:$0xff] }
 0x486   : > { %v3441_v55 = vadd.f32 %v3377_v16, %v8607_v8 }
 0x489   : > { %v3173_v51 = vpop.f32.mrf.mxu2 }
 0x48a   : > { %v3314_v47 = vpack.c.bf16 %v3173_v51, %v3173_v51  ;;  %v3309_v51 = vpack.c.bf16 %v3161_v26, %v3161_v26 }
 0x48c   : > { %v3378_v44 = vunpack.c.l.bf16 %v3314_v47 }
 0x48e   : > { %3215 = vmatmul.bf16.gmra.mxu2 %v3083_v35  ;;  %2870 = vmatmul.bf16.gmra.mxu1 %v8606_v10  ;;  %v3376_v35 = vunpack.c.l.bf16 %v3312_v17  ;;  %v3442_v10 = vadd.f32 %v3378_v44, %v7146_v15  ;;  %v8609_v17 = vld [vmem:[#allocation113_spill] sm:$0xff]  ;;  %v8610_v15 = vld [vmem:[#allocation114_spill] sm:$0xff] }
 0x490   : > { %v3440_v59 = vadd.f32 %v3376_v35, %v8608_v37  ;;  %v3634_v14 = vmax.f32 %v3442_v10, 0.0  ;;  %v2910_v35 = vpack.c.bf16 %v2744_v46, %v2744_v46 }
 0x491   : > { %v3176_v1 = vpop.f32.mrf.mxu2 }
 0x492   : > { %v3315_v34 = vpack.c.bf16 %v3176_v1, %v3176_v1  ;;  %v3375_v1 = vunpack.c.l.bf16 %v3311_v48  ;;  %v3632_v24 = vmax.f32 %v3440_v59, 0.0 }
 0x494   : > { %v3379_v56 = vunpack.c.l.bf16 %v3315_v34  ;;  %v3374_v34 = vunpack.c.l.bf16 %v3310_v30  ;;  %v3439_v44 = vadd.f32 %v3375_v1, %v8609_v17  ;;  %v2751_v1 = vpop.f32.mrf.mxu1 }
 0x496   : > { %v3443_v28 = vadd.f32 %v3379_v56, %v7143_v11  ;;  %v3373_v56 = vunpack.c.l.bf16 %v3309_v51  ;;  %v3438_v11 = vadd.f32 %v3374_v34, %v8610_v15  ;;  %v3631_v30 = vmax.f32 %v3439_v44, 0.0 }
 0x497   : > { %v3038_v15 = vunpack.c.l.b16 %v2910_v35 }
 0x498   : > { %v3635_v58 = vmax.f32 %v3443_v28, 0.0  ;;  %v3437_v53 = vadd.f32 %v3373_v56, %v7175_v40  ;;  %v3630_v17 = vmax.f32 %v3438_v11, 0.0  ;;  %v3695_v56 = vpack.c.bf16 %v3631_v30, %v3631_v30 }
 0x499   : > { %v3178_v7 = vpop.f32.mrf.mxu2 }
 0x49a   : > { %v3316_v62 = vpack.c.bf16 %v3178_v7, %v3178_v7  ;;  %v3633_v7 = vmax.f32 %v3441_v55, 0.0  ;;  %v3699_v48 = vpack.c.bf16 %v3635_v58, %v3635_v58  ;;  %v3696_v58 = vpack.c.bf16 %v3632_v24, %v3632_v24 }
 0x49b   : > { %v3629_v34 = vmax.f32 %v3437_v53, 0.0  ;;  %v3775_v24 = vunpack.c.l.b16 %v3695_v56 }
 0x49c   : > { %v3380_v47 = vunpack.c.l.bf16 %v3316_v62  ;;  %v3698_v62 = vpack.c.bf16 %v3634_v14, %v3634_v14  ;;  %v3779_v10 = vunpack.c.l.b16 %v3699_v48  ;;  %v3694_v48 = vpack.c.bf16 %v3630_v17, %v3630_v17 }
 0x49e   : > { %v3444_v18 = vadd.f32 %v3380_v47, %v7155_v19  ;;  %3220 = vmatmul.bf16.gmra.mxu2 %v3084_v57  ;;  %v2911_v47 = vpack.c.bf16 %v2746_v0, %v2746_v0  ;;  %v3697_v19 = vpack.c.bf16 %v3633_v7, %v3633_v7  ;;  %v3774_v35 = vunpack.c.l.b16 %v3694_v48 }
 0x4a0   : > { %v3636_v26 = vmax.f32 %v3444_v18, 0.0  ;;  %v3778_v18 = vunpack.c.l.b16 %v3698_v62  ;;  %v3777_v59 = vunpack.c.l.b16 %v3697_v19 }
 0x4a1   : > { %v3181_v4 = vpop.f32.mrf.mxu2 }
 0x4a2   : > { %v3317_v16 = vpack.c.bf16 %v3181_v4, %v3181_v4  ;;  %v3700_v28 = vpack.c.bf16 %v3636_v26, %v3636_v26  ;;  %v3039_v4 = vunpack.c.l.b16 %v2911_v47  ;;  %v3787_v0 = vpack.c.b16 %v3778_v18, %v3777_v59  ;;  %v2754_v47 = vpop.f32.mrf.mxu1 }
 0x4a3   : > { %v3776_v26 = vunpack.c.l.b16 %v3696_v58  ;;  %v2912_v18 = vpack.c.bf16 %v7636_v61, %v7636_v61 }
 0x4a4   : > { %v3381_v57 = vunpack.c.l.bf16 %v3317_v16  ;;  %v3780_v51 = vunpack.c.l.b16 %v3700_v28  ;;  %v3693_v16 = vpack.c.bf16 %v3629_v34, %v3629_v34  ;;  %v3085_v62 = vpack.c.b16 %v3039_v4, %v3038_v15 }
 0x4a5   : > { %v3786_v53 = vpack.c.b16 %v3776_v26, %v3775_v24  ;;  %v2913_v34 = vpack.c.bf16 %v2751_v1, %v2751_v1  ;;  %v3040_v59 = vunpack.c.l.b16 %v2912_v18 }
 0x4a6   : > { %v3788_v55 = vpack.c.b16 %v3780_v51, %v3779_v10  ;;  %v3445_v14 = vadd.f32 %v3381_v57, %v7183_v21  ;;  %v3773_v30 = vunpack.c.l.b16 %v3693_v16 }
 0x4a7   : > { %v3041_v56 = vunpack.c.l.b16 %v2913_v34 }
 0x4a8   : > { %3797 = vmatpush.bf16.msrb.mxu3 %v3788_v55  ;;  %v3637_v7 = vmax.f32 %v3445_v14, 0.0  ;;  %v3785_v17 = vpack.c.b16 %v3774_v35, %v3773_v30 }
 0x4a9   : > { %v3183_v44 = vpop.f32.mrf.mxu2  ;;  %v3086_v61 = vpack.c.b16 %v3041_v56, %v3040_v59 }
 0x4aa   : > { %v3318_v46 = vpack.c.bf16 %v3183_v44, %v3183_v44  ;;  %v3701_v57 = vpack.c.bf16 %v3637_v7, %v3637_v7 }
 0x4ac   : > { %v3382_v28 = vunpack.c.l.bf16 %v3318_v46  ;;  %3798 = vmatpush.bf16.msrb.mxu3 %v3787_v0  ;;  %v3862_v58 = vunpack.c.l.b16 %v3701_v57  ;;  %v2756_v0 = vpop.f32.mrf.mxu1 }
 0x4ae   : > { %v3446_v11 = vadd.f32 %v3382_v28, %v7191_v41  ;;  %3225 = vmatmul.bf16.gmra.mxu2 %v3085_v62 }
 0x4b0   : > { %v3638_v19 = vmax.f32 %v3446_v11, 0.0  ;;  %3799 = vmatpush.bf16.msrb.mxu3 %v3786_v53  ;;  %v2914_v53 = vpack.c.bf16 %v2754_v47, %v2754_v47 }
 0x4b1   : > { %v3186_v10 = vpop.f32.mrf.mxu2 }
 0x4b2   : > { %v3702_v51 = vpack.c.bf16 %v3638_v19, %v3638_v19  ;;  %v3319_v55 = vpack.c.bf16 %v3186_v10, %v3186_v10  ;;  %v2915_v19 = vpack.c.bf16 %v2756_v0, %v2756_v0  ;;  %v3042_v10 = vunpack.c.l.b16 %v2914_v53 }
 0x4b4   : > { %v3863_v15 = vunpack.c.l.b16 %v3702_v51  ;;  %v3383_v4 = vunpack.c.l.bf16 %v3319_v55  ;;  %3800 = vmatpush.bf16.msrb.mxu3 %v3785_v17  ;;  %v3043_v51 = vunpack.c.l.b16 %v2915_v19 }
 0x4b6   : > { %v7648_v14 = vpack.c.b16 %v3863_v15, %v3862_v58  ;;  %v3447_v44 = vadd.f32 %v3383_v4, %v7197_v32  ;;  %v3087_v47 = vpack.c.b16 %v3043_v51, %v3042_v10 }
 0x4b8   : > { %3801 = vmatpush.bf16.msrb.mxu3 %v7620_v49  ;;  %v3639_v48 = vmax.f32 %v3447_v44, 0.0  ;;  %v2759_v49 = vpop.f32.mrf.mxu1 }
 0x4b9   : > { %v3188_v46 = vpop.f32.mrf.mxu2 }
 0x4ba   : > { %v3320_v26 = vpack.c.bf16 %v3188_v46, %v3188_v46  ;;  %v3703_v7 = vpack.c.bf16 %v3639_v48, %v3639_v48  ;;  %v2916_v46 = vpack.c.bf16 %v2759_v49, %v2759_v49 }
 0x4bc   : > { %v3384_v16 = vunpack.c.l.bf16 %v3320_v26  ;;  %3802 = vmatpush.bf16.msrb.mxu3 %v7612_v39  ;;  %v3864_v35 = vunpack.c.l.b16 %v3703_v7 }
 0x4be   : > { %v3448_v1 = vadd.f32 %v3384_v16, %v7208_v42  ;;  %3230 = vmatmul.bf16.gmra.mxu2 %v3086_v61 }
 0x4c0   : > { %v3640_v28 = vmax.f32 %v3448_v1, 0.0  ;;  %3803 = vmatpush.bf16.msrb.mxu3 %v7604_v20  ;;  %v2761_v15 = vpop.f32.mrf.mxu1  ;;  %v3044_v1 = vunpack.c.l.b16 %v2916_v46 }
 0x4c1   : > { %v3191_v62 = vpop.f32.mrf.mxu2  ;;  %v2917_v26 = vpack.c.bf16 %v2761_v15, %v2761_v15 }
 0x4c2   : > { %v3704_v24 = vpack.c.bf16 %v3640_v28, %v3640_v28  ;;  %v3321_v11 = vpack.c.bf16 %v3191_v62, %v3191_v62 }
 0x4c3   : > { %v3045_v7 = vunpack.c.l.b16 %v2917_v26 }
 0x4c4   : > { %v3865_v57 = vunpack.c.l.b16 %v3704_v24  ;;  %v3385_v30 = vunpack.c.l.bf16 %v3321_v11  ;;  %3804 = vmatpush.bf16.msrb.mxu3 %v7596_v29 }
 0x4c6   : > { %v7656_v39 = vpack.c.b16 %v3865_v57, %v3864_v35  ;;  %v3449_v55 = vadd.f32 %v3385_v30, %v7214_v60  ;;  %v3088_v35 = vpack.c.b16 %v3045_v7, %v3044_v1 }
 0x4c7   : > { %3805 = vmatmul.bf16.vlgmr.msrb.gmra.mxu3 %v6685_v31 }
 0x4c8   : > { %v3641_v18 = vmax.f32 %v3449_v55, 0.0  ;;  %v2764_v61 = vpop.f32.mrf.mxu1  ;;  %v2769_v55 = vpop.f32.mrf.mxu3 }
 0x4c9   : > { %v3193_v20 = vpop.f32.mrf.mxu2 }
 0x4ca   : > { %v3322_v17 = vpack.c.bf16 %v3193_v20, %v3193_v20  ;;  %v3705_v4 = vpack.c.bf16 %v3641_v18, %v3641_v18 }
 0x4cc   : > { %v3386_v58 = vunpack.c.l.bf16 %v3322_v17  ;;  %v3866_v31 = vunpack.c.l.b16 %v3705_v4 }
 0x4ce   : > { %v3450_v34 = vadd.f32 %v3386_v58, %v7224_v36  ;;  %3235 = vmatmul.bf16.gmra.mxu2 %v3087_v47 }
 0x4d0   : > { %v3642_v59 = vmax.f32 %v3450_v34, 0.0  ;;  %v2766_v30 = vpop.f32.mrf.mxu1 }
 0x4d1   : > { %v3196_v29 = vpop.f32.mrf.mxu2  ;;  %v2919_v18 = vpack.c.bf16 %v2766_v30, %v2766_v30 }
 0x4d2   : > { %v3706_v56 = vpack.c.bf16 %v3642_v59, %v3642_v59  ;;  %v3323_v44 = vpack.c.bf16 %v3196_v29, %v3196_v29  ;;  %v2771_v59 = vpop.f32.mrf.mxu3 }
 0x4d3   : > { %v3047_v15 = vunpack.c.l.b16 %v2919_v18 }
 0x4d4   : > { %v3867_v0 = vunpack.c.l.b16 %v3706_v56  ;;  %v3387_v48 = vunpack.c.l.bf16 %v3323_v44  ;;  %v2920_v56 = vpack.c.bf16 %v2769_v55, %v2769_v55  ;;  %v2921_v44 = vpack.c.bf16 %v2771_v59, %v2771_v59 }
 0x4d6   : > { %v7661_v16 = vpack.c.b16 %v3867_v0, %v3866_v31  ;;  %v3451_v28 = vadd.f32 %v3387_v48, %v7228_v33  ;;  %v3048_v31 = vunpack.c.l.b16 %v2920_v56  ;;  %v3049_v0 = vunpack.c.l.b16 %v2921_v44  ;;  %v8613_v44 = vld [vmem:[#allocation125_spill] sm:$0xff] }
 0x4d7   : > { %3810 = vmatmul.bf16.gmra.mxu3 %v6689_v43  ;;  %v2918_v43 = vpack.c.bf16 %v2764_v61, %v2764_v61 }
 0x4d8   : > { %v3643_v11 = vmax.f32 %v3451_v28, 0.0  ;;  %v3090_v48 = vpack.c.b16 %v3049_v0, %v3048_v31 }
 0x4d9   : > { %v3198_v62 = vpop.f32.mrf.mxu2  ;;  %v3046_v47 = vunpack.c.l.b16 %v2918_v43 }
 0x4da   : > { %v3324_v24 = vpack.c.bf16 %v3198_v62, %v3198_v62  ;;  %v3707_v57 = vpack.c.bf16 %v3643_v11, %v3643_v11  ;;  %v2774_v46 = vpop.f32.mrf.mxu3 }
 0x4db   : > { %v3089_v4 = vpack.c.b16 %v3047_v15, %v3046_v47  ;;  %v8612_v47 = vld [vmem:[#allocation124_spill] sm:$0xff] }
 0x4dc   : > { %v3388_v53 = vunpack.c.l.bf16 %v3324_v24  ;;  %v3868_v20 = vunpack.c.l.b16 %v3707_v57 }
 0x4de   : > { %v3452_v49 = vadd.f32 %v3388_v53, %v7235_v6  ;;  %3240 = vmatmul.bf16.gmra.mxu2 %v3088_v35 }
 0x4e0   : > { %v3644_v19 = vmax.f32 %v3452_v49, 0.0 }
 0x4e1   : > { %v3201_v10 = vpop.f32.mrf.mxu2 }
 0x4e2   : > { %v3708_v51 = vpack.c.bf16 %v3644_v19, %v3644_v19  ;;  %v2776_v61 = vpop.f32.mrf.mxu3  ;;  %v3325_v59 = vpack.c.bf16 %v3201_v10, %v3201_v10  ;;  %v8617_v10 = vld [vmem:[#allocation52_spill] sm:$0xff] }
 0x4e3   : > { %v2923_v7 = vpack.c.bf16 %v2776_v61, %v2776_v61 }
 0x4e4   : > { %v3869_v17 = vunpack.c.l.b16 %v3708_v51 }
 0x4e5   : > { %v3051_v62 = vunpack.c.l.b16 %v2923_v7  ;;  %v8616_v7 = vld [vmem:[#allocation48_spill] sm:$0xff] }
 0x4e6   : > { %v7666_v58 = vpack.c.b16 %v3869_v17, %v3868_v20  ;;  %v8611_v20 = vld [vmem:[#allocation123_spill] sm:$0xff] }
 0x4e7   : > { %3815 = vmatmul.bf16.gmra.mxu3 %v6698_v3  ;;  %v2922_v3 = vpack.c.bf16 %v2774_v46, %v2774_v46 }
 0x4e9   : > { %v3203_v34 = vpop.f32.mrf.mxu2  ;;  %v3050_v28 = vunpack.c.l.b16 %v2922_v3  ;;  %v3389_v3 = vunpack.c.l.bf16 %v3325_v59 }
 0x4eb   : > { %v3091_v11 = vpack.c.b16 %v3051_v62, %v3050_v28 }
 0x4ee   : > { %3245 = vmatmul.bf16.gmra.mxu2 %v3089_v4 }
 0x4f1   : > { %v3206_v29 = vpop.f32.mrf.mxu2 }
 0x4f2   : > { %v3327_v51 = vpack.c.bf16 %v3206_v29, %v3206_v29  ;;  %v8615_v29 = vld [vmem:[#allocation126_spill] sm:$0xff] }
 0x4f4   : > { %v3391_v56 = vunpack.c.l.bf16 %v3327_v51 }
 0x4f6   : > { %v3455_v28 = vadd.f32 %v3391_v56, %v8616_v7 }
 0x4f7   : > { %3820 = vmatmul.bf16.gmra.mxu3 %v6730_v12 }
 0x4f9   : > { %v3208_v26 = vpop.f32.mrf.mxu2 }
 0x4fa   : > { %v3328_v19 = vpack.c.bf16 %v3208_v26, %v3208_v26 }
 0x4fc   : > { %v3392_v18 = vunpack.c.l.bf16 %v3328_v19 }
 0x4fe   : > { %3250 = vmatmul.bf16.gmra.mxu2 %v3090_v48  ;;  %v8614_v48 = vld [vmem:[#allocation49_spill] sm:$0xff] }
 0x4ff   : > { %v3456_v61 = vadd.f32 %v3392_v18, %v8614_v48 }
 0x501   : > { %v3211_v1 = vpop.f32.mrf.mxu2 }
 0x502   : > { %v3329_v12 = vpack.c.bf16 %v3211_v1, %v3211_v1 }
 0x504   : > { %v3393_v55 = vunpack.c.l.bf16 %v3329_v12 }
 0x506   : > { %v3457_v46 = vadd.f32 %v3393_v55, %v8613_v44 }
 0x507   : > { %3825 = vmatmul.bf16.gmra.mxu3 %v6755_v27  ;;  %v3326_v27 = vpack.c.bf16 %v3203_v34, %v3203_v34 }
 0x508   : > { %v3649_v34 = vmax.f32 %v3457_v46, 0.0 }
 0x509   : > { %v3213_v24 = vpop.f32.mrf.mxu2  ;;  %v3390_v26 = vunpack.c.l.bf16 %v3326_v27 }
 0x50a   : > { %v3330_v35 = vpack.c.bf16 %v3213_v24, %v3213_v24  ;;  %v3713_v51 = vpack.c.bf16 %v3649_v34, %v3649_v34 }
 0x50c   : > { %v3394_v30 = vunpack.c.l.bf16 %v3330_v35  ;;  %v3648_v35 = vmax.f32 %v3456_v61, 0.0  ;;  %v3874_v46 = vunpack.c.l.b16 %v3713_v51 }
 0x50e   : > { %3255 = vmatmul.bf16.gmra.mxu2 %v3091_v11  ;;  %v3458_v15 = vadd.f32 %v3394_v30, %v8612_v47  ;;  %v3647_v30 = vmax.f32 %v3455_v28, 0.0  ;;  %v3712_v27 = vpack.c.bf16 %v3648_v35, %v3648_v35 }
 0x510   : > { %v3711_v56 = vpack.c.bf16 %v3647_v30, %v3647_v30 }
 0x511   : > { %v3216_v53 = vpop.f32.mrf.mxu2 }
 0x512   : > { %v3331_v49 = vpack.c.bf16 %v3216_v53, %v3216_v53  ;;  %v3454_v53 = vadd.f32 %v3390_v26, %v8617_v10  ;;  %v3873_v26 = vunpack.c.l.b16 %v3712_v27 }
 0x514   : > { %v3395_v57 = vunpack.c.l.bf16 %v3331_v49 }
 0x516   : > { %v3459_v43 = vadd.f32 %v3395_v57, %v8611_v20  ;;  %v8618_v57 = vld [vmem:[#allocation50_spill] sm:$0xff] }
 0x517   : > { %3830 = vmatmul.bf16.gmra.mxu3 %v6759_v45  ;;  %v3650_v45 = vmax.f32 %v3458_v15, 0.0  ;;  %v3453_v19 = vadd.f32 %v3389_v3, %v8618_v57 }
 0x518   : > { %v3651_v31 = vmax.f32 %v3459_v43, 0.0 }
 0x519   : > { %v3218_v17 = vpop.f32.mrf.mxu2  ;;  %v3714_v49 = vpack.c.bf16 %v3650_v45, %v3650_v45  ;;  %v3645_v59 = vmax.f32 %v3453_v19, 0.0  ;;  %v8621_v19 = vld [vmem:[#allocation54_spill] sm:$0xff] }
 0x51a   : > { %v3332_v4 = vpack.c.bf16 %v3218_v17, %v3218_v17  ;;  %v3715_v62 = vpack.c.bf16 %v3651_v31, %v3651_v31  ;;  %v3646_v17 = vmax.f32 %v3454_v53, 0.0  ;;  %v8620_v53 = vld [vmem:[#allocation51_spill] sm:$0xff] }
 0x51b   : > { %v3875_v18 = vunpack.c.l.b16 %v3714_v49  ;;  %v3709_v45 = vpack.c.bf16 %v3645_v59, %v3645_v59 }
 0x51c   : > { %v3396_v0 = vunpack.c.l.bf16 %v3332_v4  ;;  %v3876_v55 = vunpack.c.l.b16 %v3715_v62  ;;  %v8619_v4 = vld [vmem:[#allocation46_spill] sm:$0xff] }
 0x51d   : > { %v3884_v61 = vpack.c.b16 %v3875_v18, %v3874_v46  ;;  %v3870_v34 = vunpack.c.l.b16 %v3709_v45  ;;  %v8623_v45 = vld [vmem:[#allocation58_spill] sm:$0xff] }
 0x51e   : > { %v3460_v1 = vadd.f32 %v3396_v0, %v8615_v29  ;;  %v3710_v0 = vpack.c.bf16 %v3646_v17, %v3646_v17 }
 0x520   : > { %v3652_v24 = vmax.f32 %v3460_v1, 0.0  ;;  %v3872_v1 = vunpack.c.l.b16 %v3711_v56  ;;  %v3871_v3 = vunpack.c.l.b16 %v3710_v0 }
 0x521   : > { %v7678_v11 = vpop.f32.mrf.mxu2 }
 0x522   : > { %v3716_v12 = vpack.c.bf16 %v3652_v24, %v3652_v24  ;;  %v3883_v28 = vpack.c.b16 %v3873_v26, %v3872_v1  ;;  %v3882_v24 = vpack.c.b16 %v3871_v3, %v3870_v34 }
 0x524   : > { %v3877_v43 = vunpack.c.l.b16 %v3716_v12  ;;  %v2836_v12 = vpop.f32.mrf.mxu1 }
 0x526   : > { %v3885_v15 = vpack.c.b16 %v3877_v43, %v3876_v55  ;;  %v2924_v55 = vpack.c.bf16 %v2836_v12, %v2836_v12 }
 0x527   : > { %3835 = vmatmul.bf16.gmra.mxu3 %v8619_v4 }
 0x528   : > { %3894 = vmatpush.bf16.msra.mxu1 %v3885_v15 }
 0x529   : > { %v7683_v31 = vpop.f32.mrf.mxu2 }
 0x52c   : > { %3895 = vmatpush.bf16.msra.mxu1 %v3884_v61  ;;  %v2838_v51 = vpop.f32.mrf.mxu1 }
 0x52d   : > { %v2925_v43 = vpack.c.bf16 %v2838_v51, %v2838_v51 }
 0x52f   : > { %v3053_v27 = vunpack.c.l.b16 %v2925_v43 }
 0x530   : > { %3896 = vmatpush.bf16.msra.mxu1 %v3883_v28 }
 0x531   : > { %v7685_v62 = vpop.f32.mrf.mxu2 }
 0x534   : > { %3897 = vmatpush.bf16.msra.mxu1 %v3882_v24 }
 0x537   : > { %3840 = vmatmul.bf16.gmra.mxu3 %v8620_v53 }
 0x538   : > { %3898 = vmatpush.bf16.msra.mxu1 %v7666_v58  ;;  %v3052_v58 = vunpack.c.l.b16 %v2924_v55  ;;  %v8624_v55 = vld [vmem:[#allocation60_spill] sm:$0xff] }
 0x539   : > { %v7689_v35 = vpop.f32.mrf.mxu2 }
 0x53a   : > { %v3092_v18 = vpack.c.b16 %v3053_v27, %v3052_v58 }
 0x53c   : > { %3899 = vmatpush.bf16.msra.mxu1 %v7661_v16  ;;  %3260 = vmatmul.bf16.gmra.mxu2 %v3092_v18  ;;  %v2841_v16 = vpop.f32.mrf.mxu1 }
 0x53d   : > { %v2926_v4 = vpack.c.bf16 %v2841_v16, %v2841_v16 }
 0x53f   : > { %v3054_v46 = vunpack.c.l.b16 %v2926_v4 }
 0x540   : > { %3900 = vmatpush.bf16.msra.mxu1 %v7656_v39  ;;  %v8622_v39 = vld [vmem:[#allocation56_spill] sm:$0xff] }
 0x541   : > { %v7693_v49 = vpop.f32.mrf.mxu2 }
 0x544   : > { %3901 = vmatpush.bf16.msra.mxu1 %v7648_v14  ;;  %v2843_v14 = vpop.f32.mrf.mxu1 }
 0x545   : > { %v2927_v59 = vpack.c.bf16 %v2843_v14, %v2843_v14 }
 0x547   : > { %3902 = vmatmul.bf16.vlgmr.msra.gmra.mxu1 %v8621_v19  ;;  %v3055_v0 = vunpack.c.l.b16 %v2927_v59 }
 0x549   : > { %v7697_v30 = vpop.f32.mrf.mxu2  ;;  %v3093_v26 = vpack.c.b16 %v3055_v0, %v3054_v46  ;;  %v8625_v46 = vld [vmem:[#allocation61_spill] sm:$0xff] }
 0x54c   : > { %3265 = vmatmul.bf16.gmra.mxu2 %v3093_v26  ;;  %v2846_v61 = vpop.f32.mrf.mxu1 }
 0x54d   : > { %v2928_v28 = vpack.c.bf16 %v2846_v61, %v2846_v61 }
 0x54f   : > { %v3056_v53 = vunpack.c.l.b16 %v2928_v28 }
 0x551   : > { %v7699_v17 = vpop.f32.mrf.mxu2 }
 0x554   : > { %v2848_v3 = vpop.f32.mrf.mxu1 }
 0x555   : > { %v2929_v34 = vpack.c.bf16 %v2848_v3, %v2848_v3 }
 0x557   : > { %3907 = vmatmul.bf16.gmra.mxu1 %v8622_v39  ;;  %v3057_v12 = vunpack.c.l.b16 %v2929_v34 }
 0x559   : > { %v7702_v15 = vpop.f32.mrf.mxu2  ;;  %v3094_v19 = vpack.c.b16 %v3057_v12, %v3056_v53 }
 0x55c   : > { %3270 = vmatmul.bf16.gmra.mxu2 %v3094_v19  ;;  %v2851_v51 = vpop.f32.mrf.mxu1 }
 0x55d   : > { %v2930_v27 = vpack.c.bf16 %v2851_v51, %v2851_v51 }
 0x55f   : > { %v3058_v39 = vunpack.c.l.b16 %v2930_v27 }
 0x561   : > { %v7704_v56 = vpop.f32.mrf.mxu2 }
 0x564   : > { %v2853_v58 = vpop.f32.mrf.mxu1 }
 0x565   : > { %v2931_v18 = vpack.c.bf16 %v2853_v58, %v2853_v58 }
 0x567   : > { %3912 = vmatmul.bf16.gmra.mxu1 %v8623_v45  ;;  %v3059_v14 = vunpack.c.l.b16 %v2931_v18 }
 0x569   : > { %v3243_v1 = vpop.f32.mrf.mxu2  ;;  %v3095_v4 = vpack.c.b16 %v3059_v14, %v3058_v39 }
 0x56c   : > { %3275 = vmatmul.bf16.gmra.mxu2 %v3095_v4  ;;  %v2856_v59 = vpop.f32.mrf.mxu1  ;;  %v8626_v4 = vld [vmem:[#allocation64_spill] sm:$0xff] }
 0x56d   : > { %v2932_v61 = vpack.c.bf16 %v2856_v59, %v2856_v59  ;;  %v3342_v59 = vpack.c.bf16 %v3243_v1, %v3243_v1 }
 0x56f   : > { %v3060_v53 = vunpack.c.l.b16 %v2932_v61 }
 0x571   : > { %v3246_v24 = vpop.f32.mrf.mxu2 }
 0x572   : > { %v3343_v18 = vpack.c.bf16 %v3246_v24, %v3246_v24 }
 0x574   : > { %v2858_v26 = vpop.f32.mrf.mxu1 }
 0x575   : > { %v2933_v45 = vpack.c.bf16 %v2858_v26, %v2858_v26 }
 0x577   : > { %3917 = vmatmul.bf16.gmra.mxu1 %v8624_v55  ;;  %v3061_v12 = vunpack.c.l.b16 %v2933_v45  ;;  %v3407_v45 = vunpack.c.l.bf16 %v3343_v18 }
 0x579   : > { %v3248_v43 = vpop.f32.mrf.mxu2  ;;  %v3096_v55 = vpack.c.b16 %v3061_v12, %v3060_v53  ;;  %v3340_v53 = vpack.c.bf16 %v7702_v15, %v7702_v15  ;;  %v3406_v12 = vunpack.c.l.bf16 %v3342_v59  ;;  %v3338_v15 = vpack.c.bf16 %v7697_v30, %v7697_v30 }
 0x57a   : > { %v3344_v58 = vpack.c.bf16 %v3248_v43, %v3248_v43  ;;  %v8629_v43 = vld [vmem:[#allocation81_spill] sm:$0xff]  ;;  %v3336_v30 = vpack.c.bf16 %v7689_v35, %v7689_v35 }
 0x57b   : > { %v3404_v59 = vunpack.c.l.bf16 %v3340_v53  ;;  %v3402_v53 = vunpack.c.l.bf16 %v3338_v15  ;;  %v3334_v15 = vpack.c.bf16 %v7683_v31, %v7683_v31 }
 0x57c   : > { %3280 = vmatmul.bf16.gmra.mxu2 %v3096_v55  ;;  %v2861_v14 = vpop.f32.mrf.mxu1  ;;  %v3408_v26 = vunpack.c.l.bf16 %v3344_v58  ;;  %v8631_v55 = vld [vmem:[#allocation90_spill] sm:$0xff] }
 0x57d   : > { %v3398_v31 = vunpack.c.l.bf16 %v3334_v15 }
 0x581   : > { %v3251_v16 = vpop.f32.mrf.mxu2 }
 0x582   : > { %v3345_v19 = vpack.c.bf16 %v3251_v16, %v3251_v16  ;;  %v3341_v16 = vpack.c.bf16 %v7704_v56, %v7704_v56 }
 0x584   : > { %v3409_v39 = vunpack.c.l.bf16 %v3345_v19  ;;  %v8630_v19 = vld [vmem:[#allocation77_spill] sm:$0xff] }
 0x587   : > { %3922 = vmatmul.bf16.gmra.mxu1 %v8625_v46  ;;  %v8627_v46 = vld [vmem:[#allocation87_spill] sm:$0xff] }
 0x589   : > { %v3253_v0 = vpop.f32.mrf.mxu2 }
 0x58a   : > { %v3346_v28 = vpack.c.bf16 %v3253_v0, %v3253_v0  ;;  %v8628_v0 = vld [vmem:[#allocation82_spill] sm:$0xff] }
 0x58c   : > { %v3410_v27 = vunpack.c.l.bf16 %v3346_v28  ;;  %v3473_v28 = vadd.f32 %v3409_v39, %v8629_v43 }
 0x58e   : > { %v3665_v18 = vmax.f32 %v3473_v28, 0.0  ;;  %v8634_v28 = vld [vmem:[#allocation91_spill] sm:$0xff] }
 0x591   : > { %v3256_v3 = vpop.f32.mrf.mxu2 }
 0x592   : > { %v3347_v34 = vpack.c.bf16 %v3256_v3, %v3256_v3  ;;  %v3474_v3 = vadd.f32 %v3410_v27, %v8628_v0  ;;  %v3405_v27 = vunpack.c.l.bf16 %v3341_v16  ;;  %v2863_v0 = vpop.f32.mrf.mxu1  ;;  %v3337_v16 = vpack.c.bf16 %v7693_v49, %v7693_v49 }
 0x593   : > { %v2935_v43 = vpack.c.bf16 %v2863_v0, %v2863_v0  ;;  %v3335_v49 = vpack.c.bf16 %v7685_v62, %v7685_v62 }
 0x594   : > { %v3411_v51 = vunpack.c.l.bf16 %v3347_v34  ;;  %v3666_v1 = vmax.f32 %v3474_v3, 0.0 }
 0x596   : > { %v3475_v57 = vadd.f32 %v3411_v51, %v8627_v46  ;;  %v3472_v51 = vadd.f32 %v3408_v26, %v8630_v19  ;;  %v8633_v26 = vld [vmem:[#allocation80_spill] sm:$0xff] }
 0x597   : > { %3927 = vmatmul.bf16.gmra.mxu1 %v8626_v4  ;;  %v8632_v4 = vld [vmem:[#allocation76_spill] sm:$0xff]  ;;  %v3470_v3 = vadd.f32 %v3406_v12, %v8633_v26  ;;  %v8635_v12 = vld [vmem:[#allocation85_spill] sm:$0xff] }
 0x598   : > { %v3667_v34 = vmax.f32 %v3475_v57, 0.0  ;;  %v3471_v56 = vadd.f32 %v3407_v45, %v8632_v4  ;;  %v3664_v19 = vmax.f32 %v3472_v51, 0.0  ;;  %v3468_v51 = vadd.f32 %v3404_v59, %v8635_v12  ;;  %v8638_v59 = vld [vmem:[#allocation83_spill] sm:$0xff] }
 0x599   : > { %v3258_v10 = vpop.f32.mrf.mxu2 }
 0x59a   : > { %v3348_v61 = vpack.c.bf16 %v3258_v10, %v3258_v10  ;;  %v3339_v10 = vpack.c.bf16 %v7699_v17, %v7699_v17  ;;  %v3731_v39 = vpack.c.bf16 %v3667_v34, %v3667_v34  ;;  %v3063_v17 = vunpack.c.l.b16 %v2935_v43 }
 0x59b   : > { %v3469_v34 = vadd.f32 %v3405_v27, %v8634_v28  ;;  %v2866_v27 = vpop.f32.mrf.mxu1 }
 0x59c   : > { %v3412_v24 = vunpack.c.l.bf16 %v3348_v61  ;;  %v2934_v61 = vpack.c.bf16 %v2861_v14, %v2861_v14  ;;  %v3403_v45 = vunpack.c.l.bf16 %v3339_v10  ;;  %v3729_v14 = vpack.c.bf16 %v3665_v18, %v3665_v18 }
 0x59d   : > { %v3973_v0 = vunpack.c.l.b16 %v3731_v39  ;;  %v3401_v10 = vunpack.c.l.bf16 %v3337_v16  ;;  %v3661_v18 = vmax.f32 %v3469_v34, 0.0  ;;  %v3399_v16 = vunpack.c.l.bf16 %v3335_v49 }
 0x59e   : > { %v3476_v58 = vadd.f32 %v3412_v24, %v8631_v55  ;;  %v3730_v24 = vpack.c.bf16 %v3666_v1, %v3666_v1  ;;  %v3062_v46 = vunpack.c.l.b16 %v2934_v61  ;;  %v3662_v1 = vmax.f32 %v3470_v3, 0.0 }
 0x59f   : > { %v3971_v35 = vunpack.c.l.b16 %v3729_v14 }
 0x5a0   : > { %v3668_v57 = vmax.f32 %v3476_v58, 0.0  ;;  %v3663_v58 = vmax.f32 %v3471_v56, 0.0  ;;  %v3097_v7 = vpack.c.b16 %v3063_v17, %v3062_v46  ;;  %v3972_v43 = vunpack.c.l.b16 %v3730_v24  ;;  %v8636_v56 = vld [vmem:[#allocation69_spill] sm:$0xff] }
 0x5a1   : > { %v3726_v3 = vpack.c.bf16 %v3662_v1, %v3662_v1  ;;  %v3333_v17 = vpack.c.bf16 %v7678_v11, %v7678_v11 }
 0x5a2   : > { %v3732_v55 = vpack.c.bf16 %v3668_v57, %v3668_v57  ;;  %v3728_v57 = vpack.c.bf16 %v3664_v19, %v3664_v19  ;;  %3285 = vmatmul.bf16.gmra.mxu2 %v3097_v7  ;;  %v3727_v39 = vpack.c.bf16 %v3663_v58, %v3663_v58  ;;  %v3400_v19 = vunpack.c.l.bf16 %v3336_v30  ;;  %v8640_v30 = vld [vmem:[#allocation66_spill] sm:$0xff] }
 0x5a3   : > { %v3660_v7 = vmax.f32 %v3468_v51, 0.0  ;;  %v3981_v62 = vpack.c.b16 %v3972_v43, %v3971_v35  ;;  %v3725_v58 = vpack.c.bf16 %v3661_v18, %v3661_v18  ;;  %v3968_v1 = vunpack.c.l.b16 %v3726_v3  ;;  %v8641_v35 = vld [vmem:[#allocation65_spill] sm:$0xff]  ;;  %v2868_v49 = vpop.f32.mrf.mxu1  ;;  %v8643_v3 = vld [vmem:[#allocation62_spill] sm:$0xff] }
 0x5a4   : > { %v3974_v4 = vunpack.c.l.b16 %v3732_v55  ;;  %v8637_v55 = vld [vmem:[#allocation84_spill] sm:$0xff]  ;;  %v3970_v24 = vunpack.c.l.b16 %v3728_v57  ;;  %v3969_v14 = vunpack.c.l.b16 %v3727_v39  ;;  %v3397_v43 = vunpack.c.l.bf16 %v3333_v17  ;;  %v8642_v39 = vld [vmem:[#allocation63_spill] sm:$0xff] }
 0x5a5   : > { %v3467_v46 = vadd.f32 %v3403_v45, %v8637_v55  ;;  %v3724_v51 = vpack.c.bf16 %v3660_v7, %v3660_v7  ;;  %v3463_v28 = vadd.f32 %v3399_v16, %v8641_v35  ;;  %v2937_v18 = vpack.c.bf16 %v2868_v49, %v2868_v49 }
 0x5a6   : > { %v3982_v61 = vpack.c.b16 %v3974_v4, %v3973_v0  ;;  %v3466_v4 = vadd.f32 %v3402_v53, %v8638_v59  ;;  %v8639_v0 = vld [vmem:[#allocation88_spill] sm:$0xff]  ;;  %v3980_v57 = vpack.c.b16 %v3970_v24, %v3969_v14  ;;  %v3461_v24 = vadd.f32 %v3397_v43, %v8643_v3 }
 0x5a7   : > { %3932 = vmatmul.bf16.gmra.mxu1 %v8636_v56  ;;  %v3465_v45 = vadd.f32 %v3401_v10, %v8639_v0  ;;  %v3659_v34 = vmax.f32 %v3467_v46, 0.0  ;;  %v3464_v56 = vadd.f32 %v3400_v19, %v8640_v30  ;;  %v3967_v10 = vunpack.c.l.b16 %v3725_v58 }
 0x5a8   : > { %3991 = vmatpush.bf16.msra.mxu3 %v3982_v61  ;;  %v7741_v61 = vpop.f32.mrf.mxu3  ;;  %v3658_v53 = vmax.f32 %v3466_v4, 0.0  ;;  %v2936_v46 = vpack.c.bf16 %v2866_v27, %v2866_v27  ;;  %v3966_v55 = vunpack.c.l.b16 %v3724_v51  ;;  %v3065_v7 = vunpack.c.l.b16 %v2937_v18 }
 0x5a9   : > { %v3657_v11 = vmax.f32 %v3465_v45, 0.0  ;;  %v3723_v26 = vpack.c.bf16 %v3659_v34, %v3659_v34  ;;  %v3656_v12 = vmax.f32 %v3464_v56, 0.0  ;;  %v3979_v19 = vpack.c.b16 %v3968_v1, %v3967_v10  ;;  %v8644_v56 = vld [vmem:[#allocation78_spill] sm:$0xff] }
 0x5aa   : > { %v3722_v15 = vpack.c.bf16 %v3658_v53, %v3658_v53  ;;  %v3064_v4 = vunpack.c.l.b16 %v2936_v46  ;;  %v3655_v17 = vmax.f32 %v3463_v28, 0.0  ;;  %v3653_v53 = vmax.f32 %v3461_v24, 0.0 }
 0x5ab   : > { %v3721_v14 = vpack.c.bf16 %v3657_v11, %v3657_v11  ;;  %v3965_v16 = vunpack.c.l.b16 %v3723_v26  ;;  %v3720_v58 = vpack.c.bf16 %v3656_v12, %v3656_v12 }
 0x5ac   : > { %3992 = vmatpush.bf16.msra.mxu3 %v3981_v62  ;;  %v3462_v62 = vadd.f32 %v3398_v31, %v8642_v39  ;;  %v3098_v45 = vpack.c.b16 %v3065_v7, %v3064_v4  ;;  %v2871_v31 = vpop.f32.mrf.mxu1  ;;  %v3719_v51 = vpack.c.bf16 %v3655_v17, %v3655_v17  ;;  %v3717_v26 = vpack.c.bf16 %v3653_v53, %v3653_v53 }
 0x5ad   : > { %v3978_v27 = vpack.c.b16 %v3966_v55, %v3965_v16  ;;  %v3963_v1 = vunpack.c.l.b16 %v3721_v14  ;;  %v3962_v28 = vunpack.c.l.b16 %v3720_v58  ;;  %v6088_v14 = vld [vmem:[#allocation8 + $0x38] sm:$0xff]  ;;  %v8645_v16 = vld [vmem:[#allocation86_spill] sm:$0xff] }
 0x5ae   : > { %v3654_v34 = vmax.f32 %v3462_v62, 0.0  ;;  %v3961_v10 = vunpack.c.l.b16 %v3719_v51  ;;  %v3959_v55 = vunpack.c.l.b16 %v3717_v26  ;;  %v6090_v58 = vld [vmem:[#allocation8 + $0x28] sm:$0xff]  ;;  %v6093_v51 = vld [vmem:[#allocation8 + $0x10] sm:$0xff]  ;;  %v8647_v26 = vld [vmem:[#allocation92_spill] sm:$0xff] }
 0x5b0   : > { %3993 = vmatpush.bf16.msra.mxu3 %v3980_v57  ;;  %v3964_v57 = vunpack.c.l.b16 %v3722_v15  ;;  %v7747_v49 = vpop.f32.mrf.mxu3  ;;  %v3718_v43 = vpack.c.bf16 %v3654_v34, %v3654_v34  ;;  %v3976_v12 = vpack.c.b16 %v3962_v28, %v3961_v10  ;;  %v2938_v15 = vpack.c.bf16 %v2871_v31, %v2871_v31  ;;  %v6092_v31 = vld [vmem:[#allocation8 + $0x18] sm:$0xff] }
 0x5b1   : > { %v4138_v0 = vpack.c.bf16 %v7747_v49, %v7747_v49 }
 0x5b2   : > { %3290 = vmatmul.bf16.gmra.mxu2 %v3098_v45  ;;  %v3977_v11 = vpack.c.b16 %v3964_v57, %v3963_v1  ;;  %v3960_v46 = vunpack.c.l.b16 %v3718_v43  ;;  %v3066_v7 = vunpack.c.l.b16 %v2938_v15  ;;  %v6089_v45 = vld [vmem:[#allocation8 + $0x30] sm:$0xff]  ;;  %v6091_v57 = vld [vmem:[#allocation8 + $0x20] sm:$0xff]  ;;  %v6094_v1 = vld [vmem:[#allocation8 + $0x8] sm:$0xff] }
 0x5b3   : > { %v4266_v35 = vunpack.c.l.b16 %v4138_v0 }
 0x5b4   : > { %3994 = vmatpush.bf16.msra.mxu3 %v3979_v19  ;;  %v2873_v18 = vpop.f32.mrf.mxu1  ;;  %v3975_v4 = vpack.c.b16 %v3960_v46, %v3959_v55  ;;  %v8648_v55 = vld [vmem:[#allocation95_spill] sm:$0xff] }
 0x5b5   : > { %v2939_v19 = vpack.c.bf16 %v2873_v18, %v2873_v18 }
 0x5b7   : > { %3937 = vmatmul.bf16.gmra.mxu1 %v8644_v56  ;;  %v3067_v24 = vunpack.c.l.b16 %v2939_v19  ;;  %v8646_v56 = vld [vmem:[#allocation89_spill] sm:$0xff] }
 0x5b8   : > { %3995 = vmatpush.bf16.msra.mxu3 %v3978_v27  ;;  %v7750_v62 = vpop.f32.mrf.mxu3 }
 0x5b9   : > { %v3099_v17 = vpack.c.b16 %v3067_v24, %v3066_v7  ;;  %v8649_v24 = vld [vmem:[#allocation98_spill] sm:$0xff]  ;;  %v4139_v29 = vpack.c.bf16 %v7750_v62, %v7750_v62 }
 0x5bb   : > { %v4267_v47 = vunpack.c.l.b16 %v4139_v29 }
 0x5bc   : > { %3996 = vmatpush.bf16.msra.mxu3 %v3977_v11  ;;  %v6095_v11 = vld [vmem:[#allocation8] sm:$0xff] }
 0x5bf   : > { %v7754_v53 = vpop.f32.mrf.mxu2 }
 0x5c0   : > { %3997 = vmatpush.bf16.msra.mxu3 %v3976_v12  ;;  %v3813_v34 = vpop.f32.mrf.mxu3 }
 0x5c2   : > { %3295 = vmatmul.bf16.gmra.mxu2 %v3099_v17 }
 0x5c4   : > { %3998 = vmatpush.bf16.msra.mxu3 %v3975_v4 }
 0x5c7   : > { %3999 = vmatmul.bf16.vlgmr.msra.gmra.mxu3 %v8645_v16  ;;  %v7758_v28 = vpop.f32.mrf.mxu2 }
 0x5c8   : > { %4393 = vmatpush.bf16.msrb.mxu3 %v6088_v14  ;;  %v3816_v27 = vpop.f32.mrf.mxu3 }
 0x5c9   : > { %v4141_v6 = vpack.c.bf16 %v3816_v27, %v3816_v27 }
 0x5cb   : > { %v7804_v60 = vunpack.c.l.b16 %v4141_v6 }
 0x5cc   : > { %4394 = vmatpush.bf16.msrb.mxu3 %v6089_v45  ;;  %v8650_v45 = vld [vmem:[#allocation101_spill] sm:$0xff] }
 0x5cf   : > { %v7763_v46 = vpop.f32.mrf.mxu2 }
 0x5d0   : > { %4395 = vmatpush.bf16.msrb.mxu3 %v6090_v58  ;;  %v7756_v43 = vpop.f32.mrf.mxu3 }
 0x5d1   : > { %v4142_v27 = vpack.c.bf16 %v7756_v43, %v7756_v43 }
 0x5d4   : > { %4396 = vmatpush.bf16.msrb.mxu3 %v6091_v57 }
 0x5d7   : > { %4004 = vmatmul.bf16.gmra.mxu3 %v8646_v56  ;;  %v7765_v12 = vpop.f32.mrf.mxu2 }
 0x5d8   : > { %4397 = vmatpush.bf16.msrb.mxu3 %v6092_v31  ;;  %v7761_v10 = vpop.f32.mrf.mxu3 }
 0x5dc   : > { %4398 = vmatpush.bf16.msrb.mxu3 %v6093_v51  ;;  %v8651_v51 = vld [vmem:[#allocation104_spill] sm:$0xff] }
 0x5df   : > { %v7770_v15 = vpop.f32.mrf.mxu2 }
 0x5e0   : > { %4399 = vmatpush.bf16.msrb.mxu3 %v6094_v1  ;;  %v7767_v18 = vpop.f32.mrf.mxu3 }
 0x5e4   : > { %4400 = vmatpush.bf16.msrb.mxu3 %v6095_v11 }
 0x5e7   : > { %4009 = vmatmul.bf16.gmra.mxu3 %v8647_v26  ;;  %v7774_v4 = vpop.f32.mrf.mxu2 }
 0x5e8   : > { %v7772_v19 = vpop.f32.mrf.mxu3 }
 0x5ef   : > { %v7779_v17 = vpop.f32.mrf.mxu2 }
 0x5f0   : > { %v7776_v7 = vpop.f32.mrf.mxu3 }
 0x5f7   : > { %4014 = vmatmul.bf16.gmra.mxu3 %v8648_v55  ;;  %v7783_v16 = vpop.f32.mrf.mxu2  ;;  %v8652_v55 = vld [vmem:[#allocation107_spill] sm:$0xff] }
 0x5f8   : > { %v7781_v14 = vpop.f32.mrf.mxu3  ;;  %v3356_v6 = vpack.c.bf16 %v7783_v16, %v7783_v16 }
 0x5ff   : > { %v3281_v58 = vpop.f32.mrf.mxu2 }
 0x600   : > { %v7786_v57 = vpop.f32.mrf.mxu3 }
 0x607   : > { %4019 = vmatmul.bf16.gmra.mxu3 %v8649_v24  ;;  %v3283_v31 = vpop.f32.mrf.mxu2 }
 0x608   : > { %v7788_v56 = vpop.f32.mrf.mxu3  ;;  %v3358_v0 = vpack.c.bf16 %v3283_v31, %v3283_v31 }
 0x610   : > { %v7791_v11 = vpop.f32.mrf.mxu3 }
 0x617   : > { %4024 = vmatmul.bf16.gmra.mxu3 %v8650_v45  ;;  %v4137_v45 = vpack.c.bf16 %v7741_v61, %v7741_v61 }
 0x618   : > { %v7794_v24 = vpop.f32.mrf.mxu3 }
 0x619   : > { %v4265_v30 = vunpack.c.l.b16 %v4137_v45  ;;  %v3357_v45 = vpack.c.bf16 %v3281_v58, %v3281_v58 }
 0x620   : > { %v7800_v3 = vpop.f32.mrf.mxu3 }
 0x625   : > { %v3286_v1 = vpop.f32.mrf.mxu2 }
 0x626   : > { %v3359_v61 = vpack.c.bf16 %v3286_v1, %v3286_v1 }
 0x627   : > { %4029 = vmatmul.bf16.gmra.mxu3 %v8651_v51  ;;  %v4329_v51 = vpack.c.b16 %v4266_v35, %v4265_v30 }
 0x628   : > { %v3423_v35 = vunpack.c.l.bf16 %v3359_v61  ;;  %v8655_v61 = vld [vmem:[#allocation74_spill] sm:$0xff] }
 0x62d   : > { %v3288_v26 = vpop.f32.mrf.mxu2 }
 0x62e   : > { %v3360_v36 = vpack.c.bf16 %v3288_v26, %v3288_v26  ;;  %v8654_v26 = vld [vmem:[#allocation41_spill] sm:$0xff] }
 0x630   : > { %v3424_v62 = vunpack.c.l.bf16 %v3360_v36 }
 0x632   : > { %v3488_v43 = vadd.f32 %v3424_v62, %v8654_v26 }
 0x635   : > { %v3291_v59 = vpop.f32.mrf.mxu2 }
 0x636   : > { %v3361_v33 = vpack.c.bf16 %v3291_v59, %v3291_v59 }
 0x637   : > { %4034 = vmatmul.bf16.gmra.mxu3 %v8652_v55  ;;  %v4140_v55 = vpack.c.bf16 %v3813_v34, %v3813_v34  ;;  %v8653_v34 = vld [vmem:[#allocation75_spill] sm:$0xff] }
 0x638   : > { %v3425_v49 = vunpack.c.l.bf16 %v3361_v33  ;;  %v3355_v33 = vpack.c.bf16 %v7779_v17, %v7779_v17 }
 0x639   : > { %v4268_v20 = vunpack.c.l.b16 %v4140_v55 }
 0x63a   : > { %v3489_v41 = vadd.f32 %v3425_v49, %v8653_v34  ;;  %v8656_v49 = vld [vmem:[#allocation42_spill] sm:$0xff] }
 0x63b   : > { %v4330_v30 = vpack.c.b16 %v4268_v20, %v4267_v47  ;;  %v3422_v20 = vunpack.c.l.bf16 %v3358_v0 }
 0x63c   : > { %v3681_v55 = vmax.f32 %v3489_v41, 0.0 }
 0x63d   : > { %v3293_v39 = vpop.f32.mrf.mxu2  ;;  %v3486_v62 = vadd.f32 %v3422_v20, %v7554_v9 }
 0x63e   : > { %v3362_v1 = vpack.c.bf16 %v3293_v39, %v3293_v39  ;;  %v3420_v39 = vunpack.c.l.bf16 %v3356_v6 }
 0x645   : > { %v3296_v48 = vpop.f32.mrf.mxu2 }
 0x646   : > { %v3363_v21 = vpack.c.bf16 %v3296_v48, %v3296_v48  ;;  %v3487_v48 = vadd.f32 %v3423_v35, %v7550_v50  ;;  %v3745_v50 = vpack.c.bf16 %v3681_v55, %v3681_v55 }
 0x647   : > { %4401 = vmatmul.bf16.vlgmr.msrb.gmra.mxu3 %v4329_v51 }
 0x648   : > { %v3427_v47 = vunpack.c.l.bf16 %v3363_v21  ;;  %v3354_v21 = vpack.c.bf16 %v7774_v4, %v7774_v4 }
 0x64a   : > { %v4000_v44 = vpop.f32.mrf.mxu3  ;;  %v3491_v17 = vadd.f32 %v3427_v47, %v8655_v61 }
 0x64b   : > { %v4169_v42 = vpack.c.bf16 %v4000_v44, %v4000_v44  ;;  %v3421_v44 = vunpack.c.l.bf16 %v3357_v45  ;;  %v3419_v45 = vunpack.c.l.bf16 %v3355_v33  ;;  %v3352_v33 = vpack.c.bf16 %v7765_v12, %v7765_v12 }
 0x64c   : > { %v3683_v0 = vmax.f32 %v3491_v17, 0.0  ;;  %v3349_v12 = vpack.c.bf16 %v7754_v53, %v7754_v53 }
 0x64d   : > { %v3298_v51 = vpop.f32.mrf.mxu2  ;;  %v7813_v31 = vunpack.c.l.b16 %v4169_v42  ;;  %v3426_v42 = vunpack.c.l.bf16 %v3362_v1  ;;  %v3485_v41 = vadd.f32 %v3421_v44, %v7559_v38  ;;  %v3351_v1 = vpack.c.bf16 %v7763_v46, %v7763_v46  ;;  %v8658_v44 = vld [vmem:[#allocation73_spill] sm:$0xff]  ;;  %v8659_v38 = vld [vmem:[#allocation72_spill] sm:$0xff] }
 0x64e   : > { %v3364_v29 = vpack.c.bf16 %v3298_v51, %v3298_v51  ;;  %v3747_v4 = vpack.c.bf16 %v3683_v0, %v3683_v0  ;;  %v3483_v16 = vadd.f32 %v3419_v45, %v8658_v44  ;;  %v4270_v46 = vunpack.c.l.b16 %v4142_v27 }
 0x64f   : > { %v3677_v9 = vmax.f32 %v3485_v41, 0.0  ;;  %v3415_v45 = vunpack.c.l.bf16 %v3351_v1  ;;  %v3413_v34 = vunpack.c.l.bf16 %v3349_v12  ;;  %v8665_v12 = vld [vmem:[#allocation67_spill] sm:$0xff] }
 0x650   : > { %v3428_v58 = vunpack.c.l.bf16 %v3364_v29  ;;  %v3679_v29 = vmax.f32 %v3487_v48, 0.0  ;;  %v4070_v20 = vunpack.c.l.b16 %v3747_v4  ;;  %v8660_v4 = vld [vmem:[#allocation94_spill] sm:$0xff] }
 0x652   : > { %v4002_v32 = vpop.f32.mrf.mxu3  ;;  %v3492_v51 = vadd.f32 %v3428_v58, %v8656_v49  ;;  %v3680_v58 = vmax.f32 %v3488_v43, 0.0  ;;  %v3678_v43 = vmax.f32 %v3486_v62, 0.0  ;;  %v3743_v0 = vpack.c.bf16 %v3679_v29, %v3679_v29 }
 0x653   : > { %v4170_v59 = vpack.c.bf16 %v4002_v32, %v4002_v32  ;;  %v3353_v32 = vpack.c.bf16 %v7770_v15, %v7770_v15  ;;  %v4068_v49 = vunpack.c.l.b16 %v3745_v50  ;;  %v3675_v62 = vmax.f32 %v3483_v16, 0.0 }
 0x654   : > { %v3684_v35 = vmax.f32 %v3492_v51, 0.0  ;;  %v3418_v51 = vunpack.c.l.bf16 %v3354_v21  ;;  %v4066_v27 = vunpack.c.l.b16 %v3743_v0 }
 0x655   : > { %v7815_v36 = vunpack.c.l.b16 %v4170_v59  ;;  %v8657_v59 = vld [vmem:[#allocation68_spill] sm:$0xff]  ;;  %v3417_v6 = vunpack.c.l.bf16 %v3353_v32  ;;  %v3350_v32 = vpack.c.bf16 %v7758_v28, %v7758_v28  ;;  %v4331_v28 = vpack.c.b16 %v4270_v46, %v7804_v60 }
 0x656   : > { %v3490_v47 = vadd.f32 %v3426_v42, %v8657_v59  ;;  %v3484_v42 = vadd.f32 %v3420_v39, %v8659_v38  ;;  %v8661_v39 = vld [vmem:[#allocation93_spill] sm:$0xff]  ;;  %v3739_v16 = vpack.c.bf16 %v3675_v62, %v3675_v62 }
 0x657   : > { %4406 = vmatmul.bf16.gmra.mxu3 %v4330_v30  ;;  %v3748_v30 = vpack.c.bf16 %v3684_v35, %v3684_v35  ;;  %v3744_v35 = vpack.c.bf16 %v3680_v58, %v3680_v58  ;;  %v3482_v41 = vadd.f32 %v3418_v51, %v8661_v39  ;;  %v3741_v58 = vpack.c.bf16 %v3677_v9, %v3677_v9 }
 0x658   : > { %v3682_v17 = vmax.f32 %v3490_v47, 0.0  ;;  %v3416_v47 = vunpack.c.l.bf16 %v3352_v33  ;;  %v3676_v29 = vmax.f32 %v3484_v42, 0.0  ;;  %v3414_v1 = vunpack.c.l.bf16 %v3350_v32  ;;  %v8662_v33 = vld [vmem:[#allocation71_spill] sm:$0xff] }
 0x659   : > { %v4071_v48 = vunpack.c.l.b16 %v3748_v30  ;;  %v3481_v30 = vadd.f32 %v3417_v6, %v8660_v4  ;;  %v8663_v6 = vld [vmem:[#allocation70_spill] sm:$0xff] }
 0x65a   : > { %v4005_v15 = vpop.f32.mrf.mxu3  ;;  %v3746_v55 = vpack.c.bf16 %v3682_v17, %v3682_v17  ;;  %v3742_v17 = vpack.c.bf16 %v3678_v43, %v3678_v43  ;;  %v3480_v61 = vadd.f32 %v3416_v47, %v8663_v6  ;;  %v3740_v42 = vpack.c.bf16 %v3676_v29, %v3676_v29 }
 0x65b   : > { %v4079_v26 = vpack.c.b16 %v4071_v48, %v4070_v20  ;;  %v4171_v50 = vpack.c.bf16 %v4005_v15, %v4005_v15  ;;  %v4067_v48 = vunpack.c.l.b16 %v3744_v35  ;;  %v3673_v51 = vmax.f32 %v3481_v30, 0.0  ;;  %v8664_v35 = vld [vmem:[#allocation79_spill] sm:$0xff] }
 0x65c   : > { %v4069_v21 = vunpack.c.l.b16 %v3746_v55  ;;  %v3479_v55 = vadd.f32 %v3415_v45, %v8662_v33  ;;  %v4064_v43 = vunpack.c.l.b16 %v3741_v58  ;;  %v3477_v46 = vadd.f32 %v3413_v34, %v8664_v35 }
 0x65d   : > { %4088 = vmatpush.bf16.msrb.mxu1 %v4079_v26  ;;  %v3674_v26 = vmax.f32 %v3482_v41, 0.0  ;;  %v7845_v9 = vunpack.c.l.b16 %v4171_v50  ;;  %v4077_v0 = vpack.c.b16 %v4067_v48, %v4066_v27  ;;  %v3478_v32 = vadd.f32 %v3414_v1, %v8665_v12 }
 0x65e   : > { %v4078_v53 = vpack.c.b16 %v4069_v21, %v4068_v49  ;;  %v4065_v49 = vunpack.c.l.b16 %v3742_v17  ;;  %v3671_v21 = vmax.f32 %v3479_v55, 0.0  ;;  %v3672_v45 = vmax.f32 %v3480_v61, 0.0 }
 0x65f   : > { %v3737_v47 = vpack.c.bf16 %v3673_v51, %v3673_v51  ;;  %v3738_v30 = vpack.c.bf16 %v3674_v26, %v3674_v26  ;;  %v4062_v41 = vunpack.c.l.b16 %v3739_v16  ;;  %v4143_v58 = vpack.c.bf16 %v7761_v10, %v7761_v10 }
 0x660   : > { %v4076_v29 = vpack.c.b16 %v4065_v49, %v4064_v43  ;;  %v4144_v50 = vpack.c.bf16 %v7767_v18, %v7767_v18  ;;  %v3669_v17 = vmax.f32 %v3477_v46, 0.0  ;;  %v3670_v34 = vmax.f32 %v3478_v32, 0.0 }
 0x661   : > { %4089 = vmatpush.bf16.msrb.mxu1 %v4078_v53  ;;  %v3735_v27 = vpack.c.bf16 %v3671_v21, %v3671_v21  ;;  %v4060_v48 = vunpack.c.l.b16 %v3737_v47  ;;  %v4061_v53 = vunpack.c.l.b16 %v3738_v30 }
 0x662   : > { %v4007_v20 = vpop.f32.mrf.mxu3  ;;  %v4272_v1 = vunpack.c.l.b16 %v4144_v50  ;;  %v3733_v55 = vpack.c.bf16 %v3669_v17, %v3669_v17  ;;  %v3734_v26 = vpack.c.bf16 %v3670_v34, %v3670_v34 }
 0x663   : > { %v4172_v59 = vpack.c.bf16 %v4007_v20, %v4007_v20  ;;  %v3736_v20 = vpack.c.bf16 %v3672_v45, %v3672_v45  ;;  %v4058_v16 = vunpack.c.l.b16 %v3735_v27  ;;  %v4074_v43 = vpack.c.b16 %v4061_v53, %v4060_v48 }
 0x664   : > { %v4056_v32 = vunpack.c.l.b16 %v3733_v55  ;;  %v4057_v21 = vunpack.c.l.b16 %v3734_v26  ;;  %v3903_v26 = vpop.f32.mrf.mxu1 }
 0x665   : > { %v7847_v15 = vunpack.c.l.b16 %v4172_v59  ;;  %4090 = vmatpush.bf16.msrb.mxu1 %v4077_v0  ;;  %v4063_v59 = vunpack.c.l.b16 %v3740_v42  ;;  %v4059_v42 = vunpack.c.l.b16 %v3736_v20 }
 0x667   : > { %4411 = vmatmul.bf16.gmra.mxu3 %v4331_v28  ;;  %v4346_v60 = vpack.c.b16 %v7847_v15, %v7845_v9  ;;  %v4075_v61 = vpack.c.b16 %v4063_v59, %v4062_v41  ;;  %v4271_v28 = vunpack.c.l.b16 %v4143_v58  ;;  %v4073_v45 = vpack.c.b16 %v4059_v42, %v4058_v16 }
 0x668   : > { %v4072_v41 = vpack.c.b16 %v4057_v21, %v4056_v32  ;;  %v4145_v59 = vpack.c.bf16 %v7772_v19, %v7772_v19 }
 0x669   : > { %4091 = vmatpush.bf16.msrb.mxu1 %v4076_v29  ;;  %v4332_v46 = vpack.c.b16 %v4272_v1, %v4271_v28 }
 0x66a   : > { %v4010_v62 = vpop.f32.mrf.mxu3  ;;  %v4273_v29 = vunpack.c.l.b16 %v4145_v59 }
 0x66b   : > { %v4173_v51 = vpack.c.bf16 %v4010_v62, %v4010_v62  ;;  %v4146_v62 = vpack.c.bf16 %v7776_v7, %v7776_v7  ;;  %v4147_v7 = vpack.c.bf16 %v7781_v14, %v7781_v14 }
 0x66d   : > { %4092 = vmatpush.bf16.msrb.mxu1 %v4075_v61  ;;  %v7857_v18 = vunpack.c.l.b16 %v4173_v51  ;;  %v4274_v58 = vunpack.c.l.b16 %v4146_v62  ;;  %v4275_v61 = vunpack.c.l.b16 %v4147_v7 }
 0x66f   : > { %v4333_v48 = vpack.c.b16 %v4274_v58, %v4273_v29 }
 0x671   : > { %4093 = vmatpush.bf16.msrb.mxu1 %v4074_v43 }
 0x672   : > { %v4012_v10 = vpop.f32.mrf.mxu3 }
 0x673   : > { %v4174_v49 = vpack.c.bf16 %v4012_v10, %v4012_v10 }
 0x675   : > { %v7859_v0 = vunpack.c.l.b16 %v4174_v49  ;;  %4094 = vmatpush.bf16.msrb.mxu1 %v4073_v45  ;;  %v3905_v49 = vpop.f32.mrf.mxu1 }
 0x677   : > { %4416 = vmatmul.bf16.gmra.mxu3 %v4332_v46  ;;  %v4347_v47 = vpack.c.b16 %v7859_v0, %v7857_v18 }
 0x679   : > { %4095 = vmatpush.bf16.msrb.mxu1 %v4072_v41 }
 0x67a   : > { %v4015_v30 = vpop.f32.mrf.mxu3 }
 0x67b   : > { %v4175_v50 = vpack.c.bf16 %v4015_v30, %v4015_v30 }
 0x67c   : > { %4096 = vmatmul.bf16.vlgmr.msrb.gmra.mxu1 %v8587_v52  ;;  %v4148_v52 = vpack.c.bf16 %v7786_v57, %v7786_v57  ;;  %v4149_v57 = vpack.c.bf16 %v7788_v56, %v7788_v56 }
 0x67d   : > { %v7868_v27 = vunpack.c.l.b16 %v4175_v50  ;;  %v3908_v29 = vpop.f32.mrf.mxu1 }
 0x67e   : > { %v4276_v28 = vunpack.c.l.b16 %v4148_v52  ;;  %v4277_v46 = vunpack.c.l.b16 %v4149_v57 }
 0x680   : > { %v4334_v10 = vpack.c.b16 %v4276_v28, %v4275_v61 }
 0x682   : > { %v4017_v17 = vpop.f32.mrf.mxu3 }
 0x683   : > { %v4176_v34 = vpack.c.bf16 %v4017_v17, %v4017_v17 }
 0x685   : > { %v7870_v20 = vunpack.c.l.b16 %v4176_v34 }
 0x687   : > { %4421 = vmatmul.bf16.gmra.mxu3 %v4333_v48  ;;  %v4348_v53 = vpack.c.b16 %v7870_v20, %v7868_v27 }
 0x68a   : > { %v4020_v19 = vpop.f32.mrf.mxu3 }
 0x68b   : > { %v4177_v1 = vpack.c.bf16 %v4020_v19, %v4020_v19  ;;  %v3910_v19 = vpop.f32.mrf.mxu1 }
 0x68c   : > { %4101 = vmatmul.bf16.gmra.mxu1 %v8591_v63  ;;  %v4150_v63 = vpack.c.bf16 %v7791_v11, %v7791_v11  ;;  %v4151_v11 = vpack.c.bf16 %v7794_v24, %v7794_v24 }
 0x68d   : > { %v7879_v16 = vunpack.c.l.b16 %v4177_v1 }
 0x68e   : > { %v4278_v32 = vunpack.c.l.b16 %v4150_v63  ;;  %v4279_v50 = vunpack.c.l.b16 %v4151_v11 }
 0x690   : > { %v4335_v62 = vpack.c.b16 %v4278_v32, %v4277_v46 }
 0x692   : > { %v4022_v55 = vpop.f32.mrf.mxu3 }
 0x693   : > { %v4178_v51 = vpack.c.bf16 %v4022_v55, %v4022_v55  ;;  %v3913_v55 = vpop.f32.mrf.mxu1 }
 0x695   : > { %v7881_v42 = vunpack.c.l.b16 %v4178_v51  ;;  %v4154_v51 = vpack.c.bf16 %v3905_v49, %v3905_v49  ;;  %v4155_v49 = vpack.c.bf16 %v3908_v29, %v3908_v29 }
 0x697   : > { %4426 = vmatmul.bf16.gmra.mxu3 %v4334_v10  ;;  %v4349_v14 = vpack.c.b16 %v7881_v42, %v7879_v16 }
 0x69a   : > { %v4025_v43 = vpop.f32.mrf.mxu3 }
 0x69b   : > { %v4179_v21 = vpack.c.bf16 %v4025_v43, %v4025_v43  ;;  %v4282_v43 = vunpack.c.l.b16 %v4154_v51 }
 0x69c   : > { %4106 = vmatmul.bf16.gmra.mxu1 %v8595_v13  ;;  %v4152_v13 = vpack.c.bf16 %v7800_v3, %v7800_v3  ;;  %v4153_v3 = vpack.c.bf16 %v3903_v26, %v3903_v26 }
 0x69d   : > { %v7890_v41 = vunpack.c.l.b16 %v4179_v21 }
 0x69e   : > { %v4280_v17 = vunpack.c.l.b16 %v4152_v13  ;;  %v4283_v13 = vunpack.c.l.b16 %v4155_v49  ;;  %v8666_v49 = vld [vmem:[#allocation99_spill] sm:$0xff] }
 0x6a0   : > { %v4336_v28 = vpack.c.b16 %v4280_v17, %v4279_v50 }
 0x6a2   : > { %v4027_v45 = vpop.f32.mrf.mxu3 }
 0x6a3   : > { %v4180_v30 = vpack.c.bf16 %v4027_v45, %v4027_v45  ;;  %v3915_v45 = vpop.f32.mrf.mxu1 }
 0x6a5   : > { %v7892_v59 = vunpack.c.l.b16 %v4180_v30 }
 0x6a7   : > { %4431 = vmatmul.bf16.gmra.mxu3 %v4335_v62  ;;  %v4350_v56 = vpack.c.b16 %v7892_v59, %v7890_v41 }
 0x6aa   : > { %v4030_v58 = vpop.f32.mrf.mxu3 }
 0x6ab   : > { %v4181_v34 = vpack.c.bf16 %v4030_v58, %v4030_v58  ;;  %v3918_v11 = vpop.f32.mrf.mxu1 }
 0x6ac   : > { %4111 = vmatmul.bf16.gmra.mxu1 %v8599_v23  ;;  %v4281_v23 = vunpack.c.l.b16 %v4153_v3 }
 0x6ad   : > { %v7901_v52 = vunpack.c.l.b16 %v4181_v34 }
 0x6ae   : > { %v4337_v21 = vpack.c.b16 %v4282_v43, %v4281_v23 }
 0x6b2   : > { %v4032_v48 = vpop.f32.mrf.mxu3 }
 0x6b3   : > { %v4182_v7 = vpack.c.bf16 %v4032_v48, %v4032_v48 }
 0x6b5   : > { %v7903_v61 = vunpack.c.l.b16 %v4182_v7 }
 0x6b7   : > { %4436 = vmatmul.bf16.gmra.mxu3 %v4336_v28  ;;  %v4351_v24 = vpack.c.b16 %v7903_v61, %v7901_v52 }
 0x6ba   : > { %v4035_v1 = vpop.f32.mrf.mxu3 }
 0x6bb   : > { %v4183_v10 = vpack.c.bf16 %v4035_v1, %v4035_v1 }
 0x6bc   : > { %4116 = vmatmul.bf16.gmra.mxu1 %v8603_v22  ;;  %v4156_v22 = vpack.c.bf16 %v3910_v19, %v3910_v19 }
 0x6bd   : > { %v7908_v46 = vunpack.c.l.b16 %v4183_v10  ;;  %v3920_v10 = vpop.f32.mrf.mxu1 }
 0x6be   : > { %v4284_v17 = vunpack.c.l.b16 %v4156_v22 }
 0x6c0   : > { %v4338_v1 = vpack.c.b16 %v4284_v17, %v4283_v13 }
 0x6c2   : > { %v4037_v57 = vpop.f32.mrf.mxu3 }
 0x6c3   : > { %v4184_v63 = vpack.c.bf16 %v4037_v57, %v4037_v57 }
 0x6c5   : > { %v7910_v32 = vunpack.c.l.b16 %v4184_v63 }
 0x6c7   : > { %4441 = vmatmul.bf16.gmra.mxu3 %v4337_v21 }
 0x6ca   : > { %v4402_v62 = vpop.f32.mrf.mxu3 }
 0x6cb   : > { %v4562_v26 = vpack.c.bf16 %v4402_v62, %v4402_v62 }
 0x6cc   : > { %4121 = vmatmul.bf16.gmra.mxu1 %v8604_v2  ;;  %v4157_v2 = vpack.c.bf16 %v3913_v55, %v3913_v55 }
 0x6cd   : > { %v4626_v58 = vunpack.c.l.bf16 %v4562_v26 }
 0x6ce   : > { %v4285_v26 = vunpack.c.l.b16 %v4157_v2 }
 0x6cf   : > { %v4690_v50 = vadd.f32 %v4626_v58, %v8588_v5  ;;  %v4158_v5 = vpack.c.bf16 %v3915_v45, %v3915_v45 }
 0x6d1   : > { %v4882_v7 = vmax.f32 %v4690_v50, 0.0  ;;  %v3923_v50 = vpop.f32.mrf.mxu1 }
 0x6d2   : > { %v4404_v34 = vpop.f32.mrf.mxu3 }
 0x6d3   : > { %v4563_v48 = vpack.c.bf16 %v4404_v34, %v4404_v34  ;;  %v4946_v51 = vpack.c.bf16 %v4882_v7, %v4882_v7  ;;  %v8667_v7 = vld [vmem:[#allocation100_spill] sm:$0xff] }
 0x6d5   : > { %v4627_v28 = vunpack.c.l.bf16 %v4563_v48  ;;  %v5085_v57 = vunpack.c.l.b16 %v4946_v51 }
 0x6d7   : > { %v4691_v3 = vadd.f32 %v4627_v28, %v8589_v25  ;;  %4446 = vmatmul.bf16.gmra.mxu3 %v4338_v1  ;;  %v4286_v25 = vunpack.c.l.b16 %v4158_v5  ;;  %v8669_v5 = vld [vmem:[#allocation102_spill] sm:$0xff] }
 0x6d9   : > { %v4883_v23 = vmax.f32 %v4691_v3, 0.0  ;;  %v4339_v48 = vpack.c.b16 %v4286_v25, %v4285_v26  ;;  %v3925_v2 = vpop.f32.mrf.mxu1 }
 0x6da   : > { %v4407_v29 = vpop.f32.mrf.mxu3 }
 0x6db   : > { %v4947_v19 = vpack.c.bf16 %v4883_v23, %v4883_v23  ;;  %v4564_v43 = vpack.c.bf16 %v4407_v29, %v4407_v29  ;;  %v4159_v23 = vpack.c.bf16 %v3918_v11, %v3918_v11 }
 0x6dc   : > { %4126 = vmatmul.bf16.gmra.mxu1 %v8605_v54 }
 0x6dd   : > { %v5086_v63 = vunpack.c.l.b16 %v4947_v19  ;;  %v4628_v21 = vunpack.c.l.bf16 %v4564_v43  ;;  %v4160_v43 = vpack.c.bf16 %v3920_v10, %v3920_v10 }
 0x6df   : > { %v7917_v62 = vpack.c.b16 %v5086_v63, %v5085_v57  ;;  %v4692_v58 = vadd.f32 %v4628_v21, %v8666_v49  ;;  %v8668_v63 = vld [vmem:[#allocation59_spill] sm:$0xff]  ;;  %v4287_v21 = vunpack.c.l.b16 %v4159_v23  ;;  %v4288_v49 = vunpack.c.l.b16 %v4160_v43  ;;  %v8671_v43 = vld [vmem:[#allocation105_spill] sm:$0xff] }
 0x6e1   : > { %v4884_v17 = vmax.f32 %v4692_v58, 0.0 }
 0x6e2   : > { %v4409_v22 = vpop.f32.mrf.mxu3 }
 0x6e3   : > { %v4565_v13 = vpack.c.bf16 %v4409_v22, %v4409_v22  ;;  %v4948_v28 = vpack.c.bf16 %v4884_v17, %v4884_v17  ;;  %v4340_v17 = vpack.c.b16 %v4288_v49, %v4287_v21 }
 0x6e5   : > { %v4629_v34 = vunpack.c.l.bf16 %v4565_v13  ;;  %v5087_v54 = vunpack.c.l.b16 %v4948_v28 }
 0x6e7   : > { %v4693_v55 = vadd.f32 %v4629_v34, %v8667_v7  ;;  %4451 = vmatmul.bf16.gmra.mxu3 %v4339_v48  ;;  %v8670_v34 = vld [vmem:[#allocation103_spill] sm:$0xff]  ;;  %v3928_v48 = vpop.f32.mrf.mxu1 }
 0x6e9   : > { %v4885_v1 = vmax.f32 %v4693_v55, 0.0 }
 0x6ea   : > { %v4412_v45 = vpop.f32.mrf.mxu3 }
 0x6eb   : > { %v4949_v3 = vpack.c.bf16 %v4885_v1, %v4885_v1  ;;  %v4566_v51 = vpack.c.bf16 %v4412_v45, %v4412_v45  ;;  %v4161_v45 = vpack.c.bf16 %v3923_v50, %v3923_v50 }
 0x6ec   : > { %4131 = vmatmul.bf16.gmra.mxu1 %v8668_v63 }
 0x6ed   : > { %v5088_v29 = vunpack.c.l.b16 %v4949_v3  ;;  %v4630_v19 = vunpack.c.l.bf16 %v4566_v51 }
 0x6ef   : > { %v7922_v57 = vpack.c.b16 %v5088_v29, %v5087_v54  ;;  %v4694_v26 = vadd.f32 %v4630_v19, %v8669_v5  ;;  %v4162_v54 = vpack.c.bf16 %v3925_v2, %v3925_v2  ;;  %v4289_v19 = vunpack.c.l.b16 %v4161_v45 }
 0x6f1   : > { %v4886_v22 = vmax.f32 %v4694_v26, 0.0  ;;  %v4290_v21 = vunpack.c.l.b16 %v4162_v54  ;;  %v3930_v26 = vpop.f32.mrf.mxu1 }
 0x6f2   : > { %v4414_v58 = vpop.f32.mrf.mxu3 }
 0x6f3   : > { %v4567_v25 = vpack.c.bf16 %v4414_v58, %v4414_v58  ;;  %v4950_v7 = vpack.c.bf16 %v4886_v22, %v4886_v22  ;;  %v4341_v22 = vpack.c.b16 %v4290_v21, %v4289_v19 }
 0x6f5   : > { %v4631_v13 = vunpack.c.l.bf16 %v4567_v25  ;;  %v5089_v3 = vunpack.c.l.b16 %v4950_v7 }
 0x6f7   : > { %v4695_v11 = vadd.f32 %v4631_v13, %v8670_v34  ;;  %4456 = vmatmul.bf16.gmra.mxu3 %v4340_v17  ;;  %v8672_v13 = vld [vmem:[#allocation106_spill] sm:$0xff] }
 0x6f9   : > { %v4887_v10 = vmax.f32 %v4695_v11, 0.0  ;;  %v3933_v2 = vpop.f32.mrf.mxu1 }
 0x6fa   : > { %v4417_v55 = vpop.f32.mrf.mxu3 }
 0x6fb   : > { %v4951_v28 = vpack.c.bf16 %v4887_v10, %v4887_v10  ;;  %v4568_v1 = vpack.c.bf16 %v4417_v55, %v4417_v55 }
 0x6fd   : > { %v5090_v51 = vunpack.c.l.b16 %v4951_v28  ;;  %v4632_v23 = vunpack.c.l.bf16 %v4568_v1  ;;  %v4163_v28 = vpack.c.bf16 %v3928_v48, %v3928_v48  ;;  %v4164_v1 = vpack.c.bf16 %v3930_v26, %v3930_v26 }
 0x6ff   : > { %v7927_v29 = vpack.c.b16 %v5090_v51, %v5089_v3  ;;  %v4696_v63 = vadd.f32 %v4632_v23, %v8671_v43  ;;  %v4291_v3 = vunpack.c.l.b16 %v4163_v28  ;;  %v4292_v51 = vunpack.c.l.b16 %v4164_v1 }
 0x701   : > { %v4888_v58 = vmax.f32 %v4696_v63, 0.0  ;;  %v4342_v54 = vpack.c.b16 %v4292_v51, %v4291_v3  ;;  %v3935_v43 = vpop.f32.mrf.mxu1  ;;  %v4165_v63 = vpack.c.bf16 %v3933_v2, %v3933_v2 }
 0x702   : > { %v4419_v5 = vpop.f32.mrf.mxu3  ;;  %v4166_v21 = vpack.c.bf16 %v3935_v43, %v3935_v43 }
 0x703   : > { %v4569_v49 = vpack.c.bf16 %v4419_v5, %v4419_v5  ;;  %v4952_v50 = vpack.c.bf16 %v4888_v58, %v4888_v58 }
 0x704   : > { %v4294_v58 = vunpack.c.l.b16 %v4166_v21  ;;  %v8673_v21 = vld [vmem:[#allocation108_spill] sm:$0xff] }
 0x705   : > { %v4633_v25 = vunpack.c.l.bf16 %v4569_v49  ;;  %v5091_v10 = vunpack.c.l.b16 %v4952_v50  ;;  %v4293_v49 = vunpack.c.l.b16 %v4165_v63 }
 0x707   : > { %v4697_v17 = vadd.f32 %v4633_v25, %v8672_v13  ;;  %4461 = vmatmul.bf16.gmra.mxu3 %v4341_v22  ;;  %v4343_v22 = vpack.c.b16 %v4294_v58, %v4293_v49 }
 0x709   : > { %v4889_v34 = vmax.f32 %v4697_v17, 0.0  ;;  %v3938_v5 = vpop.f32.mrf.mxu1 }
 0x70a   : > { %v4422_v11 = vpop.f32.mrf.mxu3  ;;  %v4167_v26 = vpack.c.bf16 %v3938_v5, %v3938_v5 }
 0x70b   : > { %v4953_v7 = vpack.c.bf16 %v4889_v34, %v4889_v34  ;;  %v4570_v30 = vpack.c.bf16 %v4422_v11, %v4422_v11 }
 0x70c   : > { %v4295_v50 = vunpack.c.l.b16 %v4167_v26 }
 0x70d   : > { %v5092_v55 = vunpack.c.l.b16 %v4953_v7 }
 0x70f   : > { %v7931_v45 = vpack.c.b16 %v5092_v55, %v5091_v10 }
 0x711   : > { %v3940_v48 = vpop.f32.mrf.mxu1 }
 0x712   : > { %v4424_v23 = vpop.f32.mrf.mxu3  ;;  %v4168_v17 = vpack.c.bf16 %v3940_v48, %v3940_v48  ;;  %v8674_v48 = vld [vmem:[#allocation109_spill] sm:$0xff] }
 0x713   : > { %v4571_v58 = vpack.c.bf16 %v4424_v23, %v4424_v23  ;;  %v8676_v23 = vpack.c.b16 %v7815_v36, %v7813_v31 }
 0x714   : > { %v4296_v34 = vunpack.c.l.b16 %v4168_v17 }
 0x716   : > { %v4344_v10 = vpack.c.b16 %v4296_v34, %v4295_v50 }
 0x717   : > { %4466 = vmatmul.bf16.gmra.mxu3 %v4342_v54 }
 0x71a   : > { %v4427_v19 = vpop.f32.mrf.mxu3 }
 0x71b   : > { %v4572_v43 = vpack.c.bf16 %v4427_v19, %v4427_v19  ;;  %v8675_v19 = vld [vmem:[#allocation111_spill] sm:$0xff] }
 0x71d   : > { %v4636_v50 = vunpack.c.l.bf16 %v4572_v43  ;;  %v8678_v43 = vld [vmem:[#allocation114_spill] sm:$0xff] }
 0x722   : > { %v4429_v25 = vpop.f32.mrf.mxu3 }
 0x723   : > { %v4573_v51 = vpack.c.bf16 %v4429_v25, %v4429_v25 }
 0x725   : > { %v4637_v5 = vunpack.c.l.bf16 %v4573_v51 }
 0x727   : > { %4471 = vmatmul.bf16.gmra.mxu3 %v4343_v22  ;;  %v4701_v25 = vadd.f32 %v4637_v5, %v8608_v37 }
 0x72a   : > { %v4432_v13 = vpop.f32.mrf.mxu3 }
 0x72b   : > { %v4574_v2 = vpack.c.bf16 %v4432_v13, %v4432_v13  ;;  %v4635_v13 = vunpack.c.l.bf16 %v4571_v58 }
 0x72d   : > { %v4638_v63 = vunpack.c.l.bf16 %v4574_v2  ;;  %v8677_v2 = vld [vmem:[#allocation113_spill] sm:$0xff] }
 0x72f   : > { %v4702_v34 = vadd.f32 %v4638_v63, %v8607_v8  ;;  %v4699_v8 = vadd.f32 %v4635_v13, %v8678_v43  ;;  %v8679_v13 = vld [vmem:[#allocation115_spill] sm:$0xff]  ;;  %v8680_v43 = vld [vmem:[#allocation116_spill] sm:$0xff] }
 0x731   : > { %v4894_v51 = vmax.f32 %v4702_v34, 0.0 }
 0x732   : > { %v4434_v7 = vpop.f32.mrf.mxu3 }
 0x733   : > { %v4575_v28 = vpack.c.bf16 %v4434_v7, %v4434_v7 }
 0x735   : > { %v4639_v54 = vunpack.c.l.bf16 %v4575_v28 }
 0x737   : > { %4476 = vmatmul.bf16.gmra.mxu3 %v4344_v10  ;;  %v4703_v26 = vadd.f32 %v4639_v54, %v8674_v48  ;;  %v4958_v48 = vpack.c.bf16 %v4894_v51, %v4894_v51 }
 0x73a   : > { %v4437_v55 = vpop.f32.mrf.mxu3 }
 0x73b   : > { %v4576_v1 = vpack.c.bf16 %v4437_v55, %v4437_v55  ;;  %v4895_v55 = vmax.f32 %v4703_v26, 0.0 }
 0x73d   : > { %v4640_v3 = vunpack.c.l.bf16 %v4576_v1  ;;  %v4634_v1 = vunpack.c.l.bf16 %v4570_v30  ;;  %v4891_v30 = vmax.f32 %v4699_v8, 0.0 }
 0x73f   : > { %v4704_v49 = vadd.f32 %v4640_v3, %v8673_v21  ;;  %v4700_v3 = vadd.f32 %v4636_v50, %v8677_v2  ;;  %v4893_v21 = vmax.f32 %v4701_v25, 0.0 }
 0x741   : > { %v4896_v7 = vmax.f32 %v4704_v49, 0.0  ;;  %v4959_v49 = vpack.c.bf16 %v4895_v55, %v4895_v55  ;;  %v4892_v5 = vmax.f32 %v4700_v3, 0.0  ;;  %v4955_v55 = vpack.c.bf16 %v4891_v30, %v4891_v30 }
 0x742   : > { %v4439_v22 = vpop.f32.mrf.mxu3 }
 0x743   : > { %v4577_v17 = vpack.c.bf16 %v4439_v22, %v4439_v22  ;;  %v4960_v11 = vpack.c.bf16 %v4896_v7, %v4896_v7  ;;  %v4698_v22 = vadd.f32 %v4634_v1, %v7175_v40  ;;  %v5098_v50 = vunpack.c.l.b16 %v4959_v49 }
 0x745   : > { %v4641_v10 = vunpack.c.l.bf16 %v4577_v17  ;;  %v5099_v26 = vunpack.c.l.b16 %v4960_v11  ;;  %v4957_v17 = vpack.c.bf16 %v4893_v21, %v4893_v21  ;;  %v4890_v7 = vmax.f32 %v4698_v22, 0.0 }
 0x747   : > { %v4705_v28 = vadd.f32 %v4641_v10, %v8675_v19  ;;  %4481 = vmatmul.bf16.gmra.mxu3 %v8676_v23  ;;  %v4956_v10 = vpack.c.bf16 %v4892_v5, %v4892_v5  ;;  %v5097_v19 = vunpack.c.l.b16 %v4958_v48  ;;  %v5096_v23 = vunpack.c.l.b16 %v4957_v17  ;;  %v8681_v17 = vld [vmem:[#allocation117_spill] sm:$0xff] }
 0x748   : > { %v4954_v1 = vpack.c.bf16 %v4890_v7, %v4890_v7  ;;  %v8682_v7 = vld [vmem:[#allocation118_spill] sm:$0xff] }
 0x749   : > { %v4897_v54 = vmax.f32 %v4705_v28, 0.0  ;;  %v5155_v40 = vpack.c.b16 %v5098_v50, %v5097_v19  ;;  %v5095_v3 = vunpack.c.l.b16 %v4956_v10 }
 0x74a   : > { %v4442_v63 = vpop.f32.mrf.mxu3  ;;  %v5093_v21 = vunpack.c.l.b16 %v4954_v1 }
 0x74b   : > { %v4961_v58 = vpack.c.bf16 %v4897_v54, %v4897_v54  ;;  %v4578_v37 = vpack.c.bf16 %v4442_v63, %v4442_v63  ;;  %v5094_v54 = vunpack.c.l.b16 %v4955_v55  ;;  %v5154_v63 = vpack.c.b16 %v5096_v23, %v5095_v3 }
 0x74d   : > { %v5100_v31 = vunpack.c.l.b16 %v4961_v58  ;;  %v4642_v36 = vunpack.c.l.bf16 %v4578_v37  ;;  %v5153_v48 = vpack.c.b16 %v5094_v54, %v5093_v21 }
 0x74f   : > { %v5156_v34 = vpack.c.b16 %v5100_v31, %v5099_v26  ;;  %v4706_v28 = vadd.f32 %v4642_v36, %v8679_v13 }
 0x751   : > { %5213 = vmatpush.bf16.msrb.mxu0 %v5156_v34  ;;  %v4898_v51 = vmax.f32 %v4706_v28, 0.0 }
 0x752   : > { %v4444_v25 = vpop.f32.mrf.mxu3 }
 0x753   : > { %v4579_v2 = vpack.c.bf16 %v4444_v25, %v4444_v25  ;;  %v4962_v49 = vpack.c.bf16 %v4898_v51, %v4898_v51 }
 0x755   : > { %v4643_v11 = vunpack.c.l.bf16 %v4579_v2  ;;  %5214 = vmatpush.bf16.msrb.mxu0 %v5155_v40  ;;  %v5101_v26 = vunpack.c.l.b16 %v4962_v49 }
 0x757   : > { %v4707_v8 = vadd.f32 %v4643_v11, %v8680_v43  ;;  %4486 = vmatmul.bf16.gmra.mxu3 %v4346_v60 }
 0x759   : > { %v4899_v58 = vmax.f32 %v4707_v8, 0.0  ;;  %5215 = vmatpush.bf16.msrb.mxu0 %v5154_v63 }
 0x75a   : > { %v4447_v37 = vpop.f32.mrf.mxu3 }
 0x75b   : > { %v4963_v22 = vpack.c.bf16 %v4899_v58, %v4899_v58  ;;  %v4580_v5 = vpack.c.bf16 %v4447_v37, %v4447_v37  ;;  %v8685_v37 = vld [vmem:[#allocation121_spill] sm:$0xff] }
 0x75d   : > { %v5102_v31 = vunpack.c.l.b16 %v4963_v22  ;;  %v4644_v36 = vunpack.c.l.bf16 %v4580_v5  ;;  %5216 = vmatpush.bf16.msrb.mxu0 %v5153_v48 }
 0x75f   : > { %v7949_v30 = vpack.c.b16 %v5102_v31, %v5101_v26  ;;  %v4708_v50 = vadd.f32 %v4644_v36, %v8681_v17  ;;  %v8686_v36 = vld [vmem:[#allocation122_spill] sm:$0xff] }
 0x761   : > { %5217 = vmatpush.bf16.msrb.mxu0 %v7931_v45  ;;  %v4900_v60 = vmax.f32 %v4708_v50, 0.0 }
 0x762   : > { %v4449_v9 = vpop.f32.mrf.mxu3 }
 0x763   : > { %v4581_v15 = vpack.c.bf16 %v4449_v9, %v4449_v9  ;;  %v4964_v19 = vpack.c.bf16 %v4900_v60, %v4900_v60 }
 0x765   : > { %v4645_v34 = vunpack.c.l.bf16 %v4581_v15  ;;  %5218 = vmatpush.bf16.msrb.mxu0 %v7927_v29  ;;  %v5103_v45 = vunpack.c.l.b16 %v4964_v19  ;;  %v8683_v29 = vld [vmem:[#allocation119_spill] sm:$0xff] }
 0x767   : > { %v4709_v10 = vadd.f32 %v4645_v34, %v8682_v7  ;;  %4491 = vmatmul.bf16.gmra.mxu3 %v4347_v47  ;;  %v8684_v47 = vld [vmem:[#allocation120_spill] sm:$0xff]  ;;  %v4097_v7 = vpop.f32.mrf.mxu1 }
 0x769   : > { %v4901_v13 = vmax.f32 %v4709_v10, 0.0  ;;  %5219 = vmatpush.bf16.msrb.mxu0 %v7922_v57 }
 0x76a   : > { %v4452_v28 = vpop.f32.mrf.mxu3 }
 0x76b   : > { %v4965_v25 = vpack.c.bf16 %v4901_v13, %v4901_v13  ;;  %v4582_v55 = vpack.c.bf16 %v4452_v28, %v4452_v28 }
 0x76d   : > { %v5104_v23 = vunpack.c.l.b16 %v4965_v25  ;;  %v4646_v2 = vunpack.c.l.bf16 %v4582_v55  ;;  %5220 = vmatpush.bf16.msrb.mxu0 %v7917_v62  ;;  %v8687_v25 = vpack.c.b16 %v7910_v32, %v7908_v46 }
 0x76f   : > { %v7960_v40 = vpack.c.b16 %v5104_v23, %v5103_v45  ;;  %v4710_v1 = vadd.f32 %v4646_v2, %v8683_v29  ;;  %v4099_v19 = vpop.f32.mrf.mxu1  ;;  %v4185_v23 = vpack.c.bf16 %v4097_v7, %v4097_v7 }
 0x770   : > { %v4186_v52 = vpack.c.bf16 %v4099_v19, %v4099_v19 }
 0x771   : > { %v4902_v18 = vmax.f32 %v4710_v1, 0.0 }
 0x772   : > { %v4454_v3 = vpop.f32.mrf.mxu3 }
 0x773   : > { %v4583_v51 = vpack.c.bf16 %v4454_v3, %v4454_v3  ;;  %v4966_v57 = vpack.c.bf16 %v4902_v18, %v4902_v18  ;;  %v4313_v3 = vunpack.c.l.b16 %v4185_v23 }
 0x775   : > { %v4647_v0 = vunpack.c.l.bf16 %v4583_v51  ;;  %v5105_v62 = vunpack.c.l.b16 %v4966_v57  ;;  %v8688_v51 = vld [vmem:[#allocation123_spill] sm:$0xff] }
 0x777   : > { %v4711_v11 = vadd.f32 %v4647_v0, %v8684_v47  ;;  %4496 = vmatmul.bf16.gmra.mxu3 %v4348_v53  ;;  %v7982_v16 = vpop.f32.mrf.mxu1  ;;  %v4314_v0 = vunpack.c.l.b16 %v4186_v52 }
 0x779   : > { %v4903_v54 = vmax.f32 %v4711_v11, 0.0  ;;  %v8689_v11 = vld [vmem:[#allocation124_spill] sm:$0xff] }
 0x77a   : > { %v4457_v43 = vpop.f32.mrf.mxu3 }
 0x77b   : > { %v4967_v8 = vpack.c.bf16 %v4903_v54, %v4903_v54  ;;  %v4584_v63 = vpack.c.bf16 %v4457_v43, %v4457_v43 }
 0x77d   : > { %v5106_v21 = vunpack.c.l.b16 %v4967_v8  ;;  %v4648_v49 = vunpack.c.l.bf16 %v4584_v63  ;;  %v8690_v63 = vld [vmem:[#allocation125_spill] sm:$0xff] }
 0x77f   : > { %v7967_v58 = vpack.c.b16 %v5106_v21, %v5105_v62  ;;  %v4712_v22 = vadd.f32 %v4648_v49, %v8685_v37  ;;  %v7984_v28 = vpop.f32.mrf.mxu1  ;;  %v4353_v49 = vpack.c.b16 %v4314_v0, %v4313_v3 }
 0x781   : > { %v4904_v26 = vmax.f32 %v4712_v22, 0.0 }
 0x782   : > { %v4459_v5 = vpop.f32.mrf.mxu3 }
 0x783   : > { %v4585_v48 = vpack.c.bf16 %v4459_v5, %v4459_v5  ;;  %v4968_v27 = vpack.c.bf16 %v4904_v26, %v4904_v26 }
 0x785   : > { %v4649_v31 = vunpack.c.l.bf16 %v4585_v48  ;;  %v5107_v9 = vunpack.c.l.b16 %v4968_v27  ;;  %v8691_v48 = vld [vmem:[#allocation49_spill] sm:$0xff] }
 0x787   : > { %v4713_v17 = vadd.f32 %v4649_v31, %v8686_v36  ;;  %4501 = vmatmul.bf16.gmra.mxu3 %v4349_v14  ;;  %v8692_v36 = vld [vmem:[#allocation126_spill] sm:$0xff] }
 0x789   : > { %v4905_v20 = vmax.f32 %v4713_v17, 0.0 }
 0x78a   : > { %v4462_v53 = vpop.f32.mrf.mxu3 }
 0x78b   : > { %v4969_v50 = vpack.c.bf16 %v4905_v20, %v4905_v20  ;;  %v4586_v43 = vpack.c.bf16 %v4462_v53, %v4462_v53  ;;  %v8693_v20 = vld [vmem:[#allocation48_spill] sm:$0xff] }
 0x78d   : > { %v5108_v15 = vunpack.c.l.b16 %v4969_v50  ;;  %v4650_v27 = vunpack.c.l.bf16 %v4586_v43 }
 0x78f   : > { %v7974_v60 = vpack.c.b16 %v5108_v15, %v5107_v9 }
 0x792   : > { %v4464_v34 = vpop.f32.mrf.mxu3 }
 0x793   : > { %v4587_v47 = vpack.c.bf16 %v4464_v34, %v4464_v34  ;;  %v8694_v34 = vld [vmem:[#allocation52_spill] sm:$0xff] }
 0x795   : > { %v4651_v22 = vunpack.c.l.bf16 %v4587_v47 }
 0x797   : > { %4506 = vmatmul.bf16.gmra.mxu3 %v4350_v56  ;;  %v7989_v56 = vpop.f32.mrf.mxu1  ;;  %v4715_v7 = vadd.f32 %v4651_v22, %v8694_v34 }
 0x798   : > { %v4189_v34 = vpack.c.bf16 %v7989_v56, %v7989_v56 }
 0x79a   : > { %v4467_v10 = vpop.f32.mrf.mxu3 }
 0x79b   : > { %v4588_v29 = vpack.c.bf16 %v4467_v10, %v4467_v10 }
 0x79d   : > { %v4652_v8 = vunpack.c.l.bf16 %v4588_v29 }
 0x79f   : > { %v7994_v5 = vpop.f32.mrf.mxu1  ;;  %v4716_v50 = vadd.f32 %v4652_v8, %v8693_v20 }
 0x7a2   : > { %v4469_v13 = vpop.f32.mrf.mxu3 }
 0x7a3   : > { %v4589_v61 = vpack.c.bf16 %v4469_v13, %v4469_v13 }
 0x7a5   : > { %v4653_v32 = vunpack.c.l.bf16 %v4589_v61 }
 0x7a7   : > { %4511 = vmatmul.bf16.gmra.mxu3 %v4351_v24  ;;  %v4717_v26 = vadd.f32 %v4653_v32, %v8691_v48  ;;  %v8005_v0 = vpop.f32.mrf.mxu1  ;;  %v8696_v32 = vld [vmem:[#allocation62_spill] sm:$0xff]  ;;  %v8697_v48 = vld [vmem:[#allocation63_spill] sm:$0xff] }
 0x7a9   : > { %v4909_v19 = vmax.f32 %v4717_v26, 0.0 }
 0x7aa   : > { %v4472_v42 = vpop.f32.mrf.mxu3 }
 0x7ab   : > { %v4590_v45 = vpack.c.bf16 %v4472_v42, %v4472_v42  ;;  %v4973_v29 = vpack.c.bf16 %v4909_v19, %v4909_v19 }
 0x7ad   : > { %v4654_v1 = vunpack.c.l.bf16 %v4590_v45  ;;  %v4188_v45 = vpack.c.bf16 %v7984_v28, %v7984_v28 }
 0x7af   : > { %v4718_v62 = vadd.f32 %v4654_v1, %v8690_v63 }
 0x7b1   : > { %v4910_v9 = vmax.f32 %v4718_v62, 0.0 }
 0x7b2   : > { %v4474_v14 = vpop.f32.mrf.mxu3 }
 0x7b3   : > { %v4591_v41 = vpack.c.bf16 %v4474_v14, %v4474_v14  ;;  %v4974_v23 = vpack.c.bf16 %v4910_v9, %v4910_v9 }
 0x7b5   : > { %v4655_v24 = vunpack.c.l.bf16 %v4591_v41  ;;  %v4908_v41 = vmax.f32 %v4716_v50, 0.0  ;;  %v5113_v47 = vunpack.c.l.b16 %v4974_v23  ;;  %v4114_v50 = vpop.f32.mrf.mxu1 }
 0x7b7   : > { %4516 = vmatmul.bf16.gmra.mxu3 %v8687_v25  ;;  %v4719_v57 = vadd.f32 %v4655_v24, %v8689_v11  ;;  %v8695_v25 = vld [vmem:[#allocation50_spill] sm:$0xff]  ;;  %v4907_v24 = vmax.f32 %v4715_v7, 0.0 }
 0x7b9   : > { %v4911_v31 = vmax.f32 %v4719_v57, 0.0  ;;  %v4971_v28 = vpack.c.bf16 %v4907_v24, %v4907_v24 }
 0x7ba   : > { %v4477_v55 = vpop.f32.mrf.mxu3 }
 0x7bb   : > { %v4592_v59 = vpack.c.bf16 %v4477_v55, %v4477_v55  ;;  %v4975_v13 = vpack.c.bf16 %v4911_v31, %v4911_v31  ;;  %v4714_v55 = vadd.f32 %v4650_v27, %v8695_v25  ;;  %v5110_v22 = vunpack.c.l.b16 %v4971_v28  ;;  %v8698_v25 = vld [vmem:[#allocation65_spill] sm:$0xff] }
 0x7bd   : > { %v4656_v2 = vunpack.c.l.bf16 %v4592_v59  ;;  %v4187_v59 = vpack.c.bf16 %v7982_v16, %v7982_v16  ;;  %v5114_v1 = vunpack.c.l.b16 %v4975_v13  ;;  %v4316_v16 = vunpack.c.l.b16 %v4188_v45  ;;  %v4117_v23 = vpop.f32.mrf.mxu1 }
 0x7be   : > { %v4190_v13 = vpack.c.bf16 %v7994_v5, %v7994_v5 }
 0x7bf   : > { %v4720_v18 = vadd.f32 %v4656_v2, %v8688_v51  ;;  %v4906_v51 = vmax.f32 %v4714_v55, 0.0  ;;  %v5163_v8 = vpack.c.b16 %v5114_v1, %v5113_v47 }
 0x7c1   : > { %v4912_v21 = vmax.f32 %v4720_v18, 0.0  ;;  %v4972_v18 = vpack.c.bf16 %v4908_v41, %v4908_v41  ;;  %v4970_v63 = vpack.c.bf16 %v4906_v51, %v4906_v51  ;;  %v4318_v41 = vunpack.c.l.b16 %v4190_v13 }
 0x7c2   : > { %v4479_v46 = vpop.f32.mrf.mxu3 }
 0x7c3   : > { %v4593_v54 = vpack.c.bf16 %v4479_v46, %v4479_v46  ;;  %v4976_v53 = vpack.c.bf16 %v4912_v21, %v4912_v21  ;;  %v4315_v46 = vunpack.c.l.b16 %v4187_v59  ;;  %v5111_v62 = vunpack.c.l.b16 %v4972_v18 }
 0x7c5   : > { %v4657_v37 = vunpack.c.l.bf16 %v4593_v54  ;;  %v5115_v2 = vunpack.c.l.b16 %v4976_v53  ;;  %v5112_v54 = vunpack.c.l.b16 %v4973_v29 }
 0x7c7   : > { %v4721_v17 = vadd.f32 %v4657_v37, %v8692_v36  ;;  %4521 = vmatmul.bf16.gmra.mxu3 %v4353_v49  ;;  %v4354_v49 = vpack.c.b16 %v4316_v16, %v4315_v46  ;;  %v5162_v31 = vpack.c.b16 %v5112_v54, %v5111_v62  ;;  %v5109_v36 = vunpack.c.l.b16 %v4970_v63 }
 0x7c9   : > { %v4913_v15 = vmax.f32 %v4721_v17, 0.0 }
 0x7ca   : > { %v4482_v10 = vpop.f32.mrf.mxu3 }
 0x7cb   : > { %v4977_v42 = vpack.c.bf16 %v4913_v15, %v4913_v15  ;;  %v4594_v14 = vpack.c.bf16 %v4482_v10, %v4482_v10  ;;  %v5161_v15 = vpack.c.b16 %v5110_v22, %v5109_v36 }
 0x7cd   : > { %v5116_v52 = vunpack.c.l.b16 %v4977_v42  ;;  %v4658_v61 = vunpack.c.l.bf16 %v4594_v14  ;;  %v4317_v14 = vunpack.c.l.b16 %v4189_v34 }
 0x7cf   : > { %v5164_v3 = vpack.c.b16 %v5116_v52, %v5115_v2  ;;  %v4722_v11 = vadd.f32 %v4658_v61, %v8696_v32  ;;  %v4355_v56 = vpack.c.b16 %v4318_v41, %v4317_v14  ;;  %v8699_v61 = vld [vmem:[#allocation66_spill] sm:$0xff]  ;;  %v4192_v32 = vpack.c.bf16 %v4114_v50, %v4114_v50 }
 0x7d1   : > { %5226 = vmatpush.bf16.msra.mxu1 %v5164_v3  ;;  %v4914_v21 = vmax.f32 %v4722_v11, 0.0  ;;  %v4320_v54 = vunpack.c.l.b16 %v4192_v32 }
 0x7d2   : > { %v4484_v57 = vpop.f32.mrf.mxu3 }
 0x7d3   : > { %v4595_v43 = vpack.c.bf16 %v4484_v57, %v4484_v57  ;;  %v4978_v17 = vpack.c.bf16 %v4914_v21, %v4914_v21  ;;  %v8700_v57 = vld [vmem:[#allocation88_spill] sm:$0xff]  ;;  %v8701_v21 = vld [vmem:[#allocation83_spill] sm:$0xff] }
 0x7d5   : > { %v4659_v37 = vunpack.c.l.bf16 %v4595_v43  ;;  %5227 = vmatpush.bf16.msra.mxu1 %v5163_v8  ;;  %v5117_v7 = vunpack.c.l.b16 %v4978_v17 }
 0x7d7   : > { %v4723_v26 = vadd.f32 %v4659_v37, %v8697_v48  ;;  %4526 = vmatmul.bf16.gmra.mxu3 %v4354_v49 }
 0x7d9   : > { %v4915_v27 = vmax.f32 %v4723_v26, 0.0  ;;  %5228 = vmatpush.bf16.msra.mxu1 %v5162_v31  ;;  %v4193_v31 = vpack.c.bf16 %v4117_v23, %v4117_v23 }
 0x7da   : > { %v4487_v20 = vpop.f32.mrf.mxu3 }
 0x7db   : > { %v4979_v9 = vpack.c.bf16 %v4915_v27, %v4915_v27  ;;  %v4596_v53 = vpack.c.bf16 %v4487_v20, %v4487_v20 }
 0x7dd   : > { %v5118_v10 = vunpack.c.l.b16 %v4979_v9  ;;  %v4660_v19 = vunpack.c.l.bf16 %v4596_v53  ;;  %5229 = vmatpush.bf16.msra.mxu1 %v5161_v15  ;;  %v4321_v9 = vunpack.c.l.b16 %v4193_v31  ;;  %v8702_v53 = vld [vmem:[#allocation84_spill] sm:$0xff] }
 0x7df   : > { %v8013_v42 = vpack.c.b16 %v5118_v10, %v5117_v7  ;;  %v4724_v55 = vadd.f32 %v4660_v19, %v8698_v25 }
 0x7e1   : > { %5230 = vmatpush.bf16.msra.mxu1 %v7974_v60  ;;  %v4916_v2 = vmax.f32 %v4724_v55, 0.0  ;;  %v4191_v60 = vpack.c.bf16 %v8005_v0, %v8005_v0  ;;  %v8703_v55 = vld [vmem:[#allocation85_spill] sm:$0xff] }
 0x7e2   : > { %v4489_v59 = vpop.f32.mrf.mxu3 }
 0x7e3   : > { %v4597_v45 = vpack.c.bf16 %v4489_v59, %v4489_v59  ;;  %v4980_v5 = vpack.c.bf16 %v4916_v2, %v4916_v2  ;;  %v4319_v16 = vunpack.c.l.b16 %v4191_v60 }
 0x7e5   : > { %v4661_v52 = vunpack.c.l.bf16 %v4597_v45  ;;  %5231 = vmatpush.bf16.msra.mxu1 %v7967_v58  ;;  %v5119_v18 = vunpack.c.l.b16 %v4980_v5  ;;  %v4119_v58 = vpop.f32.mrf.mxu1  ;;  %v4356_v63 = vpack.c.b16 %v4320_v54, %v4319_v16 }
 0x7e6   : > { %v4194_v20 = vpack.c.bf16 %v4119_v58, %v4119_v58 }
 0x7e7   : > { %v4725_v24 = vadd.f32 %v4661_v52, %v8699_v61  ;;  %4531 = vmatmul.bf16.gmra.mxu3 %v4355_v56 }
 0x7e8   : > { %v4322_v34 = vunpack.c.l.b16 %v4194_v20  ;;  %v8704_v20 = vld [vmem:[#allocation87_spill] sm:$0xff] }
 0x7e9   : > { %v4917_v29 = vmax.f32 %v4725_v24, 0.0  ;;  %5232 = vmatpush.bf16.msra.mxu1 %v7960_v40 }
 0x7ea   : > { %v4492_v1 = vpop.f32.mrf.mxu3  ;;  %v4357_v14 = vpack.c.b16 %v4322_v34, %v4321_v9 }
 0x7eb   : > { %v4981_v3 = vpack.c.bf16 %v4917_v29, %v4917_v29  ;;  %v4598_v51 = vpack.c.bf16 %v4492_v1, %v4492_v1 }
 0x7ed   : > { %v5120_v47 = vunpack.c.l.b16 %v4981_v3  ;;  %v4662_v46 = vunpack.c.l.bf16 %v4598_v51  ;;  %5233 = vmatpush.bf16.msra.mxu1 %v7949_v30  ;;  %v4122_v49 = vpop.f32.mrf.mxu1 }
 0x7ee   : > { %v4195_v24 = vpack.c.bf16 %v4122_v49, %v4122_v49 }
 0x7ef   : > { %v8023_v11 = vpack.c.b16 %v5120_v47, %v5119_v18  ;;  %v4726_v28 = vadd.f32 %v4662_v46, %v8700_v57 }
 0x7f0   : > { %v4323_v1 = vunpack.c.l.b16 %v4195_v24 }
 0x7f1   : > { %v4918_v8 = vmax.f32 %v4726_v28, 0.0 }
 0x7f2   : > { %v4494_v40 = vpop.f32.mrf.mxu3 }
 0x7f3   : > { %v4599_v43 = vpack.c.bf16 %v4494_v40, %v4494_v40  ;;  %v4982_v37 = vpack.c.bf16 %v4918_v8, %v4918_v8 }
 0x7f5   : > { %v4663_v62 = vunpack.c.l.bf16 %v4599_v43  ;;  %v5121_v36 = vunpack.c.l.b16 %v4982_v37  ;;  %v4124_v10 = vpop.f32.mrf.mxu1 }
 0x7f6   : > { %v4196_v5 = vpack.c.bf16 %v4124_v10, %v4124_v10 }
 0x7f7   : > { %v4727_v0 = vadd.f32 %v4663_v62, %v8701_v21  ;;  %4536 = vmatmul.bf16.gmra.mxu3 %v4356_v63 }
 0x7f8   : > { %v4324_v3 = vunpack.c.l.b16 %v4196_v5 }
 0x7f9   : > { %v4919_v22 = vmax.f32 %v4727_v0, 0.0 }
 0x7fa   : > { %v4497_v30 = vpop.f32.mrf.mxu3  ;;  %v4358_v60 = vpack.c.b16 %v4324_v3, %v4323_v1  ;;  %v8709_v1 = vld [vmem:[#allocation76_spill] sm:$0xff] }
 0x7fb   : > { %v4983_v48 = vpack.c.bf16 %v4919_v22, %v4919_v22  ;;  %v4600_v26 = vpack.c.bf16 %v4497_v30, %v4497_v30 }
 0x7fd   : > { %v5122_v17 = vunpack.c.l.b16 %v4983_v48  ;;  %v4664_v27 = vunpack.c.l.bf16 %v4600_v26  ;;  %v4127_v56 = vpop.f32.mrf.mxu1 }
 0x7fe   : > { %v4197_v46 = vpack.c.bf16 %v4127_v56, %v4127_v56 }
 0x7ff   : > { %v8027_v50 = vpack.c.b16 %v5122_v17, %v5121_v36  ;;  %v4728_v15 = vadd.f32 %v4664_v27, %v8702_v53 }
 0x800   : > { %v4325_v16 = vunpack.c.l.b16 %v4197_v46 }
 0x801   : > { %v4920_v13 = vmax.f32 %v4728_v15, 0.0 }
 0x802   : > { %v4499_v7 = vpop.f32.mrf.mxu3 }
 0x803   : > { %v4601_v19 = vpack.c.bf16 %v4499_v7, %v4499_v7  ;;  %v4984_v59 = vpack.c.bf16 %v4920_v13, %v4920_v13  ;;  %v8705_v7 = vld [vmem:[#allocation82_spill] sm:$0xff] }
 0x805   : > { %v4665_v25 = vunpack.c.l.bf16 %v4601_v19  ;;  %v5123_v52 = vunpack.c.l.b16 %v4984_v59  ;;  %v4129_v18 = vpop.f32.mrf.mxu1 }
 0x806   : > { %v4198_v32 = vpack.c.bf16 %v4129_v18, %v4129_v18 }
 0x807   : > { %v4729_v41 = vadd.f32 %v4665_v25, %v8703_v55  ;;  %4541 = vmatmul.bf16.gmra.mxu3 %v4357_v14  ;;  %v8706_v25 = vld [vmem:[#allocation81_spill] sm:$0xff] }
 0x808   : > { %v4326_v57 = vunpack.c.l.b16 %v4198_v32 }
 0x809   : > { %v4921_v45 = vmax.f32 %v4729_v41, 0.0 }
 0x80a   : > { %v4502_v23 = vpop.f32.mrf.mxu3  ;;  %v4359_v54 = vpack.c.b16 %v4326_v57, %v4325_v16 }
 0x80b   : > { %v4985_v2 = vpack.c.bf16 %v4921_v45, %v4921_v45  ;;  %v4602_v13 = vpack.c.bf16 %v4502_v23, %v4502_v23 }
 0x80d   : > { %v5124_v61 = vunpack.c.l.b16 %v4985_v2  ;;  %v4132_v58 = vpop.f32.mrf.mxu1  ;;  %v8707_v2 = vld [vmem:[#allocation77_spill] sm:$0xff]  ;;  %v4666_v5 = vunpack.c.l.bf16 %v4602_v13 }
 0x80e   : > { %v4199_v8 = vpack.c.bf16 %v4132_v58, %v4132_v58 }
 0x80f   : > { %v8031_v29 = vpack.c.b16 %v5124_v61, %v5123_v52  ;;  %v8708_v61 = vld [vmem:[#allocation90_spill] sm:$0xff] }
 0x810   : > { %v4327_v62 = vunpack.c.l.b16 %v4199_v8 }
 0x812   : > { %v4504_v51 = vpop.f32.mrf.mxu3 }
 0x813   : > { %v4603_v53 = vpack.c.bf16 %v4504_v51, %v4504_v51 }
 0x815   : > { %v4134_v43 = vpop.f32.mrf.mxu1  ;;  %v4667_v45 = vunpack.c.l.bf16 %v4603_v53 }
 0x816   : > { %v4200_v63 = vpack.c.bf16 %v4134_v43, %v4134_v43 }
 0x817   : > { %4546 = vmatmul.bf16.gmra.mxu3 %v4358_v60 }
 0x818   : > { %v4328_v21 = vunpack.c.l.b16 %v4200_v63 }
 0x81a   : > { %v4507_v47 = vpop.f32.mrf.mxu3  ;;  %v4360_v49 = vpack.c.b16 %v4328_v21, %v4327_v62 }
 0x81b   : > { %v4604_v17 = vpack.c.bf16 %v4507_v47, %v4507_v47  ;;  %v8710_v47 = vld [vmem:[#allocation80_spill] sm:$0xff] }
 0x81c   : > { %v4731_v46 = vadd.f32 %v4667_v45, %v8710_v47 }
 0x81d   : > { %v4668_v14 = vunpack.c.l.bf16 %v4604_v17 }
 0x81e   : > { %v4923_v21 = vmax.f32 %v4731_v46, 0.0 }
 0x81f   : > { %v4732_v3 = vadd.f32 %v4668_v14, %v8709_v1 }
 0x822   : > { %v4509_v28 = vpop.f32.mrf.mxu3 }
 0x823   : > { %v4605_v31 = vpack.c.bf16 %v4509_v28, %v4509_v28  ;;  %v8711_v28 = vld [vmem:[#allocation91_spill] sm:$0xff] }
 0x825   : > { %v4669_v34 = vunpack.c.l.bf16 %v4605_v31 }
 0x827   : > { %4551 = vmatmul.bf16.gmra.mxu3 %v4359_v54  ;;  %v4733_v56 = vadd.f32 %v4669_v34, %v8707_v2  ;;  %v4730_v54 = vadd.f32 %v4666_v5, %v8711_v28 }
 0x829   : > { %v4925_v32 = vmax.f32 %v4733_v56, 0.0 }
 0x82a   : > { %v4512_v40 = vpop.f32.mrf.mxu3 }
 0x82b   : > { %v4606_v48 = vpack.c.bf16 %v4512_v40, %v4512_v40  ;;  %v4924_v40 = vmax.f32 %v4732_v3, 0.0 }
 0x82d   : > { %v4670_v27 = vunpack.c.l.bf16 %v4606_v48 }
 0x82f   : > { %v4734_v55 = vadd.f32 %v4670_v27, %v8706_v25 }
 0x831   : > { %v4926_v51 = vmax.f32 %v4734_v55, 0.0 }
 0x832   : > { %v4514_v0 = vpop.f32.mrf.mxu3 }
 0x833   : > { %v4607_v22 = vpack.c.bf16 %v4514_v0, %v4514_v0  ;;  %v4990_v43 = vpack.c.bf16 %v4926_v51, %v4926_v51  ;;  %v4989_v0 = vpack.c.bf16 %v4925_v32, %v4925_v32 }
 0x835   : > { %v4671_v36 = vunpack.c.l.bf16 %v4607_v22  ;;  %v4922_v22 = vmax.f32 %v4730_v54, 0.0  ;;  %v5129_v48 = vunpack.c.l.b16 %v4990_v43  ;;  %v5128_v17 = vunpack.c.l.b16 %v4989_v0 }
 0x837   : > { %4556 = vmatmul.bf16.gmra.mxu3 %v4360_v49  ;;  %v4735_v10 = vadd.f32 %v4671_v36, %v8705_v7  ;;  %v4987_v36 = vpack.c.bf16 %v4923_v21, %v4923_v21 }
 0x839   : > { %v4927_v52 = vmax.f32 %v4735_v10, 0.0  ;;  %v5126_v7 = vunpack.c.l.b16 %v4987_v36 }
 0x83a   : > { %v4517_v37 = vpop.f32.mrf.mxu3 }
 0x83b   : > { %v4608_v30 = vpack.c.bf16 %v4517_v37, %v4517_v37  ;;  %v4991_v58 = vpack.c.bf16 %v4927_v52, %v4927_v52 }
 0x83d   : > { %v4672_v26 = vunpack.c.l.bf16 %v4608_v30  ;;  %v5130_v49 = vunpack.c.l.b16 %v4991_v58  ;;  %v4988_v30 = vpack.c.bf16 %v4924_v40, %v4924_v40 }
 0x83f   : > { %v4736_v9 = vadd.f32 %v4672_v26, %v8704_v20  ;;  %v5171_v20 = vpack.c.b16 %v5130_v49, %v5129_v48  ;;  %v5127_v53 = vunpack.c.l.b16 %v4988_v30 }
 0x841   : > { %v4928_v41 = vmax.f32 %v4736_v9, 0.0  ;;  %v4986_v9 = vpack.c.bf16 %v4922_v22, %v4922_v22 }
 0x842   : > { %v4519_v15 = vpop.f32.mrf.mxu3 }
 0x843   : > { %v4609_v19 = vpack.c.bf16 %v4519_v15, %v4519_v15  ;;  %v4992_v60 = vpack.c.bf16 %v4928_v41, %v4928_v41  ;;  %v5125_v13 = vunpack.c.l.b16 %v4986_v9 }
 0x845   : > { %v4673_v59 = vunpack.c.l.bf16 %v4609_v19  ;;  %v5131_v8 = vunpack.c.l.b16 %v4992_v60  ;;  %v5170_v19 = vpack.c.b16 %v5128_v17, %v5127_v53 }
 0x847   : > { %v4737_v24 = vadd.f32 %v4673_v59, %v8708_v61  ;;  %v5169_v59 = vpack.c.b16 %v5126_v7, %v5125_v13 }
 0x849   : > { %v4929_v18 = vmax.f32 %v4737_v24, 0.0 }
 0x84a   : > { %v4522_v23 = vpop.f32.mrf.mxu3 }
 0x84b   : > { %v4993_v16 = vpack.c.bf16 %v4929_v18, %v4929_v18  ;;  %v4610_v57 = vpack.c.bf16 %v4522_v23, %v4522_v23 }
 0x84d   : > { %v5132_v63 = vunpack.c.l.b16 %v4993_v16  ;;  %v4674_v62 = vunpack.c.l.bf16 %v4610_v57 }
 0x84f   : > { %v5172_v37 = vpack.c.b16 %v5132_v63, %v5131_v8  ;;  %v4738_v26 = vadd.f32 %v4674_v62, %v8664_v35 }
 0x851   : > { %5239 = vmatpush.bf16.msra.mxu0 %v5172_v37  ;;  %v4930_v15 = vmax.f32 %v4738_v26, 0.0 }
 0x852   : > { %v4524_v31 = vpop.f32.mrf.mxu3 }
 0x853   : > { %v4611_v27 = vpack.c.bf16 %v4524_v31, %v4524_v31  ;;  %v4994_v14 = vpack.c.bf16 %v4930_v15, %v4930_v15  ;;  %v5010_v15 = vld [vmem:[%s6618_s21] sm:$0xff] }
 0x854   : > { %5012 = vst [vmem:[#allocation1] ss:$4 sm:$0xff] %v5010_v15  ;;  %v5795_v15 = vld [vmem:[#allocation10 + $0x30] sm:$0xff] }
 0x855   : > { %v4675_v34 = vunpack.c.l.bf16 %v4611_v27  ;;  %5240 = vmatpush.bf16.msra.mxu0 %v5171_v20  ;;  %v5133_v45 = vunpack.c.l.b16 %v4994_v14 }
 0x857   : > { %v4739_v10 = vadd.f32 %v4675_v34, %v8665_v12 }
 0x859   : > { %v4931_v25 = vmax.f32 %v4739_v10, 0.0  ;;  %5241 = vmatpush.bf16.msra.mxu0 %v5170_v19 }
 0x85a   : > { %v4527_v35 = vpop.f32.mrf.mxu3 }
 0x85b   : > { %v4995_v55 = vpack.c.bf16 %v4931_v25, %v4931_v25  ;;  %v4612_v41 = vpack.c.bf16 %v4527_v35, %v4527_v35  ;;  %v5013_v34 = vld.sshfl [vmem:[#allocation1] sm:$0xff pattern:$0x73625140]  ;;  %v5014_v10 = vld.sshfl [vmem:[#allocation1 + $0x8] sm:$0xff pattern:$0x73625140] }
 0x85c   : > { %5221 = vmatmul.bf16.vlgmr.msrb.gmra.mxu0 %v5013_v34  ;;  %5234 = vmatmul.bf16.vlgmr.msra.gmra.mxu1 %v5014_v10 }
 0x85d   : > { %v5134_v2 = vunpack.c.l.b16 %v4995_v55  ;;  %v4676_v56 = vunpack.c.l.bf16 %v4612_v41  ;;  %5242 = vmatpush.bf16.msra.mxu0 %v5169_v59  ;;  %v5015_v41 = vld.sshfl [vmem:[#allocation1 + $0x10] sm:$0xff pattern:$0x73625140] }
 0x85f   : > { %v8043_v52 = vpack.c.b16 %v5134_v2, %v5133_v45  ;;  %v4740_v61 = vadd.f32 %v4676_v56, %v8662_v33  ;;  %v8712_v2 = vld [vmem:[#allocation74_spill] sm:$0xff] }
 0x861   : > { %5243 = vmatpush.bf16.msra.mxu0 %v8031_v29  ;;  %v4932_v5 = vmax.f32 %v4740_v61, 0.0 }
 0x862   : > { %v4529_v12 = vpop.f32.mrf.mxu3 }
 0x863   : > { %v4613_v24 = vpack.c.bf16 %v4529_v12, %v4529_v12  ;;  %v4996_v51 = vpack.c.bf16 %v4932_v5, %v4932_v5  ;;  %v8713_v5 = vld [vmem:[#allocation68_spill] sm:$0xff] }
 0x865   : > { %v4677_v1 = vunpack.c.l.bf16 %v4613_v24  ;;  %5244 = vmatpush.bf16.msra.mxu0 %v8027_v50  ;;  %v5135_v23 = vunpack.c.l.b16 %v4996_v51 }
 0x867   : > { %v4741_v3 = vadd.f32 %v4677_v1, %v8663_v6 }
 0x869   : > { %v4933_v60 = vmax.f32 %v4741_v3, 0.0  ;;  %5245 = vmatpush.bf16.msra.mxu0 %v8023_v11 }
 0x86a   : > { %v4532_v18 = vpop.f32.mrf.mxu3 }
 0x86b   : > { %v4997_v47 = vpack.c.bf16 %v4933_v60, %v4933_v60  ;;  %v4614_v46 = vpack.c.bf16 %v4532_v18, %v4532_v18  ;;  %v8714_v18 = vld [vmem:[#allocation75_spill] sm:$0xff] }
 0x86d   : > { %v5136_v32 = vunpack.c.l.b16 %v4997_v47  ;;  %v4678_v33 = vunpack.c.l.bf16 %v4614_v46  ;;  %5246 = vmatpush.bf16.msra.mxu0 %v8013_v42 }
 0x86f   : > { %v8051_v29 = vpack.c.b16 %v5136_v32, %v5135_v23  ;;  %v4742_v58 = vadd.f32 %v4678_v33, %v8660_v4  ;;  %v8715_v33 = vld [vmem:[#allocation41_spill] sm:$0xff] }
 0x870   : > { %5247 = vmatmul.bf16.vlgmr.msra.gmra.mxu0 %v5015_v41  ;;  %v5793_v41 = vld [vmem:[#allocation10 + $0x20] sm:$0xff] }
 0x871   : > { %v4934_v57 = vmax.f32 %v4742_v58, 0.0 }
 0x872   : > { %v4534_v16 = vpop.f32.mrf.mxu3 }
 0x873   : > { %v4615_v50 = vpack.c.bf16 %v4534_v16, %v4534_v16  ;;  %v4998_v54 = vpack.c.bf16 %v4934_v57, %v4934_v57 }
 0x875   : > { %v4679_v6 = vunpack.c.l.bf16 %v4615_v50  ;;  %v5137_v63 = vunpack.c.l.b16 %v4998_v54  ;;  %v8716_v50 = vld [vmem:[#allocation42_spill] sm:$0xff] }
 0x877   : > { %v4743_v28 = vadd.f32 %v4679_v6, %v8661_v39 }
 0x879   : > { %v4935_v11 = vmax.f32 %v4743_v28, 0.0  ;;  %v8717_v28 = vld [vmem:[#allocation39_spill] sm:$0xff] }
 0x87a   : > { %v4537_v40 = vpop.f32.mrf.mxu3 }
 0x87b   : > { %v4999_v43 = vpack.c.bf16 %v4935_v11, %v4935_v11  ;;  %v4616_v8 = vpack.c.bf16 %v4537_v40, %v4537_v40 }
 0x87d   : > { %v5138_v62 = vunpack.c.l.b16 %v4999_v43  ;;  %v4680_v21 = vunpack.c.l.bf16 %v4616_v8  ;;  %v8718_v8 = vld [vmem:[#allocation40_spill] sm:$0xff] }
 0x87f   : > { %v8055_v0 = vpack.c.b16 %v5138_v62, %v5137_v63  ;;  %v4744_v42 = vadd.f32 %v4680_v21, %v8658_v44 }
 0x881   : > { %v4936_v37 = vmax.f32 %v4744_v42, 0.0 }
 0x882   : > { %v4539_v4 = vpop.f32.mrf.mxu3 }
 0x883   : > { %v4617_v49 = vpack.c.bf16 %v4539_v4, %v4539_v4  ;;  %v5000_v39 = vpack.c.bf16 %v4936_v37, %v4936_v37  ;;  %v8719_v4 = vld [vmem:[#allocation37_spill] sm:$0xff] }
 0x885   : > { %v4681_v22 = vunpack.c.l.bf16 %v4617_v49  ;;  %v5139_v36 = vunpack.c.l.b16 %v5000_v39 }
 0x887   : > { %v4745_v30 = vadd.f32 %v4681_v22, %v8659_v38 }
 0x889   : > { %v4937_v48 = vmax.f32 %v4745_v30, 0.0 }
 0x88a   : > { %v4542_v26 = vpop.f32.mrf.mxu3 }
 0x88b   : > { %v5001_v31 = vpack.c.bf16 %v4937_v48, %v4937_v48  ;;  %v4618_v51 = vpack.c.bf16 %v4542_v26, %v4542_v26 }
 0x88d   : > { %v5140_v17 = vunpack.c.l.b16 %v5001_v31  ;;  %v4682_v6 = vunpack.c.l.bf16 %v4618_v51  ;;  %v5800_v51 = vld [vmem:[#allocation11 + $0x18] sm:$0xff] }
 0x88f   : > { %v8059_v27 = vpack.c.b16 %v5140_v17, %v5139_v36  ;;  %v4746_v49 = vadd.f32 %v4682_v6, %v8719_v4  ;;  %v5796_v17 = vld [vmem:[#allocation10 + $0x38] sm:$0xff] }
 0x890   : > { %5330 = vmatpush.bf16.msrb.mxu0 %v5796_v17 }
 0x892   : > { %v4544_v20 = vpop.f32.mrf.mxu3 }
 0x893   : > { %v4619_v12 = vpack.c.bf16 %v4544_v20, %v4544_v20  ;;  %v4938_v20 = vmax.f32 %v4746_v49, 0.0 }
 0x894   : > { %5331 = vmatpush.bf16.msrb.mxu0 %v5795_v15 }
 0x895   : > { %v4683_v32 = vunpack.c.l.bf16 %v4619_v12  ;;  %v5002_v10 = vpack.c.bf16 %v4938_v20, %v4938_v20 }
 0x897   : > { %v4747_v63 = vadd.f32 %v4683_v32, %v8718_v8 }
 0x899   : > { %v4939_v48 = vmax.f32 %v4747_v63, 0.0 }
 0x89a   : > { %v4547_v9 = vpop.f32.mrf.mxu3 }
 0x89b   : > { %v4620_v59 = vpack.c.bf16 %v4547_v9, %v4547_v9 }
 0x89d   : > { %v4684_v60 = vunpack.c.l.bf16 %v4620_v59  ;;  %v5792_v59 = vld [vmem:[#allocation10 + $0x18] sm:$0xff] }
 0x89f   : > { %v4748_v54 = vadd.f32 %v4684_v60, %v8717_v28  ;;  %v5799_v60 = vld [vmem:[#allocation11 + $0x10] sm:$0xff] }
 0x8a1   : > { %v4940_v37 = vmax.f32 %v4748_v54, 0.0 }
 0x8a2   : > { %v4549_v53 = vpop.f32.mrf.mxu3 }
 0x8a3   : > { %v4621_v35 = vpack.c.bf16 %v4549_v53, %v4549_v53  ;;  %v5004_v9 = vpack.c.bf16 %v4940_v37, %v4940_v37 }
 0x8a5   : > { %v4685_v24 = vunpack.c.l.bf16 %v4621_v35  ;;  %v5016_v35 = vld.sshfl [vmem:[#allocation1 + $0x18] sm:$0xff pattern:$0x73625140] }
 0x8a7   : > { %v4749_v58 = vadd.f32 %v4685_v24, %v8715_v33  ;;  %v5789_v24 = vld [vmem:[#allocation10] sm:$0xff] }
 0x8a9   : > { %v4941_v62 = vmax.f32 %v4749_v58, 0.0 }
 0x8aa   : > { %v4552_v44 = vpop.f32.mrf.mxu3 }
 0x8ab   : > { %v4622_v14 = vpack.c.bf16 %v4552_v44, %v4552_v44  ;;  %v5005_v26 = vpack.c.bf16 %v4941_v62, %v4941_v62  ;;  %v5003_v44 = vpack.c.bf16 %v4939_v48, %v4939_v48 }
 0x8ad   : > { %v4686_v45 = vunpack.c.l.bf16 %v4622_v14  ;;  %v5144_v34 = vunpack.c.l.b16 %v5005_v26  ;;  %v5141_v14 = vunpack.c.l.b16 %v5002_v10 }
 0x8af   : > { %v4750_v47 = vadd.f32 %v4686_v45, %v8714_v18  ;;  %v5791_v45 = vld [vmem:[#allocation10 + $0x10] sm:$0xff] }
 0x8b1   : > { %v4942_v11 = vmax.f32 %v4750_v47, 0.0  ;;  %v5798_v47 = vld [vmem:[#allocation11 + $0x8] sm:$0xff] }
 0x8b2   : > { %v4554_v7 = vpop.f32.mrf.mxu3 }
 0x8b3   : > { %v4623_v19 = vpack.c.bf16 %v4554_v7, %v4554_v7  ;;  %v5006_v22 = vpack.c.bf16 %v4942_v11, %v4942_v11 }
 0x8b5   : > { %v4687_v55 = vunpack.c.l.bf16 %v4623_v19  ;;  %v5145_v53 = vunpack.c.l.b16 %v5006_v22  ;;  %v5142_v19 = vunpack.c.l.b16 %v5003_v44 }
 0x8b7   : > { %v4751_v1 = vadd.f32 %v4687_v55, %v8713_v5  ;;  %v5794_v55 = vld [vmem:[#allocation10 + $0x28] sm:$0xff]  ;;  %v5803_v5 = vld [vmem:[#allocation11 + $0x30] sm:$0xff] }
 0x8b8   : > { %5332 = vmatpush.bf16.msrb.mxu0 %v5794_v55 }
 0x8b9   : > { %v4943_v16 = vmax.f32 %v4751_v1, 0.0  ;;  %v5802_v1 = vld [vmem:[#allocation11 + $0x28] sm:$0xff] }
 0x8ba   : > { %v4557_v38 = vpop.f32.mrf.mxu3 }
 0x8bb   : > { %v4624_v13 = vpack.c.bf16 %v4557_v38, %v4557_v38  ;;  %v5007_v21 = vpack.c.bf16 %v4943_v16, %v4943_v16  ;;  %v5143_v38 = vunpack.c.l.b16 %v5004_v9  ;;  %v5797_v16 = vld [vmem:[#allocation11] sm:$0xff] }
 0x8bc   : > { %5333 = vmatpush.bf16.msrb.mxu0 %v5793_v41 }
 0x8bd   : > { %v4688_v25 = vunpack.c.l.bf16 %v4624_v13  ;;  %v5146_v31 = vunpack.c.l.b16 %v5007_v21  ;;  %v5178_v13 = vpack.c.b16 %v5144_v34, %v5143_v38 }
 0x8bf   : > { %v4752_v56 = vadd.f32 %v4688_v25, %v8712_v2  ;;  %v5179_v7 = vpack.c.b16 %v5146_v31, %v5145_v53  ;;  %v5177_v25 = vpack.c.b16 %v5142_v19, %v5141_v14  ;;  %v5790_v2 = vld [vmem:[#allocation10 + $0x8] sm:$0xff] }
 0x8c0   : > { %5334 = vmatpush.bf16.msrb.mxu0 %v5792_v59 }
 0x8c1   : > { %v4944_v46 = vmax.f32 %v4752_v56, 0.0 }
 0x8c2   : > { %v4559_v61 = vpop.f32.mrf.mxu3 }
 0x8c3   : > { %v4625_v3 = vpack.c.bf16 %v4559_v61, %v4559_v61  ;;  %v5008_v40 = vpack.c.bf16 %v4944_v46, %v4944_v46 }
 0x8c4   : > { %5335 = vmatpush.bf16.msrb.mxu0 %v5791_v45 }
 0x8c5   : > { %v4689_v23 = vunpack.c.l.bf16 %v4625_v3  ;;  %v5147_v30 = vunpack.c.l.b16 %v5008_v40  ;;  %v5801_v3 = vld [vmem:[#allocation11 + $0x20] sm:$0xff] }
 0x8c7   : > { %v4753_v57 = vadd.f32 %v4689_v23, %v8716_v50 }
 0x8c8   : > { %5336 = vmatpush.bf16.msrb.mxu0 %v5790_v2 }
 0x8c9   : > { %v4945_v43 = vmax.f32 %v4753_v57, 0.0 }
 0x8cb   : > { %v5009_v42 = vpack.c.bf16 %v4945_v43, %v4945_v43 }
 0x8cc   : > { %5337 = vmatpush.bf16.msrb.mxu0 %v5789_v24 }
 0x8cd   : > { %v5148_v39 = vunpack.c.l.b16 %v5009_v42 }
 0x8cf   : > { %v5180_v36 = vpack.c.b16 %v5148_v39, %v5147_v30 }
 0x8d1   : > { %5252 = vmatpush.bf16.msrb.mxu1 %v5180_v36 }
 0x8d5   : > { %5253 = vmatpush.bf16.msrb.mxu1 %v5179_v7 }
 0x8d9   : > { %5254 = vmatpush.bf16.msrb.mxu1 %v5178_v13  ;;  %v5222_v56 = vpop.f32.mrf.mxu0 }
 0x8dd   : > { %5255 = vmatpush.bf16.msrb.mxu1 %v5177_v25 }
 0x8e1   : > { %5256 = vmatpush.bf16.msrb.mxu1 %v8059_v27  ;;  %v5235_v27 = vpop.f32.mrf.mxu1  ;;  %v5224_v61 = vpop.f32.mrf.mxu0 }
 0x8e2   : > { %v5236_v18 = vadd.f32 %v5235_v27, %v5222_v56 }
 0x8e5   : > { %5257 = vmatpush.bf16.msrb.mxu1 %v8055_v0 }
 0x8e9   : > { %5258 = vmatpush.bf16.msrb.mxu1 %v8051_v29  ;;  %v5237_v0 = vpop.f32.mrf.mxu1 }
 0x8ed   : > { %5259 = vmatpush.bf16.msrb.mxu1 %v8043_v52  ;;  %v5248_v12 = vpop.f32.mrf.mxu0  ;;  %v5804_v52 = vld [vmem:[#allocation11 + $0x38] sm:$0xff] }
 0x8ee   : > { %v5249_v46 = vadd.f32 %v5248_v12, %v5236_v18 }
 0x8f0   : > { %5260 = vmatmul.bf16.vlgmr.msrb.gmra.mxu1 %v5016_v35 }
 0x8f1   : > { %5410 = vmatpush.bf16.msra.mxu1 %v5804_v52 }
 0x8f5   : > { %v5250_v29 = vpop.f32.mrf.mxu0  ;;  %5411 = vmatpush.bf16.msra.mxu1 %v5803_v5 }
 0x8f9   : > { %5412 = vmatpush.bf16.msra.mxu1 %v5802_v1 }
 0x8fd   : > { %5413 = vmatpush.bf16.msra.mxu1 %v5801_v3 }
 0x901   : > { %5414 = vmatpush.bf16.msra.mxu1 %v5800_v51 }
 0x905   : > { %5415 = vmatpush.bf16.msra.mxu1 %v5799_v60 }
 0x909   : > { %5416 = vmatpush.bf16.msra.mxu1 %v5798_v47 }
 0x90d   : > { %5417 = vmatpush.bf16.msra.mxu1 %v5797_v16 }
 0x96d   : > { %v5261_v23 = vpop.f32.mrf.mxu1 }
 0x96e   : > { %v5262_v32 = vadd.f32 %v5261_v23, %v5249_v46 }
 0x970   : > { %v5265_v33 = vpack.c.bf16 %v5262_v32, %v5262_v32 }
 0x972   : > { %5338 = vmatmul.bf16.vlgmr.msrb.gmra.mxu0 %v5265_v33 }
 0x975   : > { %v5263_v58 = vpop.f32.mrf.mxu1 }
 0x9ef   : > { %v5339_v50 = vpop.f32.mrf.mxu0 }
 0x9f0   : > { %v5343_v57 = vmax.f32 %v5339_v50, 0.0 }
 0x9f2   : > { %5344 = vst [vmem:[%s433_s29] sm:$0xf] %v5343_v57  ;;  %v5345_v6 = vpack.c.bf16 %v5343_v57, %v5343_v57 }
 0x9f4   : > { %5418 = vmatmul.bf16.vlgmr.msra.gmra.mxu1 %v5345_v6 }
 0x9f7   : > { %v5341_v28 = vpop.f32.mrf.mxu0 }
 0xa71   : > { %v5419_v54 = vpop.f32.mrf.mxu1 }
 0xa72   : > { %v5424_v11 = vsel %vm5423_vm0, %v5419_v54, -inf }
 0xa73   : > { %5425 = vmax.xlane.f32.xlu0 %v5424_v11 }
 0xa79   : > { %v5421_v40 = vpop.f32.mrf.mxu1 }
 0xae6   : > { %v5426_v43 = vpop.xlane.xlu0 %5425 }
 0xae7   : > { %v5427_v8 = vsub.f32 %v5419_v54, %v5426_v43 }
 0xae9   : > { %v5428_v63 = vmul.f32 1.442695, %v5427_v8 }
 0xaeb   : > { %6076 = vpow2.f32 %v5428_v63 }
 0xaf1   : > { %v6077_v62 = vpop.eup %6076 }
 0xaf2   : > { %v5430_v21 = vsel %vm5423_vm0, %v6077_v62, 0.0 }
 0xaf3   : > { %5431 = vadd.xlane.f32.xlu0 %v5430_v21 }
 0xaf4   : > { %6303 = shalt.err (!%p6300_p12)
}
 0xaf5   : > { %5998 = dma.vmem_to_hbm [thread:$0]  (%p6510_p5), %s5457_s1, 64, %s5459_s24, %s5439_s8  }
 0xaf6   : > { %s5468_s9 = scalar_lea.hbm %s8132_s7, %s5772_s10  ;;  %s440_s23 = scalar_lea.vmem [#allocation14], %s5672_s30 }
 0xaf7   : > { %s5470_s17 = sshll.u32 %s440_s23, 4  ;;  %s5472_s21 = sshll.u32 %s5468_s9, 4  ;;  %s5471_s17 = int_to_ptr.vmem [resolvable:$true] %s5470_s17  ;;  %s5473_s21 = int_to_ptr.hbm [resolvable:$true] %s5472_s21 }
 0xaf8   : > { %s5444_s29 = scalar_lea.sflag [#allocation15], %s6599_s26  ;;  %s6318_s15 = sshra.s32 %s5473_s21, 4  ;;  %s6319_s15 = int_to_ptr.hbm [resolvable:$true] %s6318_s15 }
 0xaf9   : > { %s6320_s4 = scalar_lea.hbm %s6319_s15, 4  ;;  %s6324_s1 = scalar_lea.hbm %s8132_s7, 16 }
 0xafa   : > { %p6321_p13 = scmp.ne.s32.totalorder %s6319_s15, %s6320_s4  ;;  %p6325_p9 = scmp.lt.s32.totalorder %s6319_s15, %s8132_s7 }
 0xafb   : > { %p6326_p0 = scmp.lt.s32.totalorder %s6324_s1, %s6320_s4 }
 0xafc   : > { %p6322_p8 = pnand %p6321_p13, %p6510_p5 }
 0xafd   : > { %p6327_p4 = por %p6326_p0, %p6325_p9 }
 0xafe   : > { %p6323_p7 = pneg %p6322_p8 }
 0xb00   : > { %p6328_p3 = pnand %p6327_p4, %p6323_p7 }
 0xb66   : > { %v5432_v42 = vpop.xlane.xlu0 %5431 }
 0xb67   : > { %6078 = vlog2.f32 %v5432_v42 }
 0xb6d   : > { %v6079_v4 = vpop.eup %6078 }
 0xb6e   : > { %v5434_v49 = vmul.f32 0.6931472, %v6079_v4 }
 0xb70   : > { %v5435_v37 = vadd.f32 %v5434_v49, %v5426_v43 }
 0xb72   : > { %v5436_v22 = vsub.f32 %v5419_v54, %v5435_v37 }
 0xb74   : > { %5437 = vst [vmem:[%s440_s23] sm:$0xf] %v5436_v22 }
 0xb75   : > { %6331 = shalt.err (!%p6328_p3)
}
 0xb76   : > { %5999 = dma.vmem_to_hbm [thread:$0]  (%p6510_p5), %s5471_s17, 64, %s5473_s21, %s5444_s29  }
 0xb77 PF: > { %s8720_s26 = sld [smem:[#allocation22_spill]]  ;;  %p6036_p1 = scmp.ge.s32.totalorder %s6386_s27, 2 }
 0xb79   : > { %p6023_p2 = pnand %p6036_p1, %p6470_p6 }
 0xb7b   : > { %p6024_p10 = pneg %p6023_p2 }
 0xb7d   : > { %s5484_s13 = sand.u32 1, %s8720_s26  }
 0xb7e   : > { %s5485_s3 = scalar_lea.sflag [#allocation4], %s5484_s13 }
 0xb7f   : > { %6365 = dma.done.wait (%p6024_p10), %s5485_s3, 64  }
 0xb80   : > { %6367 = vsyncadd (%p6024_p10), %s5485_s3, 4294967232  ;;  %s5495_s11 = scalar_lea.sflag [#allocation15], %s5484_s13 }
 0xb81   : > { %6369 = dma.done.wait (%p6024_p10), %s5495_s11, 64  }
 0xb82   : > { %6371 = vsyncadd (%p6024_p10), %s5495_s11, 4294967232  ;;  %s8722_s27 = sld [smem:[#allocation25_spill]]  ;;  %s8725_s24 = smov %s6378_s25 }
 0xb83   : > { %s8723_s28 = sld [smem:[#allocation23_spill]] }
 0xb84   : > { %s8724_s26 = sld [smem:[#allocation26_spill]] }
 0xb88   : > { %p29_p5 = scmp.ge.s32.totalorder %s8722_s27, 6  }
 0xb89   : > { %s8726_s25 = smov %s8723_s28 }
 0xb8a   :  { %31 = sbr.rel (!%p29_p5) target bundleno = 15 (0xf), region = 142 }
 0xb8f   :  { %5501 = vsyncpa [#allocation3], 1 }
 0xb90   :  { %5503 = vsyncpa [#allocation3 + $0x1], 1 }
 0xb91   :  { %5504 = vsyncpa [#allocation6], 1 }
 0xb92   :  { %5506 = vsyncpa [#allocation6 + $0x1], 1 }
 0xb93   :  { %5507 = vsyncpa [#allocation9], 1 }
 0xb94   :  { %5508 = vsyncpa [#allocation12], 1 }
 0xb95   :  { %5509 = vsyncpa [#allocation4], 1 }
 0xb96   :  { %5511 = vsyncpa [#allocation4 + $0x1], 1 }
 0xb97   :  { %5512 = vsyncpa [#allocation15], 1 }
 0xb98   :  { %5514 = vsyncpa [#allocation15 + $0x1], 1 }

</bundles_post_ra>
